<compile_context>
chip_gen: v7x
topology: tpu7x:2x2x1
jax: 0.10.0
libtpu: 0.0.40
codegen_flags: <defaults>
</compile_context>

<pallas_src>
import jax
import jax.numpy as jnp
from jax.experimental import pallas as pl
from jax.experimental.pallas import tpu as pltpu

KH = KW = 3          # kernel_size=3 (supplied via **conv_kwargs in the PyTorch module)
PAD = 1              # padding=1
STRIDE = 1           # module default stride
EPS = 1e-5           # nn.BatchNorm2d default eps
COUT_TILE = 128      # lane-dense Cout tile (fills v5e's 128-wide MXU; set 256 on
                     # v6e/v7x for Cout >= 256 to fill the 2x256 MXU)
MXU_DTYPE = jnp.float32   # set jnp.bfloat16 on v6e/v7x for 2-4x MXU throughput
                          # (f32 accumulation kept; re-validate the 2e-4 tolerance)
Y_DTYPE = jnp.float32     # set jnp.bfloat16 to halve the y intermediate's HBM traffic
                          # (BN stats are computed in f32 before the cast)
VMEM_LIMIT_BYTES = 48 * 1024 * 1024   # <= v7x physical 64 MiB; generous on v5e/v6e


def _conv_stats_kernel(x_ref, w_ref, b_ref,
                       y_ref, psum_ref, m2_ref,
                       xpad_ref, tap_ref):
    """Pass 1: 3x3/s1/p1 conv (9 accumulating MXU dots) + bias, plus per-tile
    BN partial statistics (sum, centered M2) computed on the pre-bias conv."""
    co = pl.program_id(1)
    n_taps, HW, Cin = tap_ref.shape
    Hp, Wp, _ = xpad_ref.shape
    H, W = Hp - 2 * PAD, Wp - 2 * PAD

    # Halo + tap staging depend only on the batch index -> build once per image
    # and carry the scratch across Cout tiles (grid axis 1 is "arbitrary").
    @pl.when(co == 0)
    def _():
        xpad_ref[...] = jnp.zeros_like(xpad_ref)            # zero halo border
        xpad_ref[PAD:PAD + H, PAD:PAD + W, :] = x_ref[0]    # interior slab store
        for t in range(n_taps):
            dh, dw = t // KW, t % KW
            tap_ref[t] = (xpad_ref[dh:dh + H, dw:dw + W, :]
                          .reshape(HW, Cin).astype(tap_ref.dtype))

    # 9 accumulating dots: (HW, Cin) @ (Cin, COUT_TILE) -> f32 value accumulator.
    # No im2col patch, no accumulator scratch.
    conv = jnp.dot(tap_ref[0], w_ref[0], preferred_element_type=jnp.float32)
    for t in range(1, n_taps):
        conv = conv + jnp.dot(tap_ref[t], w_ref[t],
                              preferred_element_type=jnp.float32)

    # Per-tile BN partials on the pre-bias conv output. Variance is invariant to
    # the per-channel bias, so this sidesteps E[x^2]-E[x]^2 cancellation; tiles
    # are combined with Chan's parallel formula in the wrapper.
    s = jnp.sum(conv, axis=0, keepdims=True)                # (1, COUT_TILE)
    mu = s * (1.0 / HW)
    d = conv - mu
    m2 = jnp.sum(d * d, axis=0, keepdims=True)              # (1, COUT_TILE)
    psum_ref[...] = s[None]
    m2_ref[...] = m2[None]

    y_ref[...] = (conv + b_ref[...])[None].astype(y_ref.dtype)


def _bn_relu_nchw_kernel(y_ref, scale_ref, shift_ref, o_ref):
    """Pass 2: folded BN affine (y*scale+shift) + ReLU. The tile is transposed
    in-kernel (XLU) so the output block is (COUT_TILE, H*W) — NCHW layout
    directly, lane-dense store whenever H*W is a multiple of 128."""
    y = y_ref[0].astype(jnp.float32)                        # (HW, COUT_TILE)
    o = jnp.maximum(y * scale_ref[...] + shift_ref[...], 0.0)
    o_ref[0] = o.T.astype(o_ref.dtype)                      # (COUT_TILE, HW)


def conv_bn_relu(x_nchw, w_oihw, bias, gamma, beta):
    """Fused Conv2d(3x3, stride=1, pad=1) + BatchNorm2d(train) + ReLU."""
    N, Cin, H, W = x_nchw.shape
    Cout = w_oihw.shape[0]
    Cpad = ((Cout + COUT_TILE - 1) // COUT_TILE) * COUT_TILE
    n_co = Cpad // COUT_TILE
    HW = H * W

    # NCHW -> NHWC once at entry (channels on the lane dim). Accepted: the
    # producer hands over NCHW (PyTorch layout).
    x = jnp.transpose(x_nchw, (0, 2, 3, 1))
    # OIHW -> (KH*KW, Cin, Cpad): one (Cin, Cpad) weight slab per tap, so the
    # kernel indexes w_ref[t] with a clean leading-axis load (no sublane slicing).
    w = jnp.transpose(w_oihw, (2, 3, 1, 0)).reshape(KH * KW, Cin, Cout)
    w = jnp.pad(w, ((0, 0), (0, 0), (0, Cpad - Cout))).astype(MXU_DTYPE)
    b = jnp.pad(bias, (0, Cpad - Cout)).reshape(1, Cpad).astype(jnp.float32)

    # TODO(synk): for large images (e.g. H=W>=112 on v7x's 64 MiB VMEM) split the
    # per-image block into halo'd H-tiles; unnecessary at these shapes.
    y, psum, m2 = pl.pallas_call(
        _conv_stats_kernel,
        out_shape=(
            jax.ShapeDtypeStruct((N, HW, Cpad), Y_DTYPE),
            jax.ShapeDtypeStruct((N, 1, Cpad), jnp.float32),
            jax.ShapeDtypeStruct((N, 1, Cpad), jnp.float32),
        ),
        grid_spec=pltpu.PrefetchScalarGridSpec(
            num_scalar_prefetch=0,
            grid=(N, n_co),
            in_specs=[
                pl.BlockSpec((1, H, W, Cin), lambda n, co: (n, 0, 0, 0)),
                pl.BlockSpec((KH * KW, Cin, COUT_TILE), lambda n, co: (0, 0, co)),
                pl.BlockSpec((1, COUT_TILE), lambda n, co: (0, co)),
            ],
            out_specs=[
                pl.BlockSpec((1, HW, COUT_TILE), lambda n, co: (n, 0, co)),
                pl.BlockSpec((1, 1, COUT_TILE), lambda n, co: (n, 0, co)),
                pl.BlockSpec((1, 1, COUT_TILE), lambda n, co: (n, 0, co)),
            ],
            scratch_shapes=[
                pltpu.VMEM((H + 2 * PAD, W + 2 * PAD, Cin), x.dtype),  # halo buf
                pltpu.VMEM((KH * KW, HW, Cin), MXU_DTYPE),             # tap slabs
            ]),
        compiler_params=pltpu.CompilerParams(
            # axis 1 must be "arbitrary": the halo/tap scratch is carried across
            # the Cout tiles of one image; axis 0 stays "parallel" for megacore.
            dimension_semantics=("parallel", "arbitrary"),
            vmem_limit_bytes=VMEM_LIMIT_BYTES),
    )(x, w, b)

    # Tiny per-channel glue: Chan-style combination of per-tile (sum, M2),
    # then fold BN into scale/shift. All f32.
    cnt_t = jnp.float32(HW)
    cnt = jnp.float32(N * HW)
    mean_t = psum / cnt_t                                   # (N, 1, Cpad)
    mean0 = jnp.sum(psum, axis=(0, 1)) / cnt                # (Cpad,) pre-bias mean
    var = (jnp.sum(m2, axis=(0, 1))
           + cnt_t * jnp.sum((mean_t - mean0) ** 2, axis=(0, 1))) / cnt
    gamma_p = jnp.pad(gamma, (0, Cpad - Cout))
    beta_p = jnp.pad(beta, (0, Cpad - Cout))
    bias_p = jnp.pad(bias, (0, Cpad - Cout))
    mean = mean0 + bias_p                                   # add bias back to the mean
    scale = gamma_p * jax.lax.rsqrt(var + EPS)
    shift = beta_p - mean * scale

    # Pass 2: BN affine + ReLU, output written directly in (N, Cpad, H*W) NCHW
    # layout (lane-dense last dim), so no wrapper-side full-array transpose.
    out = pl.pallas_call(
        _bn_relu_nchw_kernel,
        out_shape=jax.ShapeDtypeStruct((N, Cpad, HW), x_nchw.dtype),
        grid_spec=pltpu.PrefetchScalarGridSpec(
            num_scalar_prefetch=0,
            grid=(N, n_co),
            in_specs=[
                pl.BlockSpec((1, HW, COUT_TILE), lambda n, co: (n, 0, co)),
                pl.BlockSpec((1, COUT_TILE), lambda n, co: (0, co)),
                pl.BlockSpec((1, COUT_TILE), lambda n, co: (0, co)),
            ],
            out_specs=pl.BlockSpec((1, COUT_TILE, HW), lambda n, co: (n, co, 0)),
        ),
        compiler_params=pltpu.CompilerParams(
            dimension_semantics=("parallel", "parallel"),
            vmem_limit_bytes=VMEM_LIMIT_BYTES),
    )(y, scale.reshape(1, Cpad), shift.reshape(1, Cpad))

    # Channel-slice (padding waste only matters for Cout << 128; documented) and
    # free reshape to PyTorch NCHW.
    return out[:, :Cout, :].reshape(N, Cout, H, W)
    # TODO(synk): BatchNorm running_mean / running_var momentum updates are a
    # training side effect that does not affect this forward output; not reproduced.


def reference(x_nchw, w_oihw, bias, gamma, beta):
    """Pure-JAX reference matching PyTorch ConvBNReLU.forward (train-mode BN)."""
    y = jax.lax.conv_general_dilated(
        x_nchw, w_oihw,
        window_strides=(STRIDE, STRIDE),
        padding=[(PAD, PAD), (PAD, PAD)],
        dimension_numbers=("NCHW", "OIHW", "NCHW"))
    y = y + bias[None, :, None, None]
    mean = jnp.mean(y, axis=(0, 2, 3), keepdims=True)
    var = jnp.mean((y - mean) ** 2, axis=(0, 2, 3), keepdims=True)
    y = (y - mean) * jax.lax.rsqrt(var + EPS)
    y = y * gamma[None, :, None, None] + beta[None, :, None, None]
    return jnp.maximum(y, 0.0)


if __name__ == "__main__":
    key = jax.random.PRNGKey(0)
    k_x, k_w, k_b, k_g, k_beta = jax.random.split(key, 5)

    N, Cin, Cout, H, W = 2, 4, 8, 16, 16

    x = jax.random.normal(k_x, (N, Cin, H, W), dtype=jnp.float32)
    # Deterministic "synthetic checkpoint" parameters.
    w = jax.random.normal(k_w, (Cout, Cin, KH, KW), dtype=jnp.float32) * 0.1
    b = jax.random.normal(k_b, (Cout,), dtype=jnp.float32) * 0.1
    gamma = 1.0 + 0.1 * jax.random.normal(k_g, (Cout,), dtype=jnp.float32)
    beta = 0.1 * jax.random.normal(k_beta, (Cout,), dtype=jnp.float32)

    fwd = jax.jit(conv_bn_relu)
    out = jax.block_until_ready(fwd(x, w, b, gamma, beta))

    ref = jax.block_until_ready(reference(x, w, b, gamma, beta))
    assert out.shape == (N, Cout, H, W), out.shape
    assert jnp.allclose(out, ref, atol=2e-4, rtol=2e-4), float(
        jnp.max(jnp.abs(out - ref)))

    print("KERNEL_OK")
</pallas_src>

<mosaic_0001>
module attributes {stable_mosaic.version = 11 : i64} {
  func.func @_conv_stats_kernel(%arg0: i32, %arg1: i32, %arg2: memref<1x16x16x4xf32, #tpu.memory_space<vmem>>, %arg3: memref<9x4x128xf32, #tpu.memory_space<vmem>>, %arg4: memref<1x128xf32, #tpu.memory_space<vmem>>, %arg5: memref<1x256x128xf32, #tpu.memory_space<vmem>>, %arg6: memref<1x1x128xf32, #tpu.memory_space<vmem>>, %arg7: memref<1x1x128xf32, #tpu.memory_space<vmem>>, %arg8: memref<18x18x4xf32, #tpu.memory_space<vmem>>, %arg9: memref<9x256x4xf32, #tpu.memory_space<vmem>>) attributes {dimension_semantics = [#tpu.dimension_semantics<parallel>, #tpu.dimension_semantics<arbitrary>], iteration_bounds = array<i64: 2, 1>, scalar_prefetch = 0 : i64, scratch_operands = 2 : i64, tpu.core_type = #tpu.core_type<tc>, window_params = [{transform_indices = @transform_0, window_bounds = array<i64: 1, 16, 16, 4>}, {transform_indices = @transform_1, window_bounds = array<i64: 9, 4, 128>}, {transform_indices = @transform_2, window_bounds = array<i64: 1, 128>}, {transform_indices = @transform_3, window_bounds = array<i64: 1, 256, 128>}, {transform_indices = @transform_4, window_bounds = array<i64: 1, 1, 128>}, {transform_indices = @transform_5, window_bounds = array<i64: 1, 1, 128>}]} {
    %c0_i32 = arith.constant 0 : i32
    %0 = arith.cmpi eq, %arg1, %c0_i32 : i32
    %1 = arith.extui %0 : i1 to i32
    %c0_i32_0 = arith.constant 0 : i32
    %2 = arith.cmpi ne, %1, %c0_i32_0 : i32
    scf.if %2 {
      %cst_68 = arith.constant 0.000000e+00 : f32
      %74 = vector.broadcast %cst_68 : f32 to vector<18x18x4xf32>
      %c0_69 = arith.constant 0 : index
      %c0_70 = arith.constant 0 : index
      %c0_71 = arith.constant 0 : index
      %75 = vector.load %arg8[%c0_69, %c0_70, %c0_71] : memref<18x18x4xf32, #tpu.memory_space<vmem>>, vector<18x18x4xf32>
      tpu.vector_store %arg8[%c0_69, %c0_70, %c0_71], %74 {strides = array<i32>} : memref<18x18x4xf32, #tpu.memory_space<vmem>>, vector<18x18x4xf32>,
      %c0_72 = arith.constant 0 : index
      %c0_73 = arith.constant 0 : index
      %c0_74 = arith.constant 0 : index
      %c0_75 = arith.constant 0 : index
      %76 = vector.load %arg2[%c0_72, %c0_73, %c0_74, %c0_75] : memref<1x16x16x4xf32, #tpu.memory_space<vmem>>, vector<1x16x16x4xf32>
      %77 = vector.shape_cast %76 : vector<1x16x16x4xf32> to vector<16x16x4xf32>
      %c1_76 = arith.constant 1 : index
      %c1_77 = arith.constant 1 : index
      %c0_78 = arith.constant 0 : index
      %78 = vector.load %arg8[%c1_76, %c1_77, %c0_78] : memref<18x18x4xf32, #tpu.memory_space<vmem>>, vector<16x16x4xf32>
      tpu.vector_store %arg8[%c1_76, %c1_77, %c0_78], %77 {strides = array<i32>} : memref<18x18x4xf32, #tpu.memory_space<vmem>>, vector<16x16x4xf32>,
      %c0_79 = arith.constant 0 : index
      %c0_80 = arith.constant 0 : index
      %c0_81 = arith.constant 0 : index
      %79 = vector.load %arg8[%c0_79, %c0_80, %c0_81] : memref<18x18x4xf32, #tpu.memory_space<vmem>>, vector<16x16x4xf32>
      %80 = vector.shape_cast %79 : vector<16x16x4xf32> to vector<256x4xf32>
      %c0_82 = arith.constant 0 : index
      %c0_83 = arith.constant 0 : index
      %c0_84 = arith.constant 0 : index
      %81 = vector.load %arg9[%c0_82, %c0_83, %c0_84] : memref<9x256x4xf32, #tpu.memory_space<vmem>>, vector<1x256x4xf32>
      %82 = vector.shape_cast %81 : vector<1x256x4xf32> to vector<256x4xf32>
      %83 = vector.shape_cast %80 : vector<256x4xf32> to vector<1x256x4xf32>
      tpu.vector_store %arg9[%c0_82, %c0_83, %c0_84], %83 {strides = array<i32>} : memref<9x256x4xf32, #tpu.memory_space<vmem>>, vector<1x256x4xf32>,
      %c0_85 = arith.constant 0 : index
      %c1_86 = arith.constant 1 : index
      %c0_87 = arith.constant 0 : index
      %84 = vector.load %arg8[%c0_85, %c1_86, %c0_87] : memref<18x18x4xf32, #tpu.memory_space<vmem>>, vector<16x16x4xf32>
      %85 = vector.shape_cast %84 : vector<16x16x4xf32> to vector<256x4xf32>
      %c1_88 = arith.constant 1 : index
      %c0_89 = arith.constant 0 : index
      %c0_90 = arith.constant 0 : index
      %86 = vector.load %arg9[%c1_88, %c0_89, %c0_90] : memref<9x256x4xf32, #tpu.memory_space<vmem>>, vector<1x256x4xf32>
      %87 = vector.shape_cast %86 : vector<1x256x4xf32> to vector<256x4xf32>
      %88 = vector.shape_cast %85 : vector<256x4xf32> to vector<1x256x4xf32>
      tpu.vector_store %arg9[%c1_88, %c0_89, %c0_90], %88 {strides = array<i32>} : memref<9x256x4xf32, #tpu.memory_space<vmem>>, vector<1x256x4xf32>,
      %c0_91 = arith.constant 0 : index
      %c2_92 = arith.constant 2 : index
      %c0_93 = arith.constant 0 : index
      %89 = vector.load %arg8[%c0_91, %c2_92, %c0_93] : memref<18x18x4xf32, #tpu.memory_space<vmem>>, vector<16x16x4xf32>
      %90 = vector.shape_cast %89 : vector<16x16x4xf32> to vector<256x4xf32>
      %c2_94 = arith.constant 2 : index
      %c0_95 = arith.constant 0 : index
      %c0_96 = arith.constant 0 : index
      %91 = vector.load %arg9[%c2_94, %c0_95, %c0_96] : memref<9x256x4xf32, #tpu.memory_space<vmem>>, vector<1x256x4xf32>
      %92 = vector.shape_cast %91 : vector<1x256x4xf32> to vector<256x4xf32>
      %93 = vector.shape_cast %90 : vector<256x4xf32> to vector<1x256x4xf32>
      tpu.vector_store %arg9[%c2_94, %c0_95, %c0_96], %93 {strides = array<i32>} : memref<9x256x4xf32, #tpu.memory_space<vmem>>, vector<1x256x4xf32>,
      %c1_97 = arith.constant 1 : index
      %c0_98 = arith.constant 0 : index
      %c0_99 = arith.constant 0 : index
      %94 = vector.load %arg8[%c1_97, %c0_98, %c0_99] : memref<18x18x4xf32, #tpu.memory_space<vmem>>, vector<16x16x4xf32>
      %95 = vector.shape_cast %94 : vector<16x16x4xf32> to vector<256x4xf32>
      %c3_100 = arith.constant 3 : index
      %c0_101 = arith.constant 0 : index
      %c0_102 = arith.constant 0 : index
      %96 = vector.load %arg9[%c3_100, %c0_101, %c0_102] : memref<9x256x4xf32, #tpu.memory_space<vmem>>, vector<1x256x4xf32>
      %97 = vector.shape_cast %96 : vector<1x256x4xf32> to vector<256x4xf32>
      %98 = vector.shape_cast %95 : vector<256x4xf32> to vector<1x256x4xf32>
      tpu.vector_store %arg9[%c3_100, %c0_101, %c0_102], %98 {strides = array<i32>} : memref<9x256x4xf32, #tpu.memory_space<vmem>>, vector<1x256x4xf32>,
      %c1_103 = arith.constant 1 : index
      %c1_104 = arith.constant 1 : index
      %c0_105 = arith.constant 0 : index
      %99 = vector.load %arg8[%c1_103, %c1_104, %c0_105] : memref<18x18x4xf32, #tpu.memory_space<vmem>>, vector<16x16x4xf32>
      %100 = vector.shape_cast %99 : vector<16x16x4xf32> to vector<256x4xf32>
      %c4_106 = arith.constant 4 : index
      %c0_107 = arith.constant 0 : index
      %c0_108 = arith.constant 0 : index
      %101 = vector.load %arg9[%c4_106, %c0_107, %c0_108] : memref<9x256x4xf32, #tpu.memory_space<vmem>>, vector<1x256x4xf32>
      %102 = vector.shape_cast %101 : vector<1x256x4xf32> to vector<256x4xf32>
      %103 = vector.shape_cast %100 : vector<256x4xf32> to vector<1x256x4xf32>
      tpu.vector_store %arg9[%c4_106, %c0_107, %c0_108], %103 {strides = array<i32>} : memref<9x256x4xf32, #tpu.memory_space<vmem>>, vector<1x256x4xf32>,
      %c1_109 = arith.constant 1 : index
      %c2_110 = arith.constant 2 : index
      %c0_111 = arith.constant 0 : index
      %104 = vector.load %arg8[%c1_109, %c2_110, %c0_111] : memref<18x18x4xf32, #tpu.memory_space<vmem>>, vector<16x16x4xf32>
      %105 = vector.shape_cast %104 : vector<16x16x4xf32> to vector<256x4xf32>
      %c5_112 = arith.constant 5 : index
      %c0_113 = arith.constant 0 : index
      %c0_114 = arith.constant 0 : index
      %106 = vector.load %arg9[%c5_112, %c0_113, %c0_114] : memref<9x256x4xf32, #tpu.memory_space<vmem>>, vector<1x256x4xf32>
      %107 = vector.shape_cast %106 : vector<1x256x4xf32> to vector<256x4xf32>
      %108 = vector.shape_cast %105 : vector<256x4xf32> to vector<1x256x4xf32>
      tpu.vector_store %arg9[%c5_112, %c0_113, %c0_114], %108 {strides = array<i32>} : memref<9x256x4xf32, #tpu.memory_space<vmem>>, vector<1x256x4xf32>,
      %c2_115 = arith.constant 2 : index
      %c0_116 = arith.constant 0 : index
      %c0_117 = arith.constant 0 : index
      %109 = vector.load %arg8[%c2_115, %c0_116, %c0_117] : memref<18x18x4xf32, #tpu.memory_space<vmem>>, vector<16x16x4xf32>
      %110 = vector.shape_cast %109 : vector<16x16x4xf32> to vector<256x4xf32>
      %c6_118 = arith.constant 6 : index
      %c0_119 = arith.constant 0 : index
      %c0_120 = arith.constant 0 : index
      %111 = vector.load %arg9[%c6_118, %c0_119, %c0_120] : memref<9x256x4xf32, #tpu.memory_space<vmem>>, vector<1x256x4xf32>
      %112 = vector.shape_cast %111 : vector<1x256x4xf32> to vector<256x4xf32>
      %113 = vector.shape_cast %110 : vector<256x4xf32> to vector<1x256x4xf32>
      tpu.vector_store %arg9[%c6_118, %c0_119, %c0_120], %113 {strides = array<i32>} : memref<9x256x4xf32, #tpu.memory_space<vmem>>, vector<1x256x4xf32>,
      %c2_121 = arith.constant 2 : index
      %c1_122 = arith.constant 1 : index
      %c0_123 = arith.constant 0 : index
      %114 = vector.load %arg8[%c2_121, %c1_122, %c0_123] : memref<18x18x4xf32, #tpu.memory_space<vmem>>, vector<16x16x4xf32>
      %115 = vector.shape_cast %114 : vector<16x16x4xf32> to vector<256x4xf32>
      %c7_124 = arith.constant 7 : index
      %c0_125 = arith.constant 0 : index
      %c0_126 = arith.constant 0 : index
      %116 = vector.load %arg9[%c7_124, %c0_125, %c0_126] : memref<9x256x4xf32, #tpu.memory_space<vmem>>, vector<1x256x4xf32>
      %117 = vector.shape_cast %116 : vector<1x256x4xf32> to vector<256x4xf32>
      %118 = vector.shape_cast %115 : vector<256x4xf32> to vector<1x256x4xf32>
      tpu.vector_store %arg9[%c7_124, %c0_125, %c0_126], %118 {strides = array<i32>} : memref<9x256x4xf32, #tpu.memory_space<vmem>>, vector<1x256x4xf32>,
      %c2_127 = arith.constant 2 : index
      %c2_128 = arith.constant 2 : index
      %c0_129 = arith.constant 0 : index
      %119 = vector.load %arg8[%c2_127, %c2_128, %c0_129] : memref<18x18x4xf32, #tpu.memory_space<vmem>>, vector<16x16x4xf32>
      %120 = vector.shape_cast %119 : vector<16x16x4xf32> to vector<256x4xf32>
      %c8_130 = arith.constant 8 : index
      %c0_131 = arith.constant 0 : index
      %c0_132 = arith.constant 0 : index
      %121 = vector.load %arg9[%c8_130, %c0_131, %c0_132] : memref<9x256x4xf32, #tpu.memory_space<vmem>>, vector<1x256x4xf32>
      %122 = vector.shape_cast %121 : vector<1x256x4xf32> to vector<256x4xf32>
      %123 = vector.shape_cast %120 : vector<256x4xf32> to vector<1x256x4xf32>
      tpu.vector_store %arg9[%c8_130, %c0_131, %c0_132], %123 {strides = array<i32>} : memref<9x256x4xf32, #tpu.memory_space<vmem>>, vector<1x256x4xf32>,
    } else {
    }
    %c0 = arith.constant 0 : index
    %c0_1 = arith.constant 0 : index
    %c0_2 = arith.constant 0 : index
    %3 = vector.load %arg9[%c0, %c0_1, %c0_2] : memref<9x256x4xf32, #tpu.memory_space<vmem>>, vector<1x256x4xf32>
    %4 = vector.shape_cast %3 : vector<1x256x4xf32> to vector<256x4xf32>
    %c0_3 = arith.constant 0 : index
    %c0_4 = arith.constant 0 : index
    %c0_5 = arith.constant 0 : index
    %5 = vector.load %arg3[%c0_3, %c0_4, %c0_5] : memref<9x4x128xf32, #tpu.memory_space<vmem>>, vector<1x4x128xf32>
    %6 = vector.shape_cast %5 : vector<1x4x128xf32> to vector<4x128xf32>
    %cst = arith.constant dense<0.000000e+00> : vector<256x128xf32>
    %7 = tpu.matmul %4, %6, %cst {dimension_numbers = #tpu.dot_dimension_numbers<[1], [0], [0], [1], [0, 0, 1, 1], [], []>} : vector<256x4xf32>, vector<4x128xf32>, vector<256x128xf32> -> vector<256x128xf32>
    %c1 = arith.constant 1 : index
    %c0_6 = arith.constant 0 : index
    %c0_7 = arith.constant 0 : index
    %8 = vector.load %arg9[%c1, %c0_6, %c0_7] : memref<9x256x4xf32, #tpu.memory_space<vmem>>, vector<1x256x4xf32>
    %9 = vector.shape_cast %8 : vector<1x256x4xf32> to vector<256x4xf32>
    %c1_8 = arith.constant 1 : index
    %c0_9 = arith.constant 0 : index
    %c0_10 = arith.constant 0 : index
    %10 = vector.load %arg3[%c1_8, %c0_9, %c0_10] : memref<9x4x128xf32, #tpu.memory_space<vmem>>, vector<1x4x128xf32>
    %11 = vector.shape_cast %10 : vector<1x4x128xf32> to vector<4x128xf32>
    %cst_11 = arith.constant dense<0.000000e+00> : vector<256x128xf32>
    %12 = tpu.matmul %9, %11, %cst_11 {dimension_numbers = #tpu.dot_dimension_numbers<[1], [0], [0], [1], [0, 0, 1, 1], [], []>} : vector<256x4xf32>, vector<4x128xf32>, vector<256x128xf32> -> vector<256x128xf32>
    %13 = arith.addf %7, %12 : vector<256x128xf32>
    %c2 = arith.constant 2 : index
    %c0_12 = arith.constant 0 : index
    %c0_13 = arith.constant 0 : index
    %14 = vector.load %arg9[%c2, %c0_12, %c0_13] : memref<9x256x4xf32, #tpu.memory_space<vmem>>, vector<1x256x4xf32>
    %15 = vector.shape_cast %14 : vector<1x256x4xf32> to vector<256x4xf32>
    %c2_14 = arith.constant 2 : index
    %c0_15 = arith.constant 0 : index
    %c0_16 = arith.constant 0 : index
    %16 = vector.load %arg3[%c2_14, %c0_15, %c0_16] : memref<9x4x128xf32, #tpu.memory_space<vmem>>, vector<1x4x128xf32>
    %17 = vector.shape_cast %16 : vector<1x4x128xf32> to vector<4x128xf32>
    %cst_17 = arith.constant dense<0.000000e+00> : vector<256x128xf32>
    %18 = tpu.matmul %15, %17, %cst_17 {dimension_numbers = #tpu.dot_dimension_numbers<[1], [0], [0], [1], [0, 0, 1, 1], [], []>} : vector<256x4xf32>, vector<4x128xf32>, vector<256x128xf32> -> vector<256x128xf32>
    %19 = arith.addf %13, %18 : vector<256x128xf32>
    %c3 = arith.constant 3 : index
    %c0_18 = arith.constant 0 : index
    %c0_19 = arith.constant 0 : index
    %20 = vector.load %arg9[%c3, %c0_18, %c0_19] : memref<9x256x4xf32, #tpu.memory_space<vmem>>, vector<1x256x4xf32>
    %21 = vector.shape_cast %20 : vector<1x256x4xf32> to vector<256x4xf32>
    %c3_20 = arith.constant 3 : index
    %c0_21 = arith.constant 0 : index
    %c0_22 = arith.constant 0 : index
    %22 = vector.load %arg3[%c3_20, %c0_21, %c0_22] : memref<9x4x128xf32, #tpu.memory_space<vmem>>, vector<1x4x128xf32>
    %23 = vector.shape_cast %22 : vector<1x4x128xf32> to vector<4x128xf32>
    %cst_23 = arith.constant dense<0.000000e+00> : vector<256x128xf32>
    %24 = tpu.matmul %21, %23, %cst_23 {dimension_numbers = #tpu.dot_dimension_numbers<[1], [0], [0], [1], [0, 0, 1, 1], [], []>} : vector<256x4xf32>, vector<4x128xf32>, vector<256x128xf32> -> vector<256x128xf32>
    %25 = arith.addf %19, %24 : vector<256x128xf32>
    %c4 = arith.constant 4 : index
    %c0_24 = arith.constant 0 : index
    %c0_25 = arith.constant 0 : index
    %26 = vector.load %arg9[%c4, %c0_24, %c0_25] : memref<9x256x4xf32, #tpu.memory_space<vmem>>, vector<1x256x4xf32>
    %27 = vector.shape_cast %26 : vector<1x256x4xf32> to vector<256x4xf32>
    %c4_26 = arith.constant 4 : index
    %c0_27 = arith.constant 0 : index
    %c0_28 = arith.constant 0 : index
    %28 = vector.load %arg3[%c4_26, %c0_27, %c0_28] : memref<9x4x128xf32, #tpu.memory_space<vmem>>, vector<1x4x128xf32>
    %29 = vector.shape_cast %28 : vector<1x4x128xf32> to vector<4x128xf32>
    %cst_29 = arith.constant dense<0.000000e+00> : vector<256x128xf32>
    %30 = tpu.matmul %27, %29, %cst_29 {dimension_numbers = #tpu.dot_dimension_numbers<[1], [0], [0], [1], [0, 0, 1, 1], [], []>} : vector<256x4xf32>, vector<4x128xf32>, vector<256x128xf32> -> vector<256x128xf32>
    %31 = arith.addf %25, %30 : vector<256x128xf32>
    %c5 = arith.constant 5 : index
    %c0_30 = arith.constant 0 : index
    %c0_31 = arith.constant 0 : index
    %32 = vector.load %arg9[%c5, %c0_30, %c0_31] : memref<9x256x4xf32, #tpu.memory_space<vmem>>, vector<1x256x4xf32>
    %33 = vector.shape_cast %32 : vector<1x256x4xf32> to vector<256x4xf32>
    %c5_32 = arith.constant 5 : index
    %c0_33 = arith.constant 0 : index
    %c0_34 = arith.constant 0 : index
    %34 = vector.load %arg3[%c5_32, %c0_33, %c0_34] : memref<9x4x128xf32, #tpu.memory_space<vmem>>, vector<1x4x128xf32>
    %35 = vector.shape_cast %34 : vector<1x4x128xf32> to vector<4x128xf32>
    %cst_35 = arith.constant dense<0.000000e+00> : vector<256x128xf32>
    %36 = tpu.matmul %33, %35, %cst_35 {dimension_numbers = #tpu.dot_dimension_numbers<[1], [0], [0], [1], [0, 0, 1, 1], [], []>} : vector<256x4xf32>, vector<4x128xf32>, vector<256x128xf32> -> vector<256x128xf32>
    %37 = arith.addf %31, %36 : vector<256x128xf32>
    %c6 = arith.constant 6 : index
    %c0_36 = arith.constant 0 : index
    %c0_37 = arith.constant 0 : index
    %38 = vector.load %arg9[%c6, %c0_36, %c0_37] : memref<9x256x4xf32, #tpu.memory_space<vmem>>, vector<1x256x4xf32>
    %39 = vector.shape_cast %38 : vector<1x256x4xf32> to vector<256x4xf32>
    %c6_38 = arith.constant 6 : index
    %c0_39 = arith.constant 0 : index
    %c0_40 = arith.constant 0 : index
    %40 = vector.load %arg3[%c6_38, %c0_39, %c0_40] : memref<9x4x128xf32, #tpu.memory_space<vmem>>, vector<1x4x128xf32>
    %41 = vector.shape_cast %40 : vector<1x4x128xf32> to vector<4x128xf32>
    %cst_41 = arith.constant dense<0.000000e+00> : vector<256x128xf32>
    %42 = tpu.matmul %39, %41, %cst_41 {dimension_numbers = #tpu.dot_dimension_numbers<[1], [0], [0], [1], [0, 0, 1, 1], [], []>} : vector<256x4xf32>, vector<4x128xf32>, vector<256x128xf32> -> vector<256x128xf32>
    %43 = arith.addf %37, %42 : vector<256x128xf32>
    %c7 = arith.constant 7 : index
    %c0_42 = arith.constant 0 : index
    %c0_43 = arith.constant 0 : index
    %44 = vector.load %arg9[%c7, %c0_42, %c0_43] : memref<9x256x4xf32, #tpu.memory_space<vmem>>, vector<1x256x4xf32>
    %45 = vector.shape_cast %44 : vector<1x256x4xf32> to vector<256x4xf32>
    %c7_44 = arith.constant 7 : index
    %c0_45 = arith.constant 0 : index
    %c0_46 = arith.constant 0 : index
    %46 = vector.load %arg3[%c7_44, %c0_45, %c0_46] : memref<9x4x128xf32, #tpu.memory_space<vmem>>, vector<1x4x128xf32>
    %47 = vector.shape_cast %46 : vector<1x4x128xf32> to vector<4x128xf32>
    %cst_47 = arith.constant dense<0.000000e+00> : vector<256x128xf32>
    %48 = tpu.matmul %45, %47, %cst_47 {dimension_numbers = #tpu.dot_dimension_numbers<[1], [0], [0], [1], [0, 0, 1, 1], [], []>} : vector<256x4xf32>, vector<4x128xf32>, vector<256x128xf32> -> vector<256x128xf32>
    %49 = arith.addf %43, %48 : vector<256x128xf32>
    %c8 = arith.constant 8 : index
    %c0_48 = arith.constant 0 : index
    %c0_49 = arith.constant 0 : index
    %50 = vector.load %arg9[%c8, %c0_48, %c0_49] : memref<9x256x4xf32, #tpu.memory_space<vmem>>, vector<1x256x4xf32>
    %51 = vector.shape_cast %50 : vector<1x256x4xf32> to vector<256x4xf32>
    %c8_50 = arith.constant 8 : index
    %c0_51 = arith.constant 0 : index
    %c0_52 = arith.constant 0 : index
    %52 = vector.load %arg3[%c8_50, %c0_51, %c0_52] : memref<9x4x128xf32, #tpu.memory_space<vmem>>, vector<1x4x128xf32>
    %53 = vector.shape_cast %52 : vector<1x4x128xf32> to vector<4x128xf32>
    %cst_53 = arith.constant dense<0.000000e+00> : vector<256x128xf32>
    %54 = tpu.matmul %51, %53, %cst_53 {dimension_numbers = #tpu.dot_dimension_numbers<[1], [0], [0], [1], [0, 0, 1, 1], [], []>} : vector<256x4xf32>, vector<4x128xf32>, vector<256x128xf32> -> vector<256x128xf32>
    %55 = arith.addf %49, %54 : vector<256x128xf32>
    %cst_54 = arith.constant dense<0.000000e+00> : vector<128xf32>
    %56 = vector.multi_reduction <add>, %55, %cst_54 [0] : vector<256x128xf32> to vector<128xf32>
    %57 = vector.shape_cast %56 : vector<128xf32> to vector<1x128xf32>
    %cst_55 = arith.constant 3.906250e-03 : f32
    %58 = vector.broadcast %cst_55 : f32 to vector<1x128xf32>
    %59 = arith.mulf %57, %58 : vector<1x128xf32>
    %60 = vector.broadcast %59 : vector<1x128xf32> to vector<256x128xf32>
    %61 = arith.subf %55, %60 : vector<256x128xf32>
    %62 = arith.mulf %61, %61 : vector<256x128xf32>
    %cst_56 = arith.constant dense<0.000000e+00> : vector<128xf32>
    %63 = vector.multi_reduction <add>, %62, %cst_56 [0] : vector<256x128xf32> to vector<128xf32>
    %64 = vector.shape_cast %63 : vector<128xf32> to vector<1x128xf32>
    %65 = vector.shape_cast %57 : vector<1x128xf32> to vector<1x1x128xf32>
    %c0_57 = arith.constant 0 : index
    %c0_58 = arith.constant 0 : index
    %c0_59 = arith.constant 0 : index
    %66 = vector.load %arg6[%c0_57, %c0_58, %c0_59] : memref<1x1x128xf32, #tpu.memory_space<vmem>>, vector<1x1x128xf32>
    tpu.vector_store %arg6[%c0_57, %c0_58, %c0_59], %65 {strides = array<i32>} : memref<1x1x128xf32, #tpu.memory_space<vmem>>, vector<1x1x128xf32>,
    %67 = vector.shape_cast %64 : vector<1x128xf32> to vector<1x1x128xf32>
    %c0_60 = arith.constant 0 : index
    %c0_61 = arith.constant 0 : index
    %c0_62 = arith.constant 0 : index
    %68 = vector.load %arg7[%c0_60, %c0_61, %c0_62] : memref<1x1x128xf32, #tpu.memory_space<vmem>>, vector<1x1x128xf32>
    tpu.vector_store %arg7[%c0_60, %c0_61, %c0_62], %67 {strides = array<i32>} : memref<1x1x128xf32, #tpu.memory_space<vmem>>, vector<1x1x128xf32>,
    %c0_63 = arith.constant 0 : index
    %c0_64 = arith.constant 0 : index
    %69 = vector.load %arg4[%c0_63, %c0_64] : memref<1x128xf32, #tpu.memory_space<vmem>>, vector<1x128xf32>
    %70 = vector.broadcast %69 : vector<1x128xf32> to vector<256x128xf32>
    %71 = arith.addf %55, %70 : vector<256x128xf32>
    %72 = vector.shape_cast %71 : vector<256x128xf32> to vector<1x256x128xf32>
    %c0_65 = arith.constant 0 : index
    %c0_66 = arith.constant 0 : index
    %c0_67 = arith.constant 0 : index
    %73 = vector.load %arg5[%c0_65, %c0_66, %c0_67] : memref<1x256x128xf32, #tpu.memory_space<vmem>>, vector<1x256x128xf32>
    tpu.vector_store %arg5[%c0_65, %c0_66, %c0_67], %72 {strides = array<i32>} : memref<1x256x128xf32, #tpu.memory_space<vmem>>, vector<1x256x128xf32>,
    return
  }
  func.func @transform_0(%arg0: i32, %arg1: i32) -> (i32, i32, i32, i32) {
    %c0_i32 = arith.constant 0 : i32
    %c0_i32_0 = arith.constant 0 : i32
    %c0_i32_1 = arith.constant 0 : i32
    %c0_i32_2 = arith.constant 0 : i32
    return %arg0, %c0_i32, %c0_i32_0, %c0_i32_1 : i32, i32, i32, i32
  }
  func.func @transform_1(%arg0: i32, %arg1: i32) -> (i32, i32, i32) {
    %c0_i32 = arith.constant 0 : i32
    %c0_i32_0 = arith.constant 0 : i32
    %c0_i32_1 = arith.constant 0 : i32
    return %c0_i32, %c0_i32_0, %arg1 : i32, i32, i32
  }
  func.func @transform_2(%arg0: i32, %arg1: i32) -> (i32, i32) {
    %c0_i32 = arith.constant 0 : i32
    %c0_i32_0 = arith.constant 0 : i32
    return %c0_i32, %arg1 : i32, i32
  }
  func.func @transform_3(%arg0: i32, %arg1: i32) -> (i32, i32, i32) {
    %c0_i32 = arith.constant 0 : i32
    %c0_i32_0 = arith.constant 0 : i32
    return %arg0, %c0_i32, %arg1 : i32, i32, i32
  }
  func.func @transform_4(%arg0: i32, %arg1: i32) -> (i32, i32, i32) {
    %c0_i32 = arith.constant 0 : i32
    %c0_i32_0 = arith.constant 0 : i32
    return %arg0, %c0_i32, %arg1 : i32, i32, i32
  }
  func.func @transform_5(%arg0: i32, %arg1: i32) -> (i32, i32, i32) {
    %c0_i32 = arith.constant 0 : i32
    %c0_i32_0 = arith.constant 0 : i32
    return %arg0, %c0_i32, %arg1 : i32, i32, i32
  }
}

module attributes {stable_mosaic.version = 11 : i64} {
  func.func @_bn_relu_nchw_kernel(%arg0: i32, %arg1: i32, %arg2: memref<1x256x128xf32, #tpu.memory_space<vmem>>, %arg3: memref<1x128xf32, #tpu.memory_space<vmem>>, %arg4: memref<1x128xf32, #tpu.memory_space<vmem>>, %arg5: memref<1x128x256xf32, #tpu.memory_space<vmem>>) attributes {dimension_semantics = [#tpu.dimension_semantics<parallel>, #tpu.dimension_semantics<parallel>], iteration_bounds = array<i64: 2, 1>, scalar_prefetch = 0 : i64, scratch_operands = 0 : i64, tpu.core_type = #tpu.core_type<tc>, window_params = [{transform_indices = @transform_0, window_bounds = array<i64: 1, 256, 128>}, {transform_indices = @transform_1, window_bounds = array<i64: 1, 128>}, {transform_indices = @transform_2, window_bounds = array<i64: 1, 128>}, {transform_indices = @transform_3, window_bounds = array<i64: 1, 128, 256>}]} {
    %c0 = arith.constant 0 : index
    %c0_0 = arith.constant 0 : index
    %c0_1 = arith.constant 0 : index
    %0 = vector.load %arg2[%c0, %c0_0, %c0_1] : memref<1x256x128xf32, #tpu.memory_space<vmem>>, vector<1x256x128xf32>
    %1 = vector.shape_cast %0 : vector<1x256x128xf32> to vector<256x128xf32>
    %c0_2 = arith.constant 0 : index
    %c0_3 = arith.constant 0 : index
    %2 = vector.load %arg3[%c0_2, %c0_3] : memref<1x128xf32, #tpu.memory_space<vmem>>, vector<1x128xf32>
    %3 = vector.broadcast %2 : vector<1x128xf32> to vector<256x128xf32>
    %4 = arith.mulf %1, %3 : vector<256x128xf32>
    %c0_4 = arith.constant 0 : index
    %c0_5 = arith.constant 0 : index
    %5 = vector.load %arg4[%c0_4, %c0_5] : memref<1x128xf32, #tpu.memory_space<vmem>>, vector<1x128xf32>
    %6 = vector.broadcast %5 : vector<1x128xf32> to vector<256x128xf32>
    %7 = arith.addf %4, %6 : vector<256x128xf32>
    %cst = arith.constant 0.000000e+00 : f32
    %8 = vector.broadcast %cst : f32 to vector<256x128xf32>
    %9 = arith.maximumf %7, %8 : vector<256x128xf32>
    %10 = tpu.transpose %9, [1, 0] : vector<256x128xf32> -> vector<128x256xf32>
    %c0_6 = arith.constant 0 : index
    %c0_7 = arith.constant 0 : index
    %c0_8 = arith.constant 0 : index
    %11 = vector.load %arg5[%c0_6, %c0_7, %c0_8] : memref<1x128x256xf32, #tpu.memory_space<vmem>>, vector<1x128x256xf32>
    %12 = vector.shape_cast %11 : vector<1x128x256xf32> to vector<128x256xf32>
    %13 = vector.shape_cast %10 : vector<128x256xf32> to vector<1x128x256xf32>
    tpu.vector_store %arg5[%c0_6, %c0_7, %c0_8], %13 {strides = array<i32>} : memref<1x128x256xf32, #tpu.memory_space<vmem>>, vector<1x128x256xf32>,
    return
  }
  func.func @transform_0(%arg0: i32, %arg1: i32) -> (i32, i32, i32) {
    %c0_i32 = arith.constant 0 : i32
    %c0_i32_0 = arith.constant 0 : i32
    return %arg0, %c0_i32, %arg1 : i32, i32, i32
  }
  func.func @transform_1(%arg0: i32, %arg1: i32) -> (i32, i32) {
    %c0_i32 = arith.constant 0 : i32
    %c0_i32_0 = arith.constant 0 : i32
    return %c0_i32, %arg1 : i32, i32
  }
  func.func @transform_2(%arg0: i32, %arg1: i32) -> (i32, i32) {
    %c0_i32 = arith.constant 0 : i32
    %c0_i32_0 = arith.constant 0 : i32
    return %c0_i32, %arg1 : i32, i32
  }
  func.func @transform_3(%arg0: i32, %arg1: i32) -> (i32, i32, i32) {
    %c0_i32 = arith.constant 0 : i32
    %c0_i32_0 = arith.constant 0 : i32
    return %arg0, %arg1, %c0_i32 : i32, i32, i32
  }
}

</mosaic_0001>

<bundles_post_ra>
// kernel: conv_bn_relu.3
= control target key start
LH: loop header
LB: loop body
LE: loop exit
PB: predicated region body
PF: predicated region fallthrough
CT: control target
= control target key end

     0   :  { %s675_s12 = smov 0   ;;  %s677_s13 = smov 0   ;;  %s857_s0 = inlined_call_operand.vmem [shape: f32[2,256,128], index: 0, kind: input, shape index: {}]   ;;  %s858_s1 = inlined_call_operand.vmem [shape: f32[1,128], index: 1, kind: input, shape index: {}]   ;;  %s859_s2 = inlined_call_operand.vmem [shape: f32[1,128], index: 2, kind: input, shape index: {}]   ;;  %s860_s3 = inlined_call_operand.vmem [shape: f32[2,128,256], index: 3, kind: output, shape index: {}]  }
   0x1   :  { %s679_s14 = smov 0  }
   0x2 LB: > { %s25_s15 = sadd.s32 1, %s649_s13  ;;  %p596_p0 = scmp.ge.s32.totalorder %s653_s14, 1  ;;  %s653_s14 = sphi %s679_s14, %s13_s14   ;;  %s649_s13 = sphi %s677_s13, %s862_s13   ;;  %s645_s12 = sphi %s675_s12, %s861_s12  }
   0x3   : > { %p27_p1 = scmp.ge.s32.totalorder %s25_s15, 2  ;;  %p172_p2 = scmp.lt.s32.totalorder %s653_s14, 3 }
   0x5   : > { %s864_s15 = smov (%p27_p1, %s25_s15), 0  ;;  %p173_p3 = pnand %p596_p0, %p172_p2 }
   0x6   : > { %p210_p4 = scmp.lt.s32.totalorder (!%p173_p3), %s645_s12, 1  ;;  %v699_v0 = vld [vmem:[%s858_s1] ss:$0 sm:$0xff] (!%p173_p3) }
   0x7   : > { %176 = sbr.rel (%p173_p3) target bundleno = 215 (0xd7), region = 32  ;;  %v711_v1 = vld [vmem:[%s859_s2] ss:$0 sm:$0xff] (!%p173_p3) }
   0xe   : > { %s866_s12 = smov (!%p210_p4, %s645_s12), 1 }
   0xf   : > { %s605_s16 = sshll.u32 %s866_s12, 8 }
  0x10   : > { %s706_s21 = scalar_lea.vmem %s857_s0, %s605_s16  ;;  %s814_s26 = scalar_lea.vmem %s860_s3, %s605_s16 }
  0x11   : > { %v251_v2 = vld [vmem:[%s706_s21 + $0x80] sm:$0xff]  ;;  %v252_v4 = vld [vmem:[%s706_s21 + $0x88] sm:$0xff]  ;;  %v253_v9 = vld [vmem:[%s706_s21 + $0x90] sm:$0xff] }
  0x12   : > { %v235_v3 = vld [vmem:[%s706_s21] sm:$0xff]  ;;  %v290_v5 = vmul.f32 %v699_v0, %v251_v2  ;;  %v291_v7 = vmul.f32 %v699_v0, %v252_v4  ;;  %v236_v8 = vld [vmem:[%s706_s21 + $0x8] sm:$0xff]  ;;  %v237_v10 = vld [vmem:[%s706_s21 + $0x10] sm:$0xff]  ;;  %v292_v12 = vmul.f32 %v699_v0, %v253_v9 }
  0x13   : > { %v274_v6 = vmul.f32 %v699_v0, %v235_v3  ;;  %v275_v11 = vmul.f32 %v699_v0, %v236_v8  ;;  %v276_v16 = vmul.f32 %v699_v0, %v237_v10  ;;  %v254_v17 = vld [vmem:[%s706_s21 + $0x98] sm:$0xff]  ;;  %v255_v28 = vld [vmem:[%s706_s21 + $0xa0] sm:$0xff]  ;;  %v256_v36 = vld [vmem:[%s706_s21 + $0xa8] sm:$0xff] }
  0x14   : > { %v329_v13 = vadd.f32 %v711_v1, %v290_v5  ;;  %v330_v15 = vadd.f32 %v711_v1, %v291_v7  ;;  %v238_v19 = vld [vmem:[%s706_s21 + $0x18] sm:$0xff]  ;;  %v331_v22 = vadd.f32 %v711_v1, %v292_v12  ;;  %v293_v23 = vmul.f32 %v699_v0, %v254_v17  ;;  %v239_v29 = vld [vmem:[%s706_s21 + $0x20] sm:$0xff]  ;;  %v240_v37 = vld [vmem:[%s706_s21 + $0x28] sm:$0xff] }
  0x15   : > { %v313_v14 = vadd.f32 %v711_v1, %v274_v6  ;;  %v314_v18 = vadd.f32 %v711_v1, %v275_v11  ;;  %v315_v26 = vadd.f32 %v711_v1, %v276_v16  ;;  %v277_v27 = vmul.f32 %v699_v0, %v238_v19  ;;  %v257_v44 = vld [vmem:[%s706_s21 + $0xb0] sm:$0xff]  ;;  %v258_v52 = vld [vmem:[%s706_s21 + $0xb8] sm:$0xff]  ;;  %v259_v60 = vld [vmem:[%s706_s21 + $0xc0] sm:$0xff] }
  0x16   : > { %v361_v20 = vmax.f32 %v329_v13, 0.0  ;;  %v362_v24 = vmax.f32 %v330_v15, 0.0  ;;  %v363_v30 = vmax.f32 %v331_v22, 0.0  ;;  %v332_v31 = vadd.f32 %v711_v1, %v293_v23  ;;  %v241_v45 = vld [vmem:[%s706_s21 + $0x30] sm:$0xff]  ;;  %v242_v53 = vld [vmem:[%s706_s21 + $0x38] sm:$0xff]  ;;  %v243_v61 = vld [vmem:[%s706_s21 + $0x40] sm:$0xff] }
  0x17   : > { %v345_v21 = vmax.f32 %v313_v14, 0.0  ;;  %v346_v25 = vmax.f32 %v314_v18, 0.0  ;;  %v347_v32 = vmax.f32 %v315_v26, 0.0  ;;  %v316_v33 = vadd.f32 %v711_v1, %v277_v27  ;;  %v260_v6 = vld [vmem:[%s706_s21 + $0xc8] sm:$0xff]  ;;  %v261_v14 = vld [vmem:[%s706_s21 + $0xd0] sm:$0xff]  ;;  %v262_v22 = vld [vmem:[%s706_s21 + $0xd8] sm:$0xff] }
  0x18   : > { %409 = vxpose.xlu1.b32.start [1/16] %v361_v20, 128  ;;  %v294_v34 = vmul.f32 %v699_v0, %v255_v28  ;;  %v278_v35 = vmul.f32 %v699_v0, %v239_v29  ;;  %v364_v38 = vmax.f32 %v332_v31, 0.0  ;;  %v295_v39 = vmul.f32 %v699_v0, %v256_v36  ;;  %v244_v7 = vld [vmem:[%s706_s21 + $0x48] sm:$0xff]  ;;  %v245_v15 = vld [vmem:[%s706_s21 + $0x50] sm:$0xff]  ;;  %v246_v23 = vld [vmem:[%s706_s21 + $0x58] sm:$0xff] }
  0x19   : > { %377 = vxpose.xlu0.b32.start [1/16] %v345_v21, 128  ;;  %v348_v40 = vmax.f32 %v316_v33, 0.0  ;;  %v279_v43 = vmul.f32 %v699_v0, %v240_v37  ;;  %v296_v46 = vmul.f32 %v699_v0, %v257_v44  ;;  %v280_v47 = vmul.f32 %v699_v0, %v241_v45  ;;  %v247_v31 = vld [vmem:[%s706_s21 + $0x60] sm:$0xff] }
  0x1a   : > { %v333_v41 = vadd.f32 %v711_v1, %v294_v34  ;;  %v317_v42 = vadd.f32 %v711_v1, %v278_v35  ;;  %v334_v50 = vadd.f32 %v711_v1, %v295_v39  ;;  %v297_v55 = vmul.f32 %v699_v0, %v258_v52  ;;  %v248_v39 = vld [vmem:[%s706_s21 + $0x68] sm:$0xff] }
  0x1b   : > { %v318_v51 = vadd.f32 %v711_v1, %v279_v43  ;;  %v335_v54 = vadd.f32 %v711_v1, %v296_v46  ;;  %v319_v58 = vadd.f32 %v711_v1, %v280_v47  ;;  %v281_v59 = vmul.f32 %v699_v0, %v242_v53  ;;  %v265_v46 = vld [vmem:[%s706_s21 + $0xf0] sm:$0xff] }
  0x1c   : > { %410 = vxpose.xlu1.b32.cont [2/16] %v362_v24, 128  ;;  %v365_v48 = vmax.f32 %v333_v41, 0.0  ;;  %v349_v49 = vmax.f32 %v317_v42, 0.0  ;;  %v366_v56 = vmax.f32 %v334_v50, 0.0  ;;  %v336_v63 = vadd.f32 %v711_v1, %v297_v55  ;;  %v249_v47 = vld [vmem:[%s706_s21 + $0x70] sm:$0xff]  ;;  %v250_v55 = vld [vmem:[%s706_s21 + $0x78] sm:$0xff] }
  0x1d   : > { %378 = vxpose.xlu0.b32.cont [2/16] %v346_v25, 128  ;;  %v350_v57 = vmax.f32 %v318_v51, 0.0  ;;  %v367_v62 = vmax.f32 %v335_v54, 0.0  ;;  %v351_v2 = vmax.f32 %v319_v58, 0.0  ;;  %v320_v3 = vadd.f32 %v711_v1, %v281_v59  ;;  %v266_v54 = vld [vmem:[%s706_s21 + $0xf8] sm:$0xff] }
  0x1e   : > { %v298_v4 = vmul.f32 %v699_v0, %v259_v60  ;;  %v282_v5 = vmul.f32 %v699_v0, %v243_v61  ;;  %v368_v8 = vmax.f32 %v336_v63, 0.0  ;;  %v299_v9 = vmul.f32 %v699_v0, %v260_v6 }
  0x1f   : > { %v352_v10 = vmax.f32 %v320_v3, 0.0  ;;  %v283_v13 = vmul.f32 %v699_v0, %v244_v7  ;;  %v300_v16 = vmul.f32 %v699_v0, %v261_v14  ;;  %v284_v17 = vmul.f32 %v699_v0, %v245_v15 }
  0x20   : > { %411 = vxpose.xlu1.b32.cont [3/16] %v363_v30, 128  ;;  %v337_v11 = vadd.f32 %v711_v1, %v298_v4  ;;  %v321_v12 = vadd.f32 %v711_v1, %v282_v5  ;;  %v338_v20 = vadd.f32 %v711_v1, %v299_v9  ;;  %v301_v25 = vmul.f32 %v699_v0, %v262_v22  ;;  %v263_v30 = vld [vmem:[%s706_s21 + $0xe0] sm:$0xff] }
  0x21   : > { %379 = vxpose.xlu0.b32.cont [3/16] %v347_v32, 128  ;;  %v322_v21 = vadd.f32 %v711_v1, %v283_v13  ;;  %v339_v24 = vadd.f32 %v711_v1, %v300_v16  ;;  %v323_v28 = vadd.f32 %v711_v1, %v284_v17  ;;  %v285_v29 = vmul.f32 %v699_v0, %v246_v23 }
  0x22   : > { %v369_v18 = vmax.f32 %v337_v11, 0.0  ;;  %v353_v19 = vmax.f32 %v321_v12, 0.0  ;;  %v370_v26 = vmax.f32 %v338_v20, 0.0  ;;  %v340_v33 = vadd.f32 %v711_v1, %v301_v25 }
  0x23   : > { %v354_v27 = vmax.f32 %v322_v21, 0.0  ;;  %v371_v32 = vmax.f32 %v339_v24, 0.0  ;;  %v355_v34 = vmax.f32 %v323_v28, 0.0  ;;  %v324_v35 = vadd.f32 %v711_v1, %v285_v29 }
  0x24   : > { %412 = vxpose.xlu1.b32.cont [4/16] %v364_v38, 128  ;;  %v302_v36 = vmul.f32 %v699_v0, %v263_v30  ;;  %v286_v37 = vmul.f32 %v699_v0, %v247_v31  ;;  %v264_v38 = vld [vmem:[%s706_s21 + $0xe8] sm:$0xff]  ;;  %v287_v45 = vmul.f32 %v699_v0, %v248_v39  ;;  %v289_v61 = vmul.f32 %v699_v0, %v250_v55 }
  0x25   : > { %380 = vxpose.xlu0.b32.cont [4/16] %v348_v40, 128  ;;  %v372_v40 = vmax.f32 %v340_v33, 0.0  ;;  %v303_v41 = vmul.f32 %v699_v0, %v264_v38  ;;  %v356_v42 = vmax.f32 %v324_v35, 0.0 }
  0x26   : > { %v341_v43 = vadd.f32 %v711_v1, %v302_v36  ;;  %v325_v44 = vadd.f32 %v711_v1, %v286_v37  ;;  %v326_v53 = vadd.f32 %v711_v1, %v287_v45  ;;  %v328_v3 = vadd.f32 %v711_v1, %v289_v61 }
  0x27   : > { %v342_v52 = vadd.f32 %v711_v1, %v303_v41 }
  0x28   : > { %413 = vxpose.xlu1.b32.cont [5/16] %v365_v48, 128  ;;  %v304_v48 = vmul.f32 %v699_v0, %v265_v46  ;;  %v373_v50 = vmax.f32 %v341_v43, 0.0  ;;  %v357_v51 = vmax.f32 %v325_v44, 0.0  ;;  %v358_v59 = vmax.f32 %v326_v53, 0.0 }
  0x29   : > { %381 = vxpose.xlu0.b32.cont [5/16] %v349_v49, 128  ;;  %v288_v49 = vmul.f32 %v699_v0, %v249_v47  ;;  %v374_v58 = vmax.f32 %v342_v52, 0.0  ;;  %v360_v5 = vmax.f32 %v328_v3, 0.0 }
  0x2b   : > { %v327_v60 = vadd.f32 %v711_v1, %v288_v49 }
  0x2c   : > { %414 = vxpose.xlu1.b32.cont [6/16] %v366_v56, 128  ;;  %v343_v56 = vadd.f32 %v711_v1, %v304_v48 }
  0x2d   : > { %382 = vxpose.xlu0.b32.cont [6/16] %v350_v57, 128  ;;  %v305_v57 = vmul.f32 %v699_v0, %v266_v54  ;;  %v359_v63 = vmax.f32 %v327_v60, 0.0 }
  0x30   : > { %415 = vxpose.xlu1.b32.cont [7/16] %v367_v62, 128  ;;  %v375_v62 = vmax.f32 %v343_v56, 0.0 }
  0x31   : > { %383 = vxpose.xlu0.b32.cont [7/16] %v351_v2, 128  ;;  %v344_v2 = vadd.f32 %v711_v1, %v305_v57 }
  0x33   : > { %v376_v4 = vmax.f32 %v344_v2, 0.0 }
  0x34   : > { %416 = vxpose.xlu1.b32.cont [8/16] %v368_v8, 128 }
  0x35   : > { %384 = vxpose.xlu0.b32.cont [8/16] %v352_v10, 128 }
  0x38   : > { %417 = vxpose.xlu1.b32.cont [9/16] %v369_v18, 128 }
  0x39   : > { %385 = vxpose.xlu0.b32.cont [9/16] %v353_v19, 128 }
  0x3c   : > { %418 = vxpose.xlu1.b32.cont [10/16] %v370_v26, 128 }
  0x3d   : > { %386 = vxpose.xlu0.b32.cont [10/16] %v354_v27, 128 }
  0x40   : > { %419 = vxpose.xlu1.b32.cont [11/16] %v371_v32, 128 }
  0x41   : > { %387 = vxpose.xlu0.b32.cont [11/16] %v355_v34, 128 }
  0x44   : > { %420 = vxpose.xlu1.b32.cont [12/16] %v372_v40, 128 }
  0x45   : > { %388 = vxpose.xlu0.b32.cont [12/16] %v356_v42, 128 }
  0x48   : > { %421 = vxpose.xlu1.b32.cont [13/16] %v373_v50, 128 }
  0x49   : > { %389 = vxpose.xlu0.b32.cont [13/16] %v357_v51, 128 }
  0x4c   : > { %422 = vxpose.xlu1.b32.cont [14/16] %v374_v58, 128 }
  0x4d   : > { %390 = vxpose.xlu0.b32.cont [14/16] %v358_v59, 128 }
  0x50   : > { %423 = vxpose.xlu1.b32.cont [15/16] %v375_v62, 128 }
  0x51   : > { %391 = vxpose.xlu0.b32.cont [15/16] %v359_v63, 128 }
  0x54   : > { %424 = vxpose.xlu1.b32.end [16/16] %v376_v4, 128 }
  0x55   : > { %392 = vxpose.xlu0.b32.end [16/16] %v360_v5, 128 }
  0x98   : > { %v425_v0 = vpop.trf.xlu1 }
  0x99   : > { %v393_v1 = vpop.trf.xlu0  ;;  %442 = vst [vmem:[%s814_s26 + $0x8] sm:$0xff] %v425_v0 }
  0x9a   : > { %441 = vst [vmem:[%s814_s26] sm:$0xff] %v393_v1 }
  0x9c   : > { %v426_v6 = vpop.trf.xlu1 }
  0x9d   : > { %v394_v7 = vpop.trf.xlu0  ;;  %444 = vst [vmem:[%s814_s26 + $0x18] sm:$0xff] %v426_v6 }
  0x9e   : > { %443 = vst [vmem:[%s814_s26 + $0x10] sm:$0xff] %v394_v7 }
  0xa0   : > { %v427_v8 = vpop.trf.xlu1 }
  0xa1   : > { %v395_v9 = vpop.trf.xlu0  ;;  %446 = vst [vmem:[%s814_s26 + $0x28] sm:$0xff] %v427_v8 }
  0xa2   : > { %445 = vst [vmem:[%s814_s26 + $0x20] sm:$0xff] %v395_v9 }
  0xa4   : > { %v428_v10 = vpop.trf.xlu1 }
  0xa5   : > { %v396_v11 = vpop.trf.xlu0  ;;  %448 = vst [vmem:[%s814_s26 + $0x38] sm:$0xff] %v428_v10 }
  0xa6   : > { %447 = vst [vmem:[%s814_s26 + $0x30] sm:$0xff] %v396_v11 }
  0xa8   : > { %v429_v12 = vpop.trf.xlu1 }
  0xa9   : > { %v397_v13 = vpop.trf.xlu0  ;;  %450 = vst [vmem:[%s814_s26 + $0x48] sm:$0xff] %v429_v12 }
  0xaa   : > { %449 = vst [vmem:[%s814_s26 + $0x40] sm:$0xff] %v397_v13 }
  0xac   : > { %v430_v14 = vpop.trf.xlu1 }
  0xad   : > { %v398_v15 = vpop.trf.xlu0  ;;  %452 = vst [vmem:[%s814_s26 + $0x58] sm:$0xff] %v430_v14 }
  0xae   : > { %451 = vst [vmem:[%s814_s26 + $0x50] sm:$0xff] %v398_v15 }
  0xb0   : > { %v431_v16 = vpop.trf.xlu1 }
  0xb1   : > { %v399_v17 = vpop.trf.xlu0  ;;  %454 = vst [vmem:[%s814_s26 + $0x68] sm:$0xff] %v431_v16 }
  0xb2   : > { %453 = vst [vmem:[%s814_s26 + $0x60] sm:$0xff] %v399_v17 }
  0xb4   : > { %v432_v18 = vpop.trf.xlu1 }
  0xb5   : > { %v400_v19 = vpop.trf.xlu0  ;;  %456 = vst [vmem:[%s814_s26 + $0x78] sm:$0xff] %v432_v18 }
  0xb6   : > { %455 = vst [vmem:[%s814_s26 + $0x70] sm:$0xff] %v400_v19 }
  0xb8   : > { %v433_v20 = vpop.trf.xlu1 }
  0xb9   : > { %v401_v21 = vpop.trf.xlu0  ;;  %458 = vst [vmem:[%s814_s26 + $0x88] sm:$0xff] %v433_v20 }
  0xba   : > { %457 = vst [vmem:[%s814_s26 + $0x80] sm:$0xff] %v401_v21 }
  0xbc   : > { %v434_v22 = vpop.trf.xlu1 }
  0xbd   : > { %v402_v23 = vpop.trf.xlu0  ;;  %460 = vst [vmem:[%s814_s26 + $0x98] sm:$0xff] %v434_v22 }
  0xbe   : > { %459 = vst [vmem:[%s814_s26 + $0x90] sm:$0xff] %v402_v23 }
  0xc0   : > { %v435_v24 = vpop.trf.xlu1 }
  0xc1   : > { %v403_v25 = vpop.trf.xlu0  ;;  %462 = vst [vmem:[%s814_s26 + $0xa8] sm:$0xff] %v435_v24 }
  0xc2   : > { %461 = vst [vmem:[%s814_s26 + $0xa0] sm:$0xff] %v403_v25 }
  0xc4   : > { %v436_v26 = vpop.trf.xlu1 }
  0xc5   : > { %v404_v27 = vpop.trf.xlu0  ;;  %464 = vst [vmem:[%s814_s26 + $0xb8] sm:$0xff] %v436_v26 }
  0xc6   : > { %463 = vst [vmem:[%s814_s26 + $0xb0] sm:$0xff] %v404_v27 }
  0xc8   : > { %v437_v28 = vpop.trf.xlu1 }
  0xc9   : > { %v405_v29 = vpop.trf.xlu0  ;;  %466 = vst [vmem:[%s814_s26 + $0xc8] sm:$0xff] %v437_v28 }
  0xca   : > { %465 = vst [vmem:[%s814_s26 + $0xc0] sm:$0xff] %v405_v29 }
  0xcc   : > { %v438_v30 = vpop.trf.xlu1 }
  0xcd   : > { %v406_v31 = vpop.trf.xlu0  ;;  %468 = vst [vmem:[%s814_s26 + $0xd8] sm:$0xff] %v438_v30 }
  0xce   : > { %467 = vst [vmem:[%s814_s26 + $0xd0] sm:$0xff] %v406_v31 }
  0xd0   : > { %v439_v32 = vpop.trf.xlu1 }
  0xd1   : > { %v407_v33 = vpop.trf.xlu0  ;;  %470 = vst [vmem:[%s814_s26 + $0xe8] sm:$0xff] %v439_v32 }
  0xd2   : > { %469 = vst [vmem:[%s814_s26 + $0xe0] sm:$0xff] %v407_v33 }
  0xd4   : > { %v440_v34 = vpop.trf.xlu1 }
  0xd5   : > { %v408_v35 = vpop.trf.xlu0  ;;  %472 = vst [vmem:[%s814_s26 + $0xf8] sm:$0xff] %v440_v34 }
  0xd6   : > { %471 = vst [vmem:[%s814_s26 + $0xf0] sm:$0xff] %v408_v35 }
  0xd7 PF: > { %s13_s14 = sadd.s32 1, %s653_s14   ;;  %s861_s12 = smov %s649_s13 }
  0xd8   : > { %p10_p5 = scmp.ge.s32.totalorder %s13_s14, 4   ;;  %s862_s13 = smov %s864_s15 }
  0xda   :  { %12 = sbr.rel (!%p10_p5) target bundleno = 2 (0x2), region = 68 }

// kernel: conv_bn_relu.2
= control target key start
LH: loop header
LB: loop body
LE: loop exit
PB: predicated region body
PF: predicated region fallthrough
CT: control target
= control target key end

     0   :  { %s6268_s18 = smov 0   ;;  %s6270_s19 = smov 0   ;;  %s7347_s0 = inlined_call_operand.vmem [shape: f32[2,16,16,4], index: 0, kind: input, shape index: {}]   ;;  %s7348_s1 = inlined_call_operand.vmem [shape: f32[9,4,128], index: 1, kind: input, shape index: {}]   ;;  %s7349_s2 = inlined_call_operand.vmem [shape: f32[1,128], index: 2, kind: input, shape index: {}]   ;;  %s7350_s3 = inlined_call_operand.vmem [shape: f32[2,256,128], index: 3, kind: output, shape index: {0}]   ;;  %s7351_s4 = inlined_call_operand.vmem [shape: f32[2,1,128], index: 4, kind: output, shape index: {1}]   ;;  %s7352_s5 = inlined_call_operand.vmem [shape: f32[2,1,128], index: 5, kind: output, shape index: {2}]  }
   0x1   :  { %s6272_s20 = smov 0  }
   0x2 LB: > { %s28_s21 = sadd.s32 1, %s6231_s19  ;;  %p4867_p0 = scmp.ge.s32.totalorder %s6235_s20, 1  ;;  %s6235_s20 = sphi %s6272_s20, %s16_s20   ;;  %s6231_s19 = sphi %s6270_s19, %s7354_s19   ;;  %s6227_s18 = sphi %s6268_s18, %s7353_s18  }
   0x3   : > { %p30_p1 = scmp.ge.s32.totalorder %s28_s21, 2  ;;  %p227_p2 = scmp.lt.s32.totalorder %s6235_s20, 3 }
   0x5   : > { %s7356_s21 = smov (%p30_p1, %s28_s21), 0  ;;  %p228_p3 = pnand %p4867_p0, %p227_p2 }
   0x6   : > { %v6291_v0 = vld [vmem:[%s7348_s1 + $0x4] sm:$0xf] (!%p228_p3)  ;;  %vm1184_vm0 = vcmask (!%p228_p3), 1043456   ;;  %vm313_vm1 = vcmask (!%p228_p3), 31744   ;;  %vm316_vm2 = vcmask (!%p228_p3), 25600   ;;  %v6237_v1 = vmov (!%p228_p3), 0.0  }
   0x7   : > { %231 = sbr.rel (%p228_p3) target bundleno = 665 (0x299), region = 32  ;;  %5479 = vmatprep.subr.msk.mxu1 (!%p228_p3), %vm1184_vm0, %v6291_v0  ;;  %314 = vst.msk [vmem:[#allocation2] sm:$0xff] (!%p228_p3), %vm313_vm1, %v6237_v1  ;;  %315 = vst.msk [vmem:[#allocation2 + $0x8] sm:$0xff] (!%p228_p3), %vm313_vm1, %v6237_v1  ;;  %v5007_v2 = vld [vmem:[%s7348_s1 + $0x10] sm:$0xf] (!%p228_p3)  ;;  %p277_p4 = scmp.lt.s32.totalorder (!%p228_p3), %s6227_s18, 1 }
   0x8   : > { %318 = vst.msk [vmem:[#allocation2 + $0x18] sm:$0xff] (!%p228_p3), %vm313_vm1, %v6237_v1  ;;  %319 = vst.msk [vmem:[#allocation2 + $0x20] sm:$0xff] (!%p228_p3), %vm313_vm1, %v6237_v1  ;;  %v6356_v3 = vld [vmem:[%s7348_s1] sm:$0xf] (!%p228_p3)  ;;  %5480 = vmatpush3.msk.msra.mxu1 (!%p228_p3), %vm1184_vm0, %v6291_v0  ;;  %5679 = vmatprep.subr.msk.mxu0 (!%p228_p3), %vm1184_vm0, %v5007_v2  ;;  %v6364_v4 = vld [vmem:[%s7348_s1 + $0x14] sm:$0xf] (!%p228_p3) }
   0x9   : > { %321 = vst.msk [vmem:[#allocation2 + $0x30] sm:$0xff] (!%p228_p3), %vm313_vm1, %v6237_v1  ;;  %322 = vst.msk [vmem:[#allocation2 + $0x38] sm:$0xff] (!%p228_p3), %vm313_vm1, %v6237_v1  ;;  %5680 = vmatpush3.msk.msra.mxu0 (!%p228_p3), %vm1184_vm0, %v5007_v2  ;;  %5529 = vmatprep.subr.msk.mxu1 (!%p228_p3), %vm1184_vm0, %v6356_v3  ;;  %v6431_v32 = vld [vmem:[%s7348_s1 + $0x8] sm:$0xf] (!%p228_p3)  ;;  %v6476_v51 = vld [vmem:[%s7348_s1 + $0x18] sm:$0xf] (!%p228_p3) }
   0xa   : > { %324 = vst.msk [vmem:[#allocation2 + $0x48] sm:$0xff] (!%p228_p3), %vm313_vm1, %v6237_v1  ;;  %325 = vst.msk [vmem:[#allocation2 + $0x50] sm:$0xff] (!%p228_p3), %vm313_vm1, %v6237_v1  ;;  %5729 = vmatprep.subr.msk.mxu0 (!%p228_p3), %vm1184_vm0, %v6364_v4 }
   0xb   : > { %327 = vst.msk [vmem:[#allocation2 + $0x60] sm:$0xff] (!%p228_p3), %vm313_vm1, %v6237_v1  ;;  %328 = vst.msk [vmem:[#allocation2 + $0x68] sm:$0xff] (!%p228_p3), %vm313_vm1, %v6237_v1 }
   0xc   : > { %330 = vst.msk [vmem:[#allocation2 + $0x78] sm:$0xff] (!%p228_p3), %vm313_vm1, %v6237_v1  ;;  %331 = vst.msk [vmem:[#allocation2 + $0x80] sm:$0xff] (!%p228_p3), %vm313_vm1, %v6237_v1 }
   0xd   : > { %333 = vst.msk [vmem:[#allocation2 + $0x90] sm:$0xff] (!%p228_p3), %vm313_vm1, %v6237_v1  ;;  %334 = vst.msk [vmem:[#allocation2 + $0x98] sm:$0xff] (!%p228_p3), %vm313_vm1, %v6237_v1 }
   0xe   : > { %336 = vst.msk [vmem:[#allocation2 + $0xa8] sm:$0xff] %vm313_vm1, %v6237_v1  ;;  %337 = vst.msk [vmem:[#allocation2 + $0xb0] sm:$0xff] %vm313_vm1, %v6237_v1  ;;  %s7358_s18 = smov (!%p277_p4, %s6227_s18), 1  ;;  %v498_v8 = vld [vmem:[#allocation2 + $0x1] sm:$0xff] }
   0xf   : > { %339 = vst.msk [vmem:[#allocation2 + $0xc0] sm:$0xff] %vm313_vm1, %v6237_v1  ;;  %340 = vst.msk [vmem:[#allocation2 + $0xc8] sm:$0xff] %vm313_vm1, %v6237_v1  ;;  %s5180_s30 = sshll.u32 %s7358_s18, 8  ;;  %s302_s7 = scalar_lea.vmem %s7351_s4, %s7358_s18 }
  0x10   : > { %342 = vst.msk [vmem:[#allocation2 + $0xd8] sm:$0xff] %vm313_vm1, %v6237_v1  ;;  %343 = vst.msk [vmem:[#allocation2 + $0xe0] sm:$0xff] %vm313_vm1, %v6237_v1  ;;  %s6380_s8 = scalar_lea.vmem %s7347_s0, %s5180_s30  ;;  %s7100_s29 = scalar_lea.vmem %s7350_s3, %s5180_s30 }
  0x11   : > { %345 = vst.msk [vmem:[#allocation2 + $0xf0] sm:$0xff] %vm313_vm1, %v6237_v1  ;;  %346 = vst.msk [vmem:[#allocation2 + $0xf8] sm:$0xff] %vm313_vm1, %v6237_v1  ;;  %v369_v5 = vld [vmem:[%s6380_s8] sm:$0xff]  ;;  %v370_v6 = vld [vmem:[%s6380_s8 + $0x8] sm:$0xff]  ;;  %s308_s10 = scalar_lea.vmem %s7352_s5, %s7358_s18 }
  0x12   : > { %348 = vst.msk [vmem:[#allocation2 + $0x108] sm:$0xff] %vm313_vm1, %v6237_v1  ;;  %349 = vst.msk [vmem:[#allocation2 + $0x110] sm:$0xff] %vm313_vm1, %v6237_v1  ;;  %v371_v7 = vld [vmem:[%s6380_s8 + $0x10] sm:$0xff]  ;;  %v372_v10 = vld [vmem:[%s6380_s8 + $0x18] sm:$0xff] }
  0x13   : > { %351 = vst.msk [vmem:[#allocation2 + $0x120] sm:$0xff] %vm313_vm1, %v6237_v1  ;;  %352 = vst.msk [vmem:[#allocation2 + $0x128] sm:$0xff] %vm313_vm1, %v6237_v1  ;;  %v373_v11 = vld [vmem:[%s6380_s8 + $0x20] sm:$0xff]  ;;  %v374_v12 = vld [vmem:[%s6380_s8 + $0x28] sm:$0xff] }
  0x14   : > { %354 = vst.msk [vmem:[#allocation2 + $0x138] sm:$0xff] %vm313_vm1, %v6237_v1  ;;  %355 = vst.msk [vmem:[#allocation2 + $0x140] sm:$0xff] %vm313_vm1, %v6237_v1  ;;  %v375_v13 = vld [vmem:[%s6380_s8 + $0x30] sm:$0xff]  ;;  %v376_v14 = vld [vmem:[%s6380_s8 + $0x38] sm:$0xff] }
  0x15   : > { %357 = vst.msk [vmem:[#allocation2 + $0x150] sm:$0xff] %vm313_vm1, %v6237_v1  ;;  %358 = vst.msk [vmem:[#allocation2 + $0x158] sm:$0xff] %vm313_vm1, %v6237_v1  ;;  %v377_v15 = vld [vmem:[%s6380_s8 + $0x40] sm:$0xff]  ;;  %v378_v16 = vld [vmem:[%s6380_s8 + $0x48] sm:$0xff] }
  0x16   : > { %360 = vst.msk [vmem:[#allocation2 + $0x168] sm:$0xff] %vm313_vm1, %v6237_v1  ;;  %361 = vst.msk [vmem:[#allocation2 + $0x170] sm:$0xff] %vm313_vm1, %v6237_v1  ;;  %v379_v17 = vld [vmem:[%s6380_s8 + $0x50] sm:$0xff]  ;;  %v380_v18 = vld [vmem:[%s6380_s8 + $0x58] sm:$0xff] }
  0x17   : > { %363 = vst.msk [vmem:[#allocation2 + $0x180] sm:$0xff] %vm313_vm1, %v6237_v1  ;;  %364 = vst.msk [vmem:[#allocation2 + $0x188] sm:$0xff] %vm313_vm1, %v6237_v1  ;;  %v381_v19 = vld [vmem:[%s6380_s8 + $0x60] sm:$0xff]  ;;  %v382_v20 = vld [vmem:[%s6380_s8 + $0x68] sm:$0xff] }
  0x18   : > { %366 = vst.msk [vmem:[#allocation2 + $0x198] sm:$0xff] %vm313_vm1, %v6237_v1  ;;  %367 = vst.msk [vmem:[#allocation2 + $0x1a0] sm:$0xff] %vm313_vm1, %v6237_v1  ;;  %v383_v21 = vld [vmem:[%s6380_s8 + $0x70] sm:$0xff]  ;;  %v384_v22 = vld [vmem:[%s6380_s8 + $0x78] sm:$0xff] }
  0x19   : > { %317 = vst.msk [vmem:[#allocation2 + $0x10] sm:$0x3] %vm316_vm2, %v6237_v1  ;;  %320 = vst.msk [vmem:[#allocation2 + $0x28] sm:$0x3] %vm316_vm2, %v6237_v1  ;;  %v385_v23 = vld [vmem:[%s6380_s8 + $0x80] sm:$0xff]  ;;  %v386_v24 = vld [vmem:[%s6380_s8 + $0x88] sm:$0xff] }
  0x1a   : > { %323 = vst.msk [vmem:[#allocation2 + $0x40] sm:$0x3] %vm316_vm2, %v6237_v1  ;;  %326 = vst.msk [vmem:[#allocation2 + $0x58] sm:$0x3] %vm316_vm2, %v6237_v1  ;;  %v387_v25 = vld [vmem:[%s6380_s8 + $0x90] sm:$0xff]  ;;  %v388_v26 = vld [vmem:[%s6380_s8 + $0x98] sm:$0xff] }
  0x1b   : > { %329 = vst.msk [vmem:[#allocation2 + $0x70] sm:$0x3] %vm316_vm2, %v6237_v1  ;;  %332 = vst.msk [vmem:[#allocation2 + $0x88] sm:$0x3] %vm316_vm2, %v6237_v1  ;;  %v389_v27 = vld [vmem:[%s6380_s8 + $0xa0] sm:$0xff]  ;;  %v390_v28 = vld [vmem:[%s6380_s8 + $0xa8] sm:$0xff] }
  0x1c   : > { %335 = vst.msk [vmem:[#allocation2 + $0xa0] sm:$0x3] %vm316_vm2, %v6237_v1  ;;  %338 = vst.msk [vmem:[#allocation2 + $0xb8] sm:$0x3] %vm316_vm2, %v6237_v1 }
  0x1d   : > { %341 = vst.msk [vmem:[#allocation2 + $0xd0] sm:$0x3] %vm316_vm2, %v6237_v1  ;;  %344 = vst.msk [vmem:[#allocation2 + $0xe8] sm:$0x3] %vm316_vm2, %v6237_v1 }
  0x1e   : > { %347 = vst.msk [vmem:[#allocation2 + $0x100] sm:$0x3] %vm316_vm2, %v6237_v1  ;;  %350 = vst.msk [vmem:[#allocation2 + $0x118] sm:$0x3] %vm316_vm2, %v6237_v1 }
  0x1f   : > { %353 = vst.msk [vmem:[#allocation2 + $0x130] sm:$0x3] %vm316_vm2, %v6237_v1  ;;  %356 = vst.msk [vmem:[#allocation2 + $0x148] sm:$0x3] %vm316_vm2, %v6237_v1 }
  0x20   : > { %359 = vst.msk [vmem:[#allocation2 + $0x160] sm:$0x3] %vm316_vm2, %v6237_v1  ;;  %362 = vst.msk [vmem:[#allocation2 + $0x178] sm:$0x3] %vm316_vm2, %v6237_v1  ;;  %v499_v9 = vld [vmem:[#allocation2 + $0x9] sm:$0xff] }
  0x21   : > { %365 = vst.msk [vmem:[#allocation2 + $0x190] sm:$0x3] %vm316_vm2, %v6237_v1  ;;  %368 = vst.msk [vmem:[#allocation2 + $0x1a8] sm:$0x3] %vm316_vm2, %v6237_v1 }
  0x22   : > { %402 = vst.msk [vmem:[#allocation2 + $0x19] sm:$0xff] %vm313_vm1, %v369_v5  ;;  %403 = vst.msk [vmem:[#allocation2 + $0x21] sm:$0xff] %vm313_vm1, %v370_v6 }
  0x23   : > { %404 = vst.msk [vmem:[#allocation2 + $0x31] sm:$0xff] %vm313_vm1, %v371_v7  ;;  %531 = vst.msk [vmem:[#allocation3 + $0x100] sm:$0xff] %vm313_vm1, %v498_v8 }
  0x24   : > { %532 = vst.msk [vmem:[#allocation3 + $0x108] sm:$0xff] %vm313_vm1, %v499_v9  ;;  %405 = vst.msk [vmem:[#allocation2 + $0x39] sm:$0xff] %vm313_vm1, %v372_v10 }
  0x25   : > { %406 = vst.msk [vmem:[#allocation2 + $0x49] sm:$0xff] %vm313_vm1, %v373_v11  ;;  %407 = vst.msk [vmem:[#allocation2 + $0x51] sm:$0xff] %vm313_vm1, %v374_v12 }
  0x26   : > { %408 = vst.msk [vmem:[#allocation2 + $0x61] sm:$0xff] %vm313_vm1, %v375_v13  ;;  %409 = vst.msk [vmem:[#allocation2 + $0x69] sm:$0xff] %vm313_vm1, %v376_v14 }
  0x27   : > { %410 = vst.msk [vmem:[#allocation2 + $0x79] sm:$0xff] %vm313_vm1, %v377_v15  ;;  %411 = vst.msk [vmem:[#allocation2 + $0x81] sm:$0xff] %vm313_vm1, %v378_v16 }
  0x28   : > { %412 = vst.msk [vmem:[#allocation2 + $0x91] sm:$0xff] %vm313_vm1, %v379_v17  ;;  %413 = vst.msk [vmem:[#allocation2 + $0x99] sm:$0xff] %vm313_vm1, %v380_v18 }
  0x29   : > { %414 = vst.msk [vmem:[#allocation2 + $0xa9] sm:$0xff] %vm313_vm1, %v381_v19  ;;  %415 = vst.msk [vmem:[#allocation2 + $0xb1] sm:$0xff] %vm313_vm1, %v382_v20  ;;  %v500_v29 = vld [vmem:[#allocation2 + $0x19] sm:$0xff]  ;;  %v501_v30 = vld [vmem:[#allocation2 + $0x21] sm:$0xff] }
  0x2a   : > { %416 = vst.msk [vmem:[#allocation2 + $0xc1] sm:$0xff] %vm313_vm1, %v383_v21  ;;  %417 = vst.msk [vmem:[#allocation2 + $0xc9] sm:$0xff] %vm313_vm1, %v384_v22  ;;  %v502_v31 = vld [vmem:[#allocation2 + $0x31] sm:$0xff]  ;;  %v758_v49 = vld [vmem:[#allocation2 + $0x1a] sm:$0xff] }
  0x2b   : > { %418 = vst.msk [vmem:[#allocation2 + $0xd9] sm:$0xff] %vm313_vm1, %v385_v23  ;;  %419 = vst.msk [vmem:[#allocation2 + $0xe1] sm:$0xff] %vm313_vm1, %v386_v24  ;;  %v1053_v33 = vld [vmem:[#allocation3 + $0x100] sm:$0xff]  ;;  %v1054_v34 = vld [vmem:[#allocation3 + $0x108] sm:$0xff] }
  0x2c   : > { %420 = vst.msk [vmem:[#allocation2 + $0xf1] sm:$0xff] %vm313_vm1, %v387_v25  ;;  %421 = vst.msk [vmem:[#allocation2 + $0xf9] sm:$0xff] %vm313_vm1, %v388_v26  ;;  %v503_v35 = vld [vmem:[#allocation2 + $0x39] sm:$0xff]  ;;  %5481 = vmatprep.mubr.msk.f32.mxu1 %vm313_vm1, %v1053_v33  ;;  %v504_v36 = vld [vmem:[#allocation2 + $0x49] sm:$0xff] }
  0x2d   : > { %422 = vst.msk [vmem:[#allocation2 + $0x109] sm:$0xff] %vm313_vm1, %v389_v27  ;;  %423 = vst.msk [vmem:[#allocation2 + $0x111] sm:$0xff] %vm313_vm1, %v390_v28  ;;  %v505_v37 = vld [vmem:[#allocation2 + $0x51] sm:$0xff]  ;;  %v506_v38 = vld [vmem:[#allocation2 + $0x61] sm:$0xff]  ;;  %5482 = vmatmul.mubr.msk.f32.vlgmr.msra.gmra.mrb[0].mxu1 %vm313_vm1, %v1054_v34 }
  0x2e   : > { %533 = vst.msk [vmem:[#allocation3 + $0x110] sm:$0xff] %vm313_vm1, %v500_v29  ;;  %726 = vst.msk [vmem:[#allocation3 + $0x400] sm:$0xff] %vm313_vm1, %v500_v29  ;;  %v507_v39 = vld [vmem:[#allocation2 + $0x69] sm:$0xff]  ;;  %v508_v40 = vld [vmem:[#allocation2 + $0x79] sm:$0xff]  ;;  %5530 = vmatpush3.msk.msra.mxu1 %vm1184_vm0, %v6356_v3 }
  0x2f   : > { %534 = vst.msk [vmem:[#allocation3 + $0x118] sm:$0xff] %vm313_vm1, %v501_v30  ;;  %727 = vst.msk [vmem:[#allocation3 + $0x408] sm:$0xff] %vm313_vm1, %v501_v30  ;;  %v509_v41 = vld [vmem:[#allocation2 + $0x81] sm:$0xff]  ;;  %v510_v42 = vld [vmem:[#allocation2 + $0x91] sm:$0xff]  ;;  %5579 = vmatprep.subr.msk.mxu1 %vm1184_vm0, %v6431_v32 }
  0x30   : > { %535 = vst.msk [vmem:[#allocation3 + $0x120] sm:$0xff] %vm313_vm1, %v502_v31  ;;  %728 = vst.msk [vmem:[#allocation3 + $0x410] sm:$0xff] %vm313_vm1, %v502_v31  ;;  %v511_v43 = vld [vmem:[#allocation2 + $0x99] sm:$0xff]  ;;  %v512_v44 = vld [vmem:[#allocation2 + $0xa9] sm:$0xff] }
  0x31   : > { %536 = vst.msk [vmem:[#allocation3 + $0x128] sm:$0xff] %vm313_vm1, %v503_v35  ;;  %729 = vst.msk [vmem:[#allocation3 + $0x418] sm:$0xff] %vm313_vm1, %v503_v35  ;;  %v513_v45 = vld [vmem:[#allocation2 + $0xb1] sm:$0xff]  ;;  %v514_v46 = vld [vmem:[#allocation2 + $0xc1] sm:$0xff] }
  0x32   : > { %537 = vst.msk [vmem:[#allocation3 + $0x130] sm:$0xff] %vm313_vm1, %v504_v36  ;;  %730 = vst.msk [vmem:[#allocation3 + $0x420] sm:$0xff] %vm313_vm1, %v504_v36  ;;  %v515_v47 = vld [vmem:[#allocation2 + $0xc9] sm:$0xff]  ;;  %v516_v48 = vld [vmem:[#allocation2 + $0xd9] sm:$0xff] }
  0x33   : > { %538 = vst.msk [vmem:[#allocation3 + $0x138] sm:$0xff] %vm313_vm1, %v505_v37  ;;  %731 = vst.msk [vmem:[#allocation3 + $0x428] sm:$0xff] %vm313_vm1, %v505_v37  ;;  %v517_v50 = vld [vmem:[#allocation2 + $0xe1] sm:$0xff]  ;;  %v518_v53 = vld [vmem:[#allocation2 + $0xf1] sm:$0xff] }
  0x34   : > { %539 = vst.msk [vmem:[#allocation3 + $0x140] sm:$0xff] %vm313_vm1, %v506_v38  ;;  %732 = vst.msk [vmem:[#allocation3 + $0x430] sm:$0xff] %vm313_vm1, %v506_v38  ;;  %v759_v52 = vld [vmem:[#allocation2 + $0x22] sm:$0xff]  ;;  %v760_v54 = vld [vmem:[#allocation2 + $0x32] sm:$0xff] }
  0x35   : > { %540 = vst.msk [vmem:[#allocation3 + $0x148] sm:$0xff] %vm313_vm1, %v507_v39  ;;  %733 = vst.msk [vmem:[#allocation3 + $0x438] sm:$0xff] %vm313_vm1, %v507_v39  ;;  %v1055_v55 = vld [vmem:[#allocation3 + $0x110] sm:$0xff]  ;;  %v2520_v56 = vld [vmem:[#allocation3 + $0x400] sm:$0xff] }
  0x36   : > { %541 = vst.msk [vmem:[#allocation3 + $0x150] sm:$0xff] %vm313_vm1, %v508_v40  ;;  %734 = vst.msk [vmem:[#allocation3 + $0x440] sm:$0xff] %vm313_vm1, %v508_v40  ;;  %v1056_v57 = vld [vmem:[#allocation3 + $0x118] sm:$0xff]  ;;  %5484 = vmatprep.mubr.msk.f32.mxu1 %vm313_vm1, %v1055_v55  ;;  %5681 = vmatprep.mubr.msk.f32.mxu0 %vm313_vm1, %v2520_v56  ;;  %v2521_v58 = vld [vmem:[#allocation3 + $0x408] sm:$0xff] }
  0x37   : > { %542 = vst.msk [vmem:[#allocation3 + $0x158] sm:$0xff] %vm313_vm1, %v509_v41  ;;  %735 = vst.msk [vmem:[#allocation3 + $0x448] sm:$0xff] %vm313_vm1, %v509_v41  ;;  %v1057_v59 = vld [vmem:[#allocation3 + $0x120] sm:$0xff]  ;;  %v2522_v60 = vld [vmem:[#allocation3 + $0x410] sm:$0xff]  ;;  %5485 = vmatmul.mubr.msk.f32.gmra.mrb[2].mxu1 %vm313_vm1, %v1056_v57  ;;  %5682 = vmatmul.mubr.msk.f32.vlgmr.msra.gmra.mrb[0].mxu0 %vm313_vm1, %v2521_v58 }
  0x38   : > { %543 = vst.msk [vmem:[#allocation3 + $0x160] sm:$0xff] %vm313_vm1, %v510_v42  ;;  %736 = vst.msk [vmem:[#allocation3 + $0x450] sm:$0xff] %vm313_vm1, %v510_v42  ;;  %5730 = vmatpush3.msk.msra.mxu0 %vm1184_vm0, %v6364_v4  ;;  %5487 = vmatprep.mubr.msk.f32.mxu1 %vm313_vm1, %v1057_v59  ;;  %v1058_v61 = vld [vmem:[#allocation3 + $0x128] sm:$0xff]  ;;  %v2523_v62 = vld [vmem:[#allocation3 + $0x418] sm:$0xff] }
  0x39   : > { %544 = vst.msk [vmem:[#allocation3 + $0x168] sm:$0xff] %vm313_vm1, %v511_v43  ;;  %737 = vst.msk [vmem:[#allocation3 + $0x458] sm:$0xff] %vm313_vm1, %v511_v43  ;;  %5684 = vmatprep.mubr.msk.f32.mxu0 %vm313_vm1, %v2522_v60  ;;  %v1059_v63 = vld [vmem:[#allocation3 + $0x130] sm:$0xff]  ;;  %v2524_v0 = vld [vmem:[#allocation3 + $0x420] sm:$0xff]  ;;  %5779 = vmatprep.subr.msk.mxu0 %vm1184_vm0, %v6476_v51 }
  0x3a   : > { %545 = vst.msk [vmem:[#allocation3 + $0x170] sm:$0xff] %vm313_vm1, %v512_v44  ;;  %738 = vst.msk [vmem:[#allocation3 + $0x460] sm:$0xff] %vm313_vm1, %v512_v44  ;;  %v1060_v1 = vld [vmem:[#allocation3 + $0x138] sm:$0xff]  ;;  %v2525_v2 = vld [vmem:[#allocation3 + $0x428] sm:$0xff] }
  0x3b   : > { %546 = vst.msk [vmem:[#allocation3 + $0x178] sm:$0xff] %vm313_vm1, %v513_v45  ;;  %739 = vst.msk [vmem:[#allocation3 + $0x468] sm:$0xff] %vm313_vm1, %v513_v45  ;;  %5488 = vmatmul.mubr.msk.f32.gmra.mrb[4].mxu1 %vm313_vm1, %v1058_v61  ;;  %5685 = vmatmul.mubr.msk.f32.gmra.mrb[2].mxu0 %vm313_vm1, %v2523_v62  ;;  %v1061_v3 = vld [vmem:[#allocation3 + $0x140] sm:$0xff]  ;;  %v2526_v4 = vld [vmem:[#allocation3 + $0x430] sm:$0xff] }
  0x3c   : > { %547 = vst.msk [vmem:[#allocation3 + $0x180] sm:$0xff] %vm313_vm1, %v514_v46  ;;  %740 = vst.msk [vmem:[#allocation3 + $0x470] sm:$0xff] %vm313_vm1, %v514_v46  ;;  %5490 = vmatprep.mubr.msk.f32.mxu1 %vm313_vm1, %v1059_v63  ;;  %5687 = vmatprep.mubr.msk.f32.mxu0 %vm313_vm1, %v2524_v0  ;;  %v1062_v5 = vld [vmem:[#allocation3 + $0x148] sm:$0xff]  ;;  %v2527_v6 = vld [vmem:[#allocation3 + $0x438] sm:$0xff] }
  0x3d   : > { %548 = vst.msk [vmem:[#allocation3 + $0x188] sm:$0xff] %vm313_vm1, %v515_v47  ;;  %741 = vst.msk [vmem:[#allocation3 + $0x478] sm:$0xff] %vm313_vm1, %v515_v47  ;;  %v1063_v7 = vld [vmem:[#allocation3 + $0x150] sm:$0xff]  ;;  %v2528_v8 = vld [vmem:[#allocation3 + $0x440] sm:$0xff] }
  0x3e   : > { %549 = vst.msk [vmem:[#allocation3 + $0x190] sm:$0xff] %vm313_vm1, %v516_v48  ;;  %791 = vst.msk [vmem:[#allocation3 + $0x500] sm:$0xff] %vm313_vm1, %v758_v49  ;;  %v519_v9 = vld [vmem:[#allocation2 + $0xf9] sm:$0xff]  ;;  %v1064_v10 = vld [vmem:[#allocation3 + $0x158] sm:$0xff] }
  0x3f   : > { %550 = vst.msk [vmem:[#allocation3 + $0x198] sm:$0xff] %vm313_vm1, %v517_v50  ;;  %598 = vst.msk [vmem:[#allocation3 + $0x210] sm:$0xff] %vm313_vm1, %v758_v49  ;;  %5491 = vmatmul.mubr.msk.f32.gmra.mrb[6].mxu1 %vm313_vm1, %v1060_v1  ;;  %5688 = vmatmul.mubr.msk.f32.gmra.mrb[4].mxu0 %vm313_vm1, %v2525_v2  ;;  %v2529_v11 = vld [vmem:[#allocation3 + $0x448] sm:$0xff]  ;;  %v520_v13 = vld [vmem:[#allocation2 + $0x109] sm:$0xff] }
  0x40   : > { %792 = vst.msk [vmem:[#allocation3 + $0x508] sm:$0xff] %vm313_vm1, %v759_v52  ;;  %551 = vst.msk [vmem:[#allocation3 + $0x1a0] sm:$0xff] %vm313_vm1, %v518_v53  ;;  %5493 = vmatprep.mubr.msk.f32.mxu1 %vm313_vm1, %v1061_v3  ;;  %5690 = vmatprep.mubr.msk.f32.mxu0 %vm313_vm1, %v2526_v4  ;;  %v761_v12 = vld [vmem:[#allocation2 + $0x3a] sm:$0xff]  ;;  %v762_v14 = vld [vmem:[#allocation2 + $0x4a] sm:$0xff] }
  0x41   : > { %793 = vst.msk [vmem:[#allocation3 + $0x510] sm:$0xff] %vm313_vm1, %v760_v54  ;;  %599 = vst.msk [vmem:[#allocation3 + $0x218] sm:$0xff] %vm313_vm1, %v759_v52  ;;  %v1065_v15 = vld [vmem:[#allocation3 + $0x160] sm:$0xff]  ;;  %v2530_v16 = vld [vmem:[#allocation3 + $0x450] sm:$0xff] }
  0x42   : > { %600 = vst.msk [vmem:[#allocation3 + $0x220] sm:$0xff] %vm313_vm1, %v760_v54  ;;  %552 = vst.msk [vmem:[#allocation3 + $0x1a8] sm:$0xff] %vm313_vm1, %v519_v9  ;;  %v521_v17 = vld [vmem:[#allocation2 + $0x111] sm:$0xff]  ;;  %v764_v20 = vld [vmem:[#allocation2 + $0x62] sm:$0xff] }
  0x43   : > { %5494 = vmatmul.mubr.msk.f32.gmra.mrb[8].mxu1 %vm313_vm1, %v1062_v5  ;;  %5691 = vmatmul.mubr.msk.f32.gmra.mrb[6].mxu0 %vm313_vm1, %v2527_v6  ;;  %794 = vst.msk [vmem:[#allocation3 + $0x518] sm:$0xff] %vm313_vm1, %v761_v12  ;;  %553 = vst.msk [vmem:[#allocation3 + $0x1b0] sm:$0xff] %vm313_vm1, %v520_v13  ;;  %v763_v18 = vld [vmem:[#allocation2 + $0x52] sm:$0xff]  ;;  %v765_v22 = vld [vmem:[#allocation2 + $0x6a] sm:$0xff] }
  0x44   : > { %795 = vst.msk [vmem:[#allocation3 + $0x520] sm:$0xff] %vm313_vm1, %v762_v14  ;;  %v391_v19 = vld [vmem:[%s6380_s8 + $0xb0] sm:$0xff]  ;;  %601 = vst.msk [vmem:[#allocation3 + $0x228] sm:$0xff] %vm313_vm1, %v761_v12  ;;  %5496 = vmatprep.mubr.msk.f32.mxu1 %vm313_vm1, %v1063_v7  ;;  %5693 = vmatprep.mubr.msk.f32.mxu0 %vm313_vm1, %v2528_v8  ;;  %v392_v21 = vld [vmem:[%s6380_s8 + $0xb8] sm:$0xff] }
  0x45   : > { %602 = vst.msk [vmem:[#allocation3 + $0x230] sm:$0xff] %vm313_vm1, %v762_v14  ;;  %554 = vst.msk [vmem:[#allocation3 + $0x1b8] sm:$0xff] %vm313_vm1, %v521_v17  ;;  %v393_v23 = vld [vmem:[%s6380_s8 + $0xc0] sm:$0xff]  ;;  %v394_v25 = vld [vmem:[%s6380_s8 + $0xc8] sm:$0xff] }
  0x46   : > { %796 = vst.msk [vmem:[#allocation3 + $0x528] sm:$0xff] %vm313_vm1, %v763_v18  ;;  %424 = vst.msk [vmem:[#allocation2 + $0x121] sm:$0xff] %vm313_vm1, %v391_v19  ;;  %v766_v24 = vld [vmem:[#allocation2 + $0x7a] sm:$0xff]  ;;  %v2531_v27 = vld [vmem:[#allocation3 + $0x458] sm:$0xff] }
  0x47   : > { %603 = vst.msk [vmem:[#allocation3 + $0x238] sm:$0xff] %vm313_vm1, %v763_v18  ;;  %797 = vst.msk [vmem:[#allocation3 + $0x530] sm:$0xff] %vm313_vm1, %v764_v20  ;;  %v1066_v26 = vld [vmem:[#allocation3 + $0x168] sm:$0xff]  ;;  %v767_v28 = vld [vmem:[#allocation2 + $0x82] sm:$0xff]  ;;  %5497 = vmatmul.mubr.msk.f32.gmra.mrb[10].mxu1 %vm313_vm1, %v1064_v10  ;;  %5694 = vmatmul.mubr.msk.f32.gmra.mrb[8].mxu0 %vm313_vm1, %v2529_v11 }
  0x48   : > { %425 = vst.msk [vmem:[#allocation2 + $0x129] sm:$0xff] %vm313_vm1, %v392_v21  ;;  %798 = vst.msk [vmem:[#allocation3 + $0x538] sm:$0xff] %vm313_vm1, %v765_v22  ;;  %v395_v29 = vld [vmem:[%s6380_s8 + $0xd0] sm:$0xff]  ;;  %v1067_v31 = vld [vmem:[#allocation3 + $0x170] sm:$0xff]  ;;  %5499 = vmatprep.mubr.msk.f32.mxu1 %vm313_vm1, %v1065_v15  ;;  %5696 = vmatprep.mubr.msk.f32.mxu0 %vm313_vm1, %v2530_v16 }
  0x49   : > { %604 = vst.msk [vmem:[#allocation3 + $0x240] sm:$0xff] %vm313_vm1, %v764_v20  ;;  %605 = vst.msk [vmem:[#allocation3 + $0x248] sm:$0xff] %vm313_vm1, %v765_v22  ;;  %v768_v30 = vld [vmem:[#allocation2 + $0x92] sm:$0xff]  ;;  %v769_v34 = vld [vmem:[#allocation2 + $0x9a] sm:$0xff] }
  0x4a   : > { %426 = vst.msk [vmem:[#allocation2 + $0x139] sm:$0xff] %vm313_vm1, %v393_v23  ;;  %799 = vst.msk [vmem:[#allocation3 + $0x540] sm:$0xff] %vm313_vm1, %v766_v24  ;;  %v396_v33 = vld [vmem:[%s6380_s8 + $0xd8] sm:$0xff]  ;;  %v397_v35 = vld [vmem:[%s6380_s8 + $0xe0] sm:$0xff] }
  0x4b   : > { %427 = vst.msk [vmem:[#allocation2 + $0x141] sm:$0xff] %vm313_vm1, %v394_v25  ;;  %606 = vst.msk [vmem:[#allocation3 + $0x250] sm:$0xff] %vm313_vm1, %v766_v24  ;;  %v770_v36 = vld [vmem:[#allocation2 + $0xaa] sm:$0xff]  ;;  %v771_v38 = vld [vmem:[#allocation2 + $0xb2] sm:$0xff]  ;;  %5500 = vmatmul.mubr.msk.f32.gmra.mrb[12].mxu1 %vm313_vm1, %v1066_v26  ;;  %5697 = vmatmul.mubr.msk.f32.gmra.mrb[10].mxu0 %vm313_vm1, %v2531_v27 }
  0x4c   : > { %800 = vst.msk [vmem:[#allocation3 + $0x548] sm:$0xff] %vm313_vm1, %v767_v28  ;;  %428 = vst.msk [vmem:[#allocation2 + $0x151] sm:$0xff] %vm313_vm1, %v395_v29  ;;  %v398_v37 = vld [vmem:[%s6380_s8 + $0xe8] sm:$0xff]  ;;  %v2532_v39 = vld [vmem:[#allocation3 + $0x460] sm:$0xff]  ;;  %5502 = vmatprep.mubr.msk.f32.mxu1 %vm313_vm1, %v1067_v31 }
  0x4d   : > { %801 = vst.msk [vmem:[#allocation3 + $0x550] sm:$0xff] %vm313_vm1, %v768_v30  ;;  %607 = vst.msk [vmem:[#allocation3 + $0x258] sm:$0xff] %vm313_vm1, %v767_v28  ;;  %v434_v40 = vld [vmem:[#allocation2] sm:$0xff]  ;;  %v1068_v42 = vld [vmem:[#allocation3 + $0x178] sm:$0xff]  ;;  %5699 = vmatprep.mubr.msk.f32.mxu0 %vm313_vm1, %v2532_v39 }
  0x4e   : > { %608 = vst.msk [vmem:[#allocation3 + $0x260] sm:$0xff] %vm313_vm1, %v768_v30  ;;  %429 = vst.msk [vmem:[#allocation2 + $0x159] sm:$0xff] %vm313_vm1, %v396_v33  ;;  %v772_v41 = vld [vmem:[#allocation2 + $0xc2] sm:$0xff]  ;;  %v2533_v44 = vld [vmem:[#allocation3 + $0x468] sm:$0xff] }
  0x4f   : > { %802 = vst.msk [vmem:[#allocation3 + $0x558] sm:$0xff] %vm313_vm1, %v769_v34  ;;  %430 = vst.msk [vmem:[#allocation2 + $0x169] sm:$0xff] %vm313_vm1, %v397_v35  ;;  %v522_v43 = vld [vmem:[#allocation2 + $0x121] sm:$0xff]  ;;  %v1069_v45 = vld [vmem:[#allocation3 + $0x180] sm:$0xff]  ;;  %5503 = vmatmul.mubr.msk.f32.gmra.mrb[14].mxu1 %vm313_vm1, %v1068_v42  ;;  %5700 = vmatmul.mubr.msk.f32.gmra.mrb[12].mxu0 %vm313_vm1, %v2533_v44 }
  0x50   : > { %609 = vst.msk [vmem:[#allocation3 + $0x268] sm:$0xff] %vm313_vm1, %v769_v34  ;;  %803 = vst.msk [vmem:[#allocation3 + $0x560] sm:$0xff] %vm313_vm1, %v770_v36  ;;  %v523_v46 = vld [vmem:[#allocation2 + $0x129] sm:$0xff]  ;;  %v2534_v47 = vld [vmem:[#allocation3 + $0x470] sm:$0xff]  ;;  %5505 = vmatprep.mubr.msk.f32.mxu1 %vm313_vm1, %v1069_v45 }
  0x51   : > { %431 = vst.msk [vmem:[#allocation2 + $0x171] sm:$0xff] %vm313_vm1, %v398_v37  ;;  %804 = vst.msk [vmem:[#allocation3 + $0x568] sm:$0xff] %vm313_vm1, %v771_v38  ;;  %v524_v48 = vld [vmem:[#allocation2 + $0x139] sm:$0xff]  ;;  %5702 = vmatprep.mubr.msk.f32.mxu0 %vm313_vm1, %v2534_v47  ;;  %v2535_v55 = vld [vmem:[#allocation3 + $0x478] sm:$0xff] }
  0x52   : > { %610 = vst.msk [vmem:[#allocation3 + $0x270] sm:$0xff] %vm313_vm1, %v770_v36  ;;  %611 = vst.msk [vmem:[#allocation3 + $0x278] sm:$0xff] %vm313_vm1, %v771_v38  ;;  %v525_v49 = vld [vmem:[#allocation2 + $0x141] sm:$0xff]  ;;  %v1070_v54 = vld [vmem:[#allocation3 + $0x188] sm:$0xff] }
  0x53   : > { %466 = vst.msk [vmem:[#allocation3] sm:$0xff] %vm313_vm1, %v434_v40  ;;  %805 = vst.msk [vmem:[#allocation3 + $0x570] sm:$0xff] %vm313_vm1, %v772_v41  ;;  %v526_v50 = vld [vmem:[#allocation2 + $0x151] sm:$0xff]  ;;  %v1071_v57 = vld [vmem:[#allocation3 + $0x190] sm:$0xff]  ;;  %5506 = vmatmul.mubr.msk.f32.gmra.mrb[16].mxu1 %vm313_vm1, %v1070_v54  ;;  %5703 = vmatmul.mubr.msk.f32.gmra.mrb[14].mxu0 %vm313_vm1, %v2535_v55 }
  0x54   : > { %612 = vst.msk [vmem:[#allocation3 + $0x280] sm:$0xff] %vm313_vm1, %v772_v41  ;;  %555 = vst.msk [vmem:[#allocation3 + $0x1c0] sm:$0xff] %vm313_vm1, %v522_v43  ;;  %v2911_v58 = vld [vmem:[#allocation3 + $0x500] sm:$0xff]  ;;  %v435_v59 = vld [vmem:[#allocation2 + $0x8] sm:$0xff]  ;;  %5508 = vmatprep.mubr.msk.f32.mxu1 %vm313_vm1, %v1071_v57 }
  0x55   : > { %556 = vst.msk [vmem:[#allocation3 + $0x1c8] sm:$0xff] %vm313_vm1, %v523_v46  ;;  %557 = vst.msk [vmem:[#allocation3 + $0x1d0] sm:$0xff] %vm313_vm1, %v524_v48  ;;  %v527_v52 = vld [vmem:[#allocation2 + $0x159] sm:$0xff]  ;;  %v773_v60 = vld [vmem:[#allocation2 + $0xca] sm:$0xff]  ;;  %5731 = vmatprep.mubr.msk.f32.mxu0 %vm313_vm1, %v2911_v58 }
  0x56   : > { %558 = vst.msk [vmem:[#allocation3 + $0x1d8] sm:$0xff] %vm313_vm1, %v525_v49  ;;  %559 = vst.msk [vmem:[#allocation3 + $0x1e0] sm:$0xff] %vm313_vm1, %v526_v50  ;;  %v528_v53 = vld [vmem:[#allocation2 + $0x169] sm:$0xff]  ;;  %v436_v61 = vld [vmem:[#allocation2 + $0x18] sm:$0xff] }
  0x57   : > { %560 = vst.msk [vmem:[#allocation3 + $0x1e8] sm:$0xff] %vm313_vm1, %v527_v52  ;;  %561 = vst.msk [vmem:[#allocation3 + $0x1f0] sm:$0xff] %vm313_vm1, %v528_v53  ;;  %v774_v62 = vld [vmem:[#allocation2 + $0xda] sm:$0xff]  ;;  %v1072_v63 = vld [vmem:[#allocation3 + $0x198] sm:$0xff] }
  0x58   : > { %v529_v56 = vld [vmem:[#allocation2 + $0x171] sm:$0xff]  ;;  %467 = vst.msk [vmem:[#allocation3 + $0x8] sm:$0xff] %vm313_vm1, %v435_v59  ;;  %806 = vst.msk [vmem:[#allocation3 + $0x578] sm:$0xff] %vm313_vm1, %v773_v60  ;;  %v437_v0 = vld [vmem:[#allocation2 + $0x20] sm:$0xff]  ;;  %5509 = vmatmul.mubr.msk.f32.gmra.mrb[18].mxu1 %vm313_vm1, %v1072_v63 }
  0x59   : > { %562 = vst.msk [vmem:[#allocation3 + $0x1f8] sm:$0xff] %vm313_vm1, %v529_v56  ;;  %468 = vst.msk [vmem:[#allocation3 + $0x10] sm:$0xff] %vm313_vm1, %v436_v61  ;;  %v775_v1 = vld [vmem:[#allocation2 + $0xe2] sm:$0xff]  ;;  %v2912_v2 = vld [vmem:[#allocation3 + $0x508] sm:$0xff] }
  0x5a   : > { %807 = vst.msk [vmem:[#allocation3 + $0x580] sm:$0xff] %vm313_vm1, %v774_v62  ;;  %613 = vst.msk [vmem:[#allocation3 + $0x288] sm:$0xff] %vm313_vm1, %v773_v60  ;;  %v438_v3 = vld [vmem:[#allocation2 + $0x30] sm:$0xff]  ;;  %v439_v6 = vld [vmem:[#allocation2 + $0x38] sm:$0xff]  ;;  %5732 = vmatmul.mubr.msk.f32.vlgmr.msra.gmra.mrb[0].mxu0 %vm313_vm1, %v2912_v2 }
  0x5b   : > { %614 = vst.msk [vmem:[#allocation3 + $0x290] sm:$0xff] %vm313_vm1, %v774_v62  ;;  %661 = vst.msk [vmem:[#allocation3 + $0x300] sm:$0xff] %vm313_vm1, %v436_v61  ;;  %v776_v4 = vld [vmem:[#allocation2 + $0xf2] sm:$0xff]  ;;  %v6592_v7 = vld [vmem:[%s7348_s1 + $0x1c] sm:$0xf]  ;;  %5780 = vmatpush3.msk.msra.mxu0 %vm1184_vm0, %v6476_v51 }
  0x5c   : > { %469 = vst.msk [vmem:[#allocation3 + $0x18] sm:$0xff] %vm313_vm1, %v437_v0  ;;  %808 = vst.msk [vmem:[#allocation3 + $0x588] sm:$0xff] %vm313_vm1, %v775_v1  ;;  %v1073_v5 = vld [vmem:[#allocation3 + $0x1a0] sm:$0xff]  ;;  %v2913_v8 = vld [vmem:[#allocation3 + $0x510] sm:$0xff]  ;;  %5829 = vmatprep.subr.msk.mxu0 %vm1184_vm0, %v6592_v7 }
  0x5d   : > { %615 = vst.msk [vmem:[#allocation3 + $0x298] sm:$0xff] %vm313_vm1, %v775_v1  ;;  %662 = vst.msk [vmem:[#allocation3 + $0x308] sm:$0xff] %vm313_vm1, %v437_v0  ;;  %v777_v9 = vld [vmem:[#allocation2 + $0xfa] sm:$0xff]  ;;  %v440_v10 = vld [vmem:[#allocation2 + $0x48] sm:$0xff]  ;;  %5511 = vmatprep.mubr.msk.f32.mxu1 %vm313_vm1, %v1073_v5  ;;  %5734 = vmatprep.mubr.msk.f32.mxu0 %vm313_vm1, %v2913_v8 }
  0x5e   : > { %470 = vst.msk [vmem:[#allocation3 + $0x20] sm:$0xff] %vm313_vm1, %v438_v3  ;;  %809 = vst.msk [vmem:[#allocation3 + $0x590] sm:$0xff] %vm313_vm1, %v776_v4  ;;  %v1074_v11 = vld [vmem:[#allocation3 + $0x1a8] sm:$0xff]  ;;  %v2914_v12 = vld [vmem:[#allocation3 + $0x518] sm:$0xff] }
  0x5f   : > { %857 = vst.msk [vmem:[#allocation3 + $0x600] sm:$0xff] %vm313_vm1, %v438_v3  ;;  %616 = vst.msk [vmem:[#allocation3 + $0x2a0] sm:$0xff] %vm313_vm1, %v776_v4  ;;  %v778_v13 = vld [vmem:[#allocation2 + $0x10a] sm:$0xff]  ;;  %v1075_v14 = vld [vmem:[#allocation3 + $0x1b0] sm:$0xff]  ;;  %5512 = vmatmul.mubr.msk.f32.gmra.mrb[20].mxu1 %vm313_vm1, %v1074_v11  ;;  %5735 = vmatmul.mubr.msk.f32.gmra.mrb[2].mxu0 %vm313_vm1, %v2914_v12 }
  0x60   : > { %663 = vst.msk [vmem:[#allocation3 + $0x310] sm:$0xff] %vm313_vm1, %v438_v3  ;;  %471 = vst.msk [vmem:[#allocation3 + $0x28] sm:$0xff] %vm313_vm1, %v439_v6  ;;  %v441_v15 = vld [vmem:[#allocation2 + $0x50] sm:$0xff]  ;;  %v442_v18 = vld [vmem:[#allocation2 + $0x60] sm:$0xff]  ;;  %5514 = vmatprep.mubr.msk.f32.mxu1 %vm313_vm1, %v1075_v14 }
  0x61   : > { %858 = vst.msk [vmem:[#allocation3 + $0x608] sm:$0xff] %vm313_vm1, %v439_v6  ;;  %664 = vst.msk [vmem:[#allocation3 + $0x318] sm:$0xff] %vm313_vm1, %v439_v6  ;;  %v779_v16 = vld [vmem:[#allocation2 + $0x112] sm:$0xff]  ;;  %v780_v19 = vld [vmem:[#allocation2 + $0x122] sm:$0xff] }
  0x62   : > { %810 = vst.msk [vmem:[#allocation3 + $0x598] sm:$0xff] %vm313_vm1, %v777_v9  ;;  %472 = vst.msk [vmem:[#allocation3 + $0x30] sm:$0xff] %vm313_vm1, %v440_v10  ;;  %v2915_v17 = vld [vmem:[#allocation3 + $0x520] sm:$0xff]  ;;  %v1076_v51 = vld [vmem:[#allocation3 + $0x1b8] sm:$0xff] }
  0x63   : > { %859 = vst.msk [vmem:[#allocation3 + $0x610] sm:$0xff] %vm313_vm1, %v440_v10  ;;  %617 = vst.msk [vmem:[#allocation3 + $0x2a8] sm:$0xff] %vm313_vm1, %v777_v9  ;;  %v443_v20 = vld [vmem:[#allocation2 + $0x68] sm:$0xff]  ;;  %5737 = vmatprep.mubr.msk.f32.mxu0 %vm313_vm1, %v2915_v17  ;;  %v2916_v21 = vld [vmem:[#allocation3 + $0x528] sm:$0xff]  ;;  %5515 = vmatmul.mubr.msk.f32.gmra.mrb[22].mxu1 %vm313_vm1, %v1076_v51 }
  0x64   : > { %665 = vst.msk [vmem:[#allocation3 + $0x320] sm:$0xff] %vm313_vm1, %v440_v10  ;;  %811 = vst.msk [vmem:[#allocation3 + $0x5a0] sm:$0xff] %vm313_vm1, %v778_v13  ;;  %v2917_v22 = vld [vmem:[#allocation3 + $0x530] sm:$0xff]  ;;  %v781_v23 = vld [vmem:[#allocation2 + $0x12a] sm:$0xff]  ;;  %5738 = vmatmul.mubr.msk.f32.gmra.mrb[4].mxu0 %vm313_vm1, %v2916_v21 }
  0x65   : > { %618 = vst.msk [vmem:[#allocation3 + $0x2b0] sm:$0xff] %vm313_vm1, %v778_v13  ;;  %473 = vst.msk [vmem:[#allocation3 + $0x38] sm:$0xff] %vm313_vm1, %v441_v15  ;;  %v1077_v24 = vld [vmem:[#allocation3 + $0x1c0] sm:$0xff]  ;;  %v444_v25 = vld [vmem:[#allocation2 + $0x78] sm:$0xff]  ;;  %5740 = vmatprep.mubr.msk.f32.mxu0 %vm313_vm1, %v2917_v22 }
  0x66   : > { %812 = vst.msk [vmem:[#allocation3 + $0x5a8] sm:$0xff] %vm313_vm1, %v779_v16  ;;  %860 = vst.msk [vmem:[#allocation3 + $0x618] sm:$0xff] %vm313_vm1, %v441_v15  ;;  %v782_v26 = vld [vmem:[#allocation2 + $0x13a] sm:$0xff]  ;;  %v783_v28 = vld [vmem:[#allocation2 + $0x142] sm:$0xff]  ;;  %5517 = vmatprep.mubr.msk.f32.mxu1 %vm313_vm1, %v1077_v24 }
  0x67   : > { %619 = vst.msk [vmem:[#allocation3 + $0x2b8] sm:$0xff] %vm313_vm1, %v779_v16  ;;  %666 = vst.msk [vmem:[#allocation3 + $0x328] sm:$0xff] %vm313_vm1, %v441_v15  ;;  %v445_v27 = vld [vmem:[#allocation2 + $0x80] sm:$0xff]  ;;  %v446_v29 = vld [vmem:[#allocation2 + $0x90] sm:$0xff] }
  0x68   : > { %474 = vst.msk [vmem:[#allocation3 + $0x40] sm:$0xff] %vm313_vm1, %v442_v18  ;;  %813 = vst.msk [vmem:[#allocation3 + $0x5b0] sm:$0xff] %vm313_vm1, %v780_v19  ;;  %v1078_v30 = vld [vmem:[#allocation3 + $0x1c8] sm:$0xff]  ;;  %v2918_v31 = vld [vmem:[#allocation3 + $0x538] sm:$0xff] }
  0x69   : > { %861 = vst.msk [vmem:[#allocation3 + $0x620] sm:$0xff] %vm313_vm1, %v442_v18  ;;  %620 = vst.msk [vmem:[#allocation3 + $0x2c0] sm:$0xff] %vm313_vm1, %v780_v19  ;;  %v784_v33 = vld [vmem:[#allocation2 + $0x152] sm:$0xff]  ;;  %v1079_v34 = vld [vmem:[#allocation3 + $0x1d0] sm:$0xff]  ;;  %5518 = vmatmul.mubr.msk.f32.gmra.mrb[24].mxu1 %vm313_vm1, %v1078_v30  ;;  %5741 = vmatmul.mubr.msk.f32.gmra.mrb[6].mxu0 %vm313_vm1, %v2918_v31 }
  0x6a   : > { %667 = vst.msk [vmem:[#allocation3 + $0x330] sm:$0xff] %vm313_vm1, %v442_v18  ;;  %475 = vst.msk [vmem:[#allocation3 + $0x48] sm:$0xff] %vm313_vm1, %v443_v20  ;;  %v2919_v35 = vld [vmem:[#allocation3 + $0x540] sm:$0xff]  ;;  %v447_v36 = vld [vmem:[#allocation2 + $0x98] sm:$0xff]  ;;  %5520 = vmatprep.mubr.msk.f32.mxu1 %vm313_vm1, %v1079_v34 }
  0x6b   : > { %862 = vst.msk [vmem:[#allocation3 + $0x628] sm:$0xff] %vm313_vm1, %v443_v20  ;;  %668 = vst.msk [vmem:[#allocation3 + $0x338] sm:$0xff] %vm313_vm1, %v443_v20  ;;  %v785_v37 = vld [vmem:[#allocation2 + $0x15a] sm:$0xff]  ;;  %v448_v38 = vld [vmem:[#allocation2 + $0xa8] sm:$0xff]  ;;  %5743 = vmatprep.mubr.msk.f32.mxu0 %vm313_vm1, %v2919_v35 }
  0x6c   : > { %814 = vst.msk [vmem:[#allocation3 + $0x5b8] sm:$0xff] %vm313_vm1, %v781_v23  ;;  %621 = vst.msk [vmem:[#allocation3 + $0x2c8] sm:$0xff] %vm313_vm1, %v781_v23  ;;  %v786_v39 = vld [vmem:[#allocation2 + $0x16a] sm:$0xff]  ;;  %v2920_v40 = vld [vmem:[#allocation3 + $0x548] sm:$0xff] }
  0x6d   : > { %476 = vst.msk [vmem:[#allocation3 + $0x50] sm:$0xff] %vm313_vm1, %v444_v25  ;;  %815 = vst.msk [vmem:[#allocation3 + $0x5c0] sm:$0xff] %vm313_vm1, %v782_v26  ;;  %v449_v41 = vld [vmem:[#allocation2 + $0xb0] sm:$0xff]  ;;  %v1080_v43 = vld [vmem:[#allocation3 + $0x1d8] sm:$0xff]  ;;  %5744 = vmatmul.mubr.msk.f32.gmra.mrb[8].mxu0 %vm313_vm1, %v2920_v40 }
  0x6e   : > { %863 = vst.msk [vmem:[#allocation3 + $0x630] sm:$0xff] %vm313_vm1, %v444_v25  ;;  %622 = vst.msk [vmem:[#allocation3 + $0x2d0] sm:$0xff] %vm313_vm1, %v782_v26  ;;  %v787_v42 = vld [vmem:[#allocation2 + $0x172] sm:$0xff]  ;;  %v450_v44 = vld [vmem:[#allocation2 + $0xc0] sm:$0xff]  ;;  %5521 = vmatmul.mubr.msk.f32.gmra.mrb[26].mxu1 %vm313_vm1, %v1080_v43 }
  0x6f   : > { %669 = vst.msk [vmem:[#allocation3 + $0x340] sm:$0xff] %vm313_vm1, %v444_v25  ;;  %477 = vst.msk [vmem:[#allocation3 + $0x58] sm:$0xff] %vm313_vm1, %v445_v27  ;;  %v399_v45 = vld [vmem:[%s6380_s8 + $0xf0] sm:$0xff]  ;;  %v2921_v47 = vld [vmem:[#allocation3 + $0x550] sm:$0xff] }
  0x70   : > { %864 = vst.msk [vmem:[#allocation3 + $0x638] sm:$0xff] %vm313_vm1, %v445_v27  ;;  %670 = vst.msk [vmem:[#allocation3 + $0x348] sm:$0xff] %vm313_vm1, %v445_v27  ;;  %v1081_v46 = vld [vmem:[#allocation3 + $0x1e0] sm:$0xff]  ;;  %v400_v48 = vld [vmem:[%s6380_s8 + $0xf8] sm:$0xff]  ;;  %5746 = vmatprep.mubr.msk.f32.mxu0 %vm313_vm1, %v2921_v47 }
  0x71   : > { %816 = vst.msk [vmem:[#allocation3 + $0x5c8] sm:$0xff] %vm313_vm1, %v783_v28  ;;  %478 = vst.msk [vmem:[#allocation3 + $0x60] sm:$0xff] %vm313_vm1, %v446_v29  ;;  %v451_v49 = vld [vmem:[#allocation2 + $0xc8] sm:$0xff]  ;;  %v452_v50 = vld [vmem:[#allocation2 + $0xd8] sm:$0xff]  ;;  %5523 = vmatprep.mubr.msk.f32.mxu1 %vm313_vm1, %v1081_v46 }
  0x72   : > { %865 = vst.msk [vmem:[#allocation3 + $0x640] sm:$0xff] %vm313_vm1, %v446_v29  ;;  %623 = vst.msk [vmem:[#allocation3 + $0x2d8] sm:$0xff] %vm313_vm1, %v783_v28  ;;  %v1082_v52 = vld [vmem:[#allocation3 + $0x1e8] sm:$0xff]  ;;  %v2922_v53 = vld [vmem:[#allocation3 + $0x558] sm:$0xff] }
  0x73   : > { %671 = vst.msk [vmem:[#allocation3 + $0x350] sm:$0xff] %vm313_vm1, %v446_v29  ;;  %817 = vst.msk [vmem:[#allocation3 + $0x5d0] sm:$0xff] %vm313_vm1, %v784_v33  ;;  %v453_v54 = vld [vmem:[#allocation2 + $0xe0] sm:$0xff]  ;;  %v2923_v56 = vld [vmem:[#allocation3 + $0x560] sm:$0xff]  ;;  %5524 = vmatmul.mubr.msk.f32.gmra.mrb[28].mxu1 %vm313_vm1, %v1082_v52  ;;  %5747 = vmatmul.mubr.msk.f32.gmra.mrb[10].mxu0 %vm313_vm1, %v2922_v53 }
  0x74   : > { %624 = vst.msk [vmem:[#allocation3 + $0x2e0] sm:$0xff] %vm313_vm1, %v784_v33  ;;  %479 = vst.msk [vmem:[#allocation3 + $0x68] sm:$0xff] %vm313_vm1, %v447_v36  ;;  %v1083_v55 = vld [vmem:[#allocation3 + $0x1f0] sm:$0xff]  ;;  %v454_v57 = vld [vmem:[#allocation2 + $0xf0] sm:$0xff]  ;;  %5749 = vmatprep.mubr.msk.f32.mxu0 %vm313_vm1, %v2923_v56 }
  0x75   : > { %866 = vst.msk [vmem:[#allocation3 + $0x648] sm:$0xff] %vm313_vm1, %v447_v36  ;;  %672 = vst.msk [vmem:[#allocation3 + $0x358] sm:$0xff] %vm313_vm1, %v447_v36  ;;  %v2924_v58 = vld [vmem:[#allocation3 + $0x568] sm:$0xff]  ;;  %5526 = vmatprep.mubr.msk.f32.mxu1 %vm313_vm1, %v1083_v55  ;;  %v1084_v60 = vld [vmem:[#allocation3 + $0x1f8] sm:$0xff] }
  0x76   : > { %818 = vst.msk [vmem:[#allocation3 + $0x5d8] sm:$0xff] %vm313_vm1, %v785_v37  ;;  %480 = vst.msk [vmem:[#allocation3 + $0x70] sm:$0xff] %vm313_vm1, %v448_v38  ;;  %v455_v59 = vld [vmem:[#allocation2 + $0xf8] sm:$0xff]  ;;  %v1019_v61 = vld [vmem:[#allocation3] sm:$0xff] }
  0x77   : > { %819 = vst.msk [vmem:[#allocation3 + $0x5e0] sm:$0xff] %vm313_vm1, %v786_v39  ;;  %867 = vst.msk [vmem:[#allocation3 + $0x650] sm:$0xff] %vm313_vm1, %v448_v38  ;;  %v456_v62 = vld [vmem:[#allocation2 + $0x108] sm:$0xff]  ;;  %v2925_v63 = vld [vmem:[#allocation3 + $0x570] sm:$0xff]  ;;  %5527 = vmatmul.mubr.msk.f32.gmra.mrb[30].mxu1 %vm313_vm1, %v1084_v60  ;;  %5750 = vmatmul.mubr.msk.f32.gmra.mrb[12].mxu0 %vm313_vm1, %v2924_v58 }
  0x78   : > { %625 = vst.msk [vmem:[#allocation3 + $0x2e8] sm:$0xff] %vm313_vm1, %v785_v37  ;;  %626 = vst.msk [vmem:[#allocation3 + $0x2f0] sm:$0xff] %vm313_vm1, %v786_v39  ;;  %v457_v2 = vld [vmem:[#allocation2 + $0x110] sm:$0xff]  ;;  %v458_v3 = vld [vmem:[#allocation2 + $0x120] sm:$0xff]  ;;  %5531 = vmatprep.mubr.msk.f32.mxu1 %vm313_vm1, %v1019_v61  ;;  %5752 = vmatprep.mubr.msk.f32.mxu0 %vm313_vm1, %v2925_v63 }
  0x79   : > { %673 = vst.msk [vmem:[#allocation3 + $0x360] sm:$0xff] %vm313_vm1, %v448_v38  ;;  %481 = vst.msk [vmem:[#allocation3 + $0x78] sm:$0xff] %vm313_vm1, %v449_v41  ;;  %v1020_v4 = vld [vmem:[#allocation3 + $0x8] sm:$0xff]  ;;  %v2926_v5 = vld [vmem:[#allocation3 + $0x578] sm:$0xff] }
  0x7a   : > { %820 = vst.msk [vmem:[#allocation3 + $0x5e8] sm:$0xff] %vm313_vm1, %v787_v42  ;;  %868 = vst.msk [vmem:[#allocation3 + $0x658] sm:$0xff] %vm313_vm1, %v449_v41  ;;  %v459_v6 = vld [vmem:[#allocation2 + $0x128] sm:$0xff]  ;;  %v1021_v8 = vld [vmem:[#allocation3 + $0x10] sm:$0xff] }
  0x7b   : > { %627 = vst.msk [vmem:[#allocation3 + $0x2f8] sm:$0xff] %vm313_vm1, %v787_v42  ;;  %674 = vst.msk [vmem:[#allocation3 + $0x368] sm:$0xff] %vm313_vm1, %v449_v41  ;;  %v2927_v9 = vld [vmem:[#allocation3 + $0x580] sm:$0xff]  ;;  %v460_v10 = vld [vmem:[#allocation2 + $0x138] sm:$0xff]  ;;  %5532 = vmatmul.mubr.msk.f32.vlgmr.msra.gmra.mrb[0].mxu1 %vm313_vm1, %v1020_v4  ;;  %5753 = vmatmul.mubr.msk.f32.gmra.mrb[14].mxu0 %vm313_vm1, %v2926_v5 }
  0x7c   : > { %482 = vst.msk [vmem:[#allocation3 + $0x80] sm:$0xff] %vm313_vm1, %v450_v44  ;;  %432 = vst.msk [vmem:[#allocation2 + $0x181] sm:$0xff] %vm313_vm1, %v399_v45  ;;  %v461_v11 = vld [vmem:[#allocation2 + $0x140] sm:$0xff]  ;;  %v462_v12 = vld [vmem:[#allocation2 + $0x150] sm:$0xff]  ;;  %5534 = vmatprep.mubr.msk.f32.mxu1 %vm313_vm1, %v1021_v8  ;;  %5755 = vmatprep.mubr.msk.f32.mxu0 %vm313_vm1, %v2927_v9 }
  0x7d   : > { %869 = vst.msk [vmem:[#allocation3 + $0x660] sm:$0xff] %vm313_vm1, %v450_v44  ;;  %675 = vst.msk [vmem:[#allocation3 + $0x370] sm:$0xff] %vm313_vm1, %v450_v44  ;;  %v463_v13 = vld [vmem:[#allocation2 + $0x158] sm:$0xff]  ;;  %v1022_v14 = vld [vmem:[#allocation3 + $0x18] sm:$0xff]  ;;  %5580 = vmatpush3.msk.msra.mxu1 %vm1184_vm0, %v6431_v32 }
  0x7e   : > { %433 = vst.msk [vmem:[#allocation2 + $0x189] sm:$0xff] %vm313_vm1, %v400_v48  ;;  %483 = vst.msk [vmem:[#allocation3 + $0x88] sm:$0xff] %vm313_vm1, %v451_v49  ;;  %v2928_v15 = vld [vmem:[#allocation3 + $0x588] sm:$0xff]  ;;  %v464_v16 = vld [vmem:[#allocation2 + $0x168] sm:$0xff] }
  0x7f   : > { %484 = vst.msk [vmem:[#allocation3 + $0x90] sm:$0xff] %vm313_vm1, %v452_v50  ;;  %870 = vst.msk [vmem:[#allocation3 + $0x668] sm:$0xff] %vm313_vm1, %v451_v49  ;;  %v1023_v17 = vld [vmem:[#allocation3 + $0x20] sm:$0xff]  ;;  %v2929_v18 = vld [vmem:[#allocation3 + $0x590] sm:$0xff]  ;;  %5535 = vmatmul.mubr.msk.f32.gmra.mrb[2].mxu1 %vm313_vm1, %v1022_v14  ;;  %5756 = vmatmul.mubr.msk.f32.gmra.mrb[16].mxu0 %vm313_vm1, %v2928_v15 }
  0x80   : > { %871 = vst.msk [vmem:[#allocation3 + $0x670] sm:$0xff] %vm313_vm1, %v452_v50  ;;  %676 = vst.msk [vmem:[#allocation3 + $0x378] sm:$0xff] %vm313_vm1, %v451_v49  ;;  %v465_v19 = vld [vmem:[#allocation2 + $0x170] sm:$0xff]  ;;  %v563_v51 = vld [vmem:[#allocation2 + $0x2] sm:$0xff]  ;;  %5537 = vmatprep.mubr.msk.f32.mxu1 %vm313_vm1, %v1023_v17  ;;  %5758 = vmatprep.mubr.msk.f32.mxu0 %vm313_vm1, %v2929_v18 }
  0x81   : > { %677 = vst.msk [vmem:[#allocation3 + $0x380] sm:$0xff] %vm313_vm1, %v452_v50  ;;  %485 = vst.msk [vmem:[#allocation3 + $0x98] sm:$0xff] %vm313_vm1, %v453_v54  ;;  %v1024_v32 = vld [vmem:[#allocation3 + $0x28] sm:$0xff]  ;;  %v2930_v20 = vld [vmem:[#allocation3 + $0x598] sm:$0xff] }
  0x82   : > { %872 = vst.msk [vmem:[#allocation3 + $0x678] sm:$0xff] %vm313_vm1, %v453_v54  ;;  %678 = vst.msk [vmem:[#allocation3 + $0x388] sm:$0xff] %vm313_vm1, %v453_v54  ;;  %v564_v21 = vld [vmem:[#allocation2 + $0xa] sm:$0xff]  ;;  %v1025_v22 = vld [vmem:[#allocation3 + $0x30] sm:$0xff] }
  0x83   : > { %486 = vst.msk [vmem:[#allocation3 + $0xa0] sm:$0xff] %vm313_vm1, %v454_v57  ;;  %873 = vst.msk [vmem:[#allocation3 + $0x680] sm:$0xff] %vm313_vm1, %v454_v57  ;;  %v2931_v23 = vld [vmem:[#allocation3 + $0x5a0] sm:$0xff]  ;;  %v6752_v24 = vld [vmem:[%s7348_s1 + $0xc] sm:$0xf]  ;;  %5538 = vmatmul.mubr.msk.f32.gmra.mrb[4].mxu1 %vm313_vm1, %v1024_v32  ;;  %5759 = vmatmul.mubr.msk.f32.gmra.mrb[18].mxu0 %vm313_vm1, %v2930_v20 }
  0x84   : > { %679 = vst.msk [vmem:[#allocation3 + $0x390] sm:$0xff] %vm313_vm1, %v454_v57  ;;  %487 = vst.msk [vmem:[#allocation3 + $0xa8] sm:$0xff] %vm313_vm1, %v455_v59  ;;  %5629 = vmatprep.subr.msk.mxu1 %vm1184_vm0, %v6752_v24  ;;  %5540 = vmatprep.mubr.msk.f32.mxu1 %vm313_vm1, %v1025_v22  ;;  %v1026_v25 = vld [vmem:[#allocation3 + $0x38] sm:$0xff]  ;;  %v2932_v26 = vld [vmem:[#allocation3 + $0x5a8] sm:$0xff] }
  0x85   : > { %874 = vst.msk [vmem:[#allocation3 + $0x688] sm:$0xff] %vm313_vm1, %v455_v59  ;;  %680 = vst.msk [vmem:[#allocation3 + $0x398] sm:$0xff] %vm313_vm1, %v455_v59  ;;  %v788_v0 = vld [vmem:[#allocation2 + $0x182] sm:$0xff]  ;;  %v789_v1 = vld [vmem:[#allocation2 + $0x18a] sm:$0xff]  ;;  %5761 = vmatprep.mubr.msk.f32.mxu0 %vm313_vm1, %v2931_v23 }
  0x86   : > { %488 = vst.msk [vmem:[#allocation3 + $0xb0] sm:$0xff] %vm313_vm1, %v456_v62  ;;  %875 = vst.msk [vmem:[#allocation3 + $0x690] sm:$0xff] %vm313_vm1, %v456_v62  ;;  %v1027_v27 = vld [vmem:[#allocation3 + $0x40] sm:$0xff]  ;;  %v2933_v28 = vld [vmem:[#allocation3 + $0x5b0] sm:$0xff] }
  0x87   : > { %681 = vst.msk [vmem:[#allocation3 + $0x3a0] sm:$0xff] %vm313_vm1, %v456_v62  ;;  %821 = vst.msk [vmem:[#allocation3 + $0x5f0] sm:$0xff] %vm313_vm1, %v788_v0  ;;  %5541 = vmatmul.mubr.msk.f32.gmra.mrb[6].mxu1 %vm313_vm1, %v1026_v25  ;;  %5762 = vmatmul.mubr.msk.f32.gmra.mrb[20].mxu0 %vm313_vm1, %v2932_v26  ;;  %v1028_v29 = vld [vmem:[#allocation3 + $0x48] sm:$0xff]  ;;  %v2934_v30 = vld [vmem:[#allocation3 + $0x5b8] sm:$0xff] }
  0x88   : > { %822 = vst.msk [vmem:[#allocation3 + $0x5f8] sm:$0xff] %vm313_vm1, %v789_v1  ;;  %489 = vst.msk [vmem:[#allocation3 + $0xb8] sm:$0xff] %vm313_vm1, %v457_v2  ;;  %5543 = vmatprep.mubr.msk.f32.mxu1 %vm313_vm1, %v1027_v27  ;;  %5764 = vmatprep.mubr.msk.f32.mxu0 %vm313_vm1, %v2933_v28  ;;  %v1029_v31 = vld [vmem:[#allocation3 + $0x50] sm:$0xff]  ;;  %v2935_v33 = vld [vmem:[#allocation3 + $0x5c0] sm:$0xff] }
  0x89   : > { %876 = vst.msk [vmem:[#allocation3 + $0x698] sm:$0xff] %vm313_vm1, %v457_v2  ;;  %682 = vst.msk [vmem:[#allocation3 + $0x3a8] sm:$0xff] %vm313_vm1, %v457_v2  ;;  %v1030_v34 = vld [vmem:[#allocation3 + $0x58] sm:$0xff]  ;;  %v2936_v35 = vld [vmem:[#allocation3 + $0x5c8] sm:$0xff] }
  0x8a   : > { %490 = vst.msk [vmem:[#allocation3 + $0xc0] sm:$0xff] %vm313_vm1, %v458_v3  ;;  %877 = vst.msk [vmem:[#allocation3 + $0x6a0] sm:$0xff] %vm313_vm1, %v458_v3  ;;  %v1031_v36 = vld [vmem:[#allocation3 + $0x60] sm:$0xff]  ;;  %v852_v37 = vld [vmem:[#allocation2 + $0x180] sm:$0xff] }
  0x8b   : > { %683 = vst.msk [vmem:[#allocation3 + $0x3b0] sm:$0xff] %vm313_vm1, %v458_v3  ;;  %491 = vst.msk [vmem:[#allocation3 + $0xc8] sm:$0xff] %vm313_vm1, %v459_v6  ;;  %5544 = vmatmul.mubr.msk.f32.gmra.mrb[8].mxu1 %vm313_vm1, %v1028_v29  ;;  %5765 = vmatmul.mubr.msk.f32.gmra.mrb[22].mxu0 %vm313_vm1, %v2934_v30  ;;  %v2937_v38 = vld [vmem:[#allocation3 + $0x5d0] sm:$0xff]  ;;  %v853_v39 = vld [vmem:[#allocation2 + $0x188] sm:$0xff] }
  0x8c   : > { %878 = vst.msk [vmem:[#allocation3 + $0x6a8] sm:$0xff] %vm313_vm1, %v459_v6  ;;  %684 = vst.msk [vmem:[#allocation3 + $0x3b8] sm:$0xff] %vm313_vm1, %v459_v6  ;;  %5546 = vmatprep.mubr.msk.f32.mxu1 %vm313_vm1, %v1029_v31  ;;  %5767 = vmatprep.mubr.msk.f32.mxu0 %vm313_vm1, %v2935_v33  ;;  %v854_v40 = vld [vmem:[#allocation2 + $0x198] sm:$0xff]  ;;  %v855_v41 = vld [vmem:[#allocation2 + $0x1a0] sm:$0xff] }
  0x8d   : > { %492 = vst.msk [vmem:[#allocation3 + $0xd0] sm:$0xff] %vm313_vm1, %v460_v10  ;;  %879 = vst.msk [vmem:[#allocation3 + $0x6b0] sm:$0xff] %vm313_vm1, %v460_v10  ;;  %v1032_v42 = vld [vmem:[#allocation3 + $0x68] sm:$0xff]  ;;  %v2938_v44 = vld [vmem:[#allocation3 + $0x5d8] sm:$0xff] }
  0x8e   : > { %685 = vst.msk [vmem:[#allocation3 + $0x3c0] sm:$0xff] %vm313_vm1, %v460_v10  ;;  %493 = vst.msk [vmem:[#allocation3 + $0xd8] sm:$0xff] %vm313_vm1, %v461_v11  ;;  %v889_v43 = vld [vmem:[#allocation2 + $0x31] sm:$0xff]  ;;  %v890_v45 = vld [vmem:[#allocation2 + $0x39] sm:$0xff] }
  0x8f   : > { %494 = vst.msk [vmem:[#allocation3 + $0xe0] sm:$0xff] %vm313_vm1, %v462_v12  ;;  %880 = vst.msk [vmem:[#allocation3 + $0x6b8] sm:$0xff] %vm313_vm1, %v461_v11  ;;  %5547 = vmatmul.mubr.msk.f32.gmra.mrb[10].mxu1 %vm313_vm1, %v1030_v34  ;;  %5768 = vmatmul.mubr.msk.f32.gmra.mrb[24].mxu0 %vm313_vm1, %v2936_v35  ;;  %v891_v46 = vld [vmem:[#allocation2 + $0x49] sm:$0xff]  ;;  %v1033_v47 = vld [vmem:[#allocation3 + $0x70] sm:$0xff] }
  0x90   : > { %881 = vst.msk [vmem:[#allocation3 + $0x6c0] sm:$0xff] %vm313_vm1, %v462_v12  ;;  %686 = vst.msk [vmem:[#allocation3 + $0x3c8] sm:$0xff] %vm313_vm1, %v461_v11  ;;  %5549 = vmatprep.mubr.msk.f32.mxu1 %vm313_vm1, %v1031_v36  ;;  %5770 = vmatprep.mubr.msk.f32.mxu0 %vm313_vm1, %v2937_v38  ;;  %v2939_v48 = vld [vmem:[#allocation3 + $0x5e0] sm:$0xff]  ;;  %v893_v50 = vld [vmem:[#allocation2 + $0x61] sm:$0xff] }
  0x91   : > { %687 = vst.msk [vmem:[#allocation3 + $0x3d0] sm:$0xff] %vm313_vm1, %v462_v12  ;;  %495 = vst.msk [vmem:[#allocation3 + $0xe8] sm:$0xff] %vm313_vm1, %v463_v13  ;;  %v892_v49 = vld [vmem:[#allocation2 + $0x51] sm:$0xff]  ;;  %v894_v52 = vld [vmem:[#allocation2 + $0x69] sm:$0xff] }
  0x92   : > { %882 = vst.msk [vmem:[#allocation3 + $0x6c8] sm:$0xff] %vm313_vm1, %v463_v13  ;;  %688 = vst.msk [vmem:[#allocation3 + $0x3d8] sm:$0xff] %vm313_vm1, %v463_v13  ;;  %v895_v53 = vld [vmem:[#allocation2 + $0x79] sm:$0xff]  ;;  %v1034_v54 = vld [vmem:[#allocation3 + $0x78] sm:$0xff] }
  0x93   : > { %496 = vst.msk [vmem:[#allocation3 + $0xf0] sm:$0xff] %vm313_vm1, %v464_v16  ;;  %883 = vst.msk [vmem:[#allocation3 + $0x6d0] sm:$0xff] %vm313_vm1, %v464_v16  ;;  %5550 = vmatmul.mubr.msk.f32.gmra.mrb[12].mxu1 %vm313_vm1, %v1032_v42  ;;  %5771 = vmatmul.mubr.msk.f32.gmra.mrb[26].mxu0 %vm313_vm1, %v2938_v44  ;;  %v2940_v55 = vld [vmem:[#allocation3 + $0x5e8] sm:$0xff]  ;;  %v896_v56 = vld [vmem:[#allocation2 + $0x81] sm:$0xff] }
  0x94   : > { %689 = vst.msk [vmem:[#allocation3 + $0x3e0] sm:$0xff] %vm313_vm1, %v464_v16  ;;  %497 = vst.msk [vmem:[#allocation3 + $0xf8] sm:$0xff] %vm313_vm1, %v465_v19  ;;  %5552 = vmatprep.mubr.msk.f32.mxu1 %vm313_vm1, %v1033_v47  ;;  %5773 = vmatprep.mubr.msk.f32.mxu0 %vm313_vm1, %v2939_v48  ;;  %v1035_v57 = vld [vmem:[#allocation3 + $0x80] sm:$0xff]  ;;  %v2941_v58 = vld [vmem:[#allocation3 + $0x5f0] sm:$0xff] }
  0x95   : > { %884 = vst.msk [vmem:[#allocation3 + $0x6d8] sm:$0xff] %vm313_vm1, %v465_v19  ;;  %690 = vst.msk [vmem:[#allocation3 + $0x3e8] sm:$0xff] %vm313_vm1, %v465_v19  ;;  %v897_v59 = vld [vmem:[#allocation2 + $0x91] sm:$0xff]  ;;  %v898_v60 = vld [vmem:[#allocation2 + $0x99] sm:$0xff] }
  0x96   : > { %596 = vst.msk [vmem:[#allocation3 + $0x200] sm:$0xff] %vm313_vm1, %v563_v51  ;;  %597 = vst.msk [vmem:[#allocation3 + $0x208] sm:$0xff] %vm313_vm1, %v564_v21  ;;  %v899_v61 = vld [vmem:[#allocation2 + $0xa9] sm:$0xff]  ;;  %v1036_v62 = vld [vmem:[#allocation3 + $0x88] sm:$0xff] }
  0x97   : > { %885 = vst.msk [vmem:[#allocation3 + $0x6e0] sm:$0xff] %vm313_vm1, %v852_v37  ;;  %691 = vst.msk [vmem:[#allocation3 + $0x3f0] sm:$0xff] %vm313_vm1, %v852_v37  ;;  %5553 = vmatmul.mubr.msk.f32.gmra.mrb[14].mxu1 %vm313_vm1, %v1034_v54  ;;  %5774 = vmatmul.mubr.msk.f32.gmra.mrb[28].mxu0 %vm313_vm1, %v2940_v55  ;;  %v2942_v63 = vld [vmem:[#allocation3 + $0x5f8] sm:$0xff]  ;;  %v1037_v0 = vld [vmem:[#allocation3 + $0x90] sm:$0xff] }
  0x98   : > { %886 = vst.msk [vmem:[#allocation3 + $0x6e8] sm:$0xff] %vm313_vm1, %v853_v39  ;;  %887 = vst.msk [vmem:[#allocation3 + $0x6f0] sm:$0xff] %vm313_vm1, %v854_v40  ;;  %5555 = vmatprep.mubr.msk.f32.mxu1 %vm313_vm1, %v1035_v57  ;;  %5776 = vmatprep.mubr.msk.f32.mxu0 %vm313_vm1, %v2941_v58  ;;  %v3302_v1 = vld [vmem:[#allocation3 + $0x600] sm:$0xff]  ;;  %v901_v3 = vld [vmem:[#allocation2 + $0xc1] sm:$0xff] }
  0x99   : > { %692 = vst.msk [vmem:[#allocation3 + $0x3f8] sm:$0xff] %vm313_vm1, %v853_v39  ;;  %888 = vst.msk [vmem:[#allocation3 + $0x6f8] sm:$0xff] %vm313_vm1, %v855_v41  ;;  %v900_v2 = vld [vmem:[#allocation2 + $0xb1] sm:$0xff]  ;;  %v902_v4 = vld [vmem:[#allocation2 + $0xc9] sm:$0xff] }
  0x9a   : > { %922 = vst.msk [vmem:[#allocation3 + $0x700] sm:$0xff] %vm313_vm1, %v889_v43  ;;  %923 = vst.msk [vmem:[#allocation3 + $0x708] sm:$0xff] %vm313_vm1, %v890_v45  ;;  %v1038_v5 = vld [vmem:[#allocation3 + $0x98] sm:$0xff]  ;;  %v3303_v6 = vld [vmem:[#allocation3 + $0x608] sm:$0xff] }
  0x9b   : > { %924 = vst.msk [vmem:[#allocation3 + $0x710] sm:$0xff] %vm313_vm1, %v891_v46  ;;  %925 = vst.msk [vmem:[#allocation3 + $0x718] sm:$0xff] %vm313_vm1, %v892_v49  ;;  %5556 = vmatmul.mubr.msk.f32.gmra.mrb[16].mxu1 %vm313_vm1, %v1036_v62  ;;  %5777 = vmatmul.mubr.msk.f32.gmra.mrb[30].mxu0 %vm313_vm1, %v2942_v63  ;;  %v903_v8 = vld [vmem:[#allocation2 + $0xd9] sm:$0xff]  ;;  %v1039_v9 = vld [vmem:[#allocation3 + $0xa0] sm:$0xff] }
  0x9c   : > { %926 = vst.msk [vmem:[#allocation3 + $0x720] sm:$0xff] %vm313_vm1, %v893_v50  ;;  %927 = vst.msk [vmem:[#allocation3 + $0x728] sm:$0xff] %vm313_vm1, %v894_v52  ;;  %5558 = vmatprep.mubr.msk.f32.mxu1 %vm313_vm1, %v1037_v0  ;;  %5781 = vmatprep.mubr.msk.f32.mxu0 %vm313_vm1, %v3302_v1  ;;  %v904_v10 = vld [vmem:[#allocation2 + $0xe1] sm:$0xff]  ;;  %v905_v13 = vld [vmem:[#allocation2 + $0xf1] sm:$0xff] }
  0x9d   : > { %928 = vst.msk [vmem:[#allocation3 + $0x730] sm:$0xff] %vm313_vm1, %v895_v53  ;;  %929 = vst.msk [vmem:[#allocation3 + $0x738] sm:$0xff] %vm313_vm1, %v896_v56  ;;  %v3304_v11 = vld [vmem:[#allocation3 + $0x610] sm:$0xff]  ;;  %v1040_v15 = vld [vmem:[#allocation3 + $0xa8] sm:$0xff] }
  0x9e   : > { %930 = vst.msk [vmem:[#allocation3 + $0x740] sm:$0xff] %vm313_vm1, %v897_v59  ;;  %931 = vst.msk [vmem:[#allocation3 + $0x748] sm:$0xff] %vm313_vm1, %v898_v60  ;;  %v6809_v12 = vld [vmem:[%s7348_s1 + $0x20] sm:$0xf]  ;;  %v3305_v16 = vld [vmem:[#allocation3 + $0x618] sm:$0xff] }
  0x9f   : > { %932 = vst.msk [vmem:[#allocation3 + $0x750] sm:$0xff] %vm313_vm1, %v899_v61  ;;  %933 = vst.msk [vmem:[#allocation3 + $0x758] sm:$0xff] %vm313_vm1, %v900_v2  ;;  %5559 = vmatmul.mubr.msk.f32.gmra.mrb[18].mxu1 %vm313_vm1, %v1038_v5  ;;  %5782 = vmatmul.mubr.msk.f32.vlgmr.msra.gmra.mrb[0].mxu0 %vm313_vm1, %v3303_v6  ;;  %v906_v14 = vld [vmem:[#allocation2 + $0xf9] sm:$0xff]  ;;  %v907_v17 = vld [vmem:[#allocation2 + $0x109] sm:$0xff] }
  0xa0   : > { %934 = vst.msk [vmem:[#allocation3 + $0x760] sm:$0xff] %vm313_vm1, %v901_v3  ;;  %935 = vst.msk [vmem:[#allocation3 + $0x768] sm:$0xff] %vm313_vm1, %v902_v4  ;;  %5830 = vmatpush3.msk.msra.mxu0 %vm1184_vm0, %v6592_v7  ;;  %5561 = vmatprep.mubr.msk.f32.mxu1 %vm313_vm1, %v1039_v9  ;;  %v1041_v18 = vld [vmem:[#allocation3 + $0xb0] sm:$0xff]  ;;  %v3306_v19 = vld [vmem:[#allocation3 + $0x620] sm:$0xff] }
  0xa1   : > { %936 = vst.msk [vmem:[#allocation3 + $0x770] sm:$0xff] %vm313_vm1, %v903_v8  ;;  %742 = vst.msk [vmem:[#allocation3 + $0x480] sm:$0xff] %vm313_vm1, %v903_v8  ;;  %5784 = vmatprep.mubr.msk.f32.mxu0 %vm313_vm1, %v3304_v11  ;;  %5879 = vmatprep.subr.msk.mxu0 %vm1184_vm0, %v6809_v12  ;;  %v908_v51 = vld [vmem:[#allocation2 + $0x111] sm:$0xff]  ;;  %v909_v7 = vld [vmem:[#allocation2 + $0x121] sm:$0xff] }
  0xa2   : > { %937 = vst.msk [vmem:[#allocation3 + $0x778] sm:$0xff] %vm313_vm1, %v904_v10  ;;  %743 = vst.msk [vmem:[#allocation3 + $0x488] sm:$0xff] %vm313_vm1, %v904_v10  ;;  %v910_v32 = vld [vmem:[#allocation2 + $0x129] sm:$0xff]  ;;  %v3307_v21 = vld [vmem:[#allocation3 + $0x628] sm:$0xff] }
  0xa3   : > { %938 = vst.msk [vmem:[#allocation3 + $0x780] sm:$0xff] %vm313_vm1, %v905_v13  ;;  %744 = vst.msk [vmem:[#allocation3 + $0x490] sm:$0xff] %vm313_vm1, %v905_v13  ;;  %5562 = vmatmul.mubr.msk.f32.gmra.mrb[20].mxu1 %vm313_vm1, %v1040_v15  ;;  %5785 = vmatmul.mubr.msk.f32.gmra.mrb[2].mxu0 %vm313_vm1, %v3305_v16  ;;  %v1042_v20 = vld [vmem:[#allocation3 + $0xb8] sm:$0xff]  ;;  %v911_v22 = vld [vmem:[#allocation2 + $0x139] sm:$0xff] }
  0xa4   : > { %939 = vst.msk [vmem:[#allocation3 + $0x788] sm:$0xff] %vm313_vm1, %v906_v14  ;;  %745 = vst.msk [vmem:[#allocation3 + $0x498] sm:$0xff] %vm313_vm1, %v906_v14  ;;  %5564 = vmatprep.mubr.msk.f32.mxu1 %vm313_vm1, %v1041_v18  ;;  %5787 = vmatprep.mubr.msk.f32.mxu0 %vm313_vm1, %v3306_v19  ;;  %v1043_v23 = vld [vmem:[#allocation3 + $0xc0] sm:$0xff]  ;;  %v3308_v25 = vld [vmem:[#allocation3 + $0x630] sm:$0xff] }
  0xa5   : > { %940 = vst.msk [vmem:[#allocation3 + $0x790] sm:$0xff] %vm313_vm1, %v907_v17  ;;  %746 = vst.msk [vmem:[#allocation3 + $0x4a0] sm:$0xff] %vm313_vm1, %v907_v17  ;;  %v912_v26 = vld [vmem:[#allocation2 + $0x141] sm:$0xff]  ;;  %v913_v27 = vld [vmem:[#allocation2 + $0x151] sm:$0xff] }
  0xa6   : > { %941 = vst.msk [vmem:[#allocation3 + $0x798] sm:$0xff] %vm313_vm1, %v908_v51  ;;  %747 = vst.msk [vmem:[#allocation3 + $0x4a8] sm:$0xff] %vm313_vm1, %v908_v51  ;;  %v914_v28 = vld [vmem:[#allocation2 + $0x159] sm:$0xff]  ;;  %v3309_v30 = vld [vmem:[#allocation3 + $0x638] sm:$0xff] }
  0xa7   : > { %942 = vst.msk [vmem:[#allocation3 + $0x7a0] sm:$0xff] %vm313_vm1, %v909_v7  ;;  %748 = vst.msk [vmem:[#allocation3 + $0x4b0] sm:$0xff] %vm313_vm1, %v909_v7  ;;  %5565 = vmatmul.mubr.msk.f32.gmra.mrb[22].mxu1 %vm313_vm1, %v1042_v20  ;;  %5788 = vmatmul.mubr.msk.f32.gmra.mrb[4].mxu0 %vm313_vm1, %v3307_v21  ;;  %v1044_v29 = vld [vmem:[#allocation3 + $0xc8] sm:$0xff]  ;;  %v915_v31 = vld [vmem:[#allocation2 + $0x169] sm:$0xff] }
  0xa8   : > { %943 = vst.msk [vmem:[#allocation3 + $0x7a8] sm:$0xff] %vm313_vm1, %v910_v32  ;;  %749 = vst.msk [vmem:[#allocation3 + $0x4b8] sm:$0xff] %vm313_vm1, %v910_v32  ;;  %5567 = vmatprep.mubr.msk.f32.mxu1 %vm313_vm1, %v1043_v23  ;;  %5790 = vmatprep.mubr.msk.f32.mxu0 %vm313_vm1, %v3308_v25  ;;  %v1045_v33 = vld [vmem:[#allocation3 + $0xd0] sm:$0xff]  ;;  %v3310_v34 = vld [vmem:[#allocation3 + $0x640] sm:$0xff] }
  0xa9   : > { %944 = vst.msk [vmem:[#allocation3 + $0x7b0] sm:$0xff] %vm313_vm1, %v911_v22  ;;  %750 = vst.msk [vmem:[#allocation3 + $0x4c0] sm:$0xff] %vm313_vm1, %v911_v22  ;;  %v916_v35 = vld [vmem:[#allocation2 + $0x171] sm:$0xff]  ;;  %v917_v36 = vld [vmem:[#allocation2 + $0x181] sm:$0xff] }
  0xaa   : > { %945 = vst.msk [vmem:[#allocation3 + $0x7b8] sm:$0xff] %vm313_vm1, %v912_v26  ;;  %751 = vst.msk [vmem:[#allocation3 + $0x4c8] sm:$0xff] %vm313_vm1, %v912_v26  ;;  %v918_v37 = vld [vmem:[#allocation2 + $0x189] sm:$0xff]  ;;  %v3311_v39 = vld [vmem:[#allocation3 + $0x648] sm:$0xff] }
  0xab   : > { %946 = vst.msk [vmem:[#allocation3 + $0x7c0] sm:$0xff] %vm313_vm1, %v913_v27  ;;  %752 = vst.msk [vmem:[#allocation3 + $0x4d0] sm:$0xff] %vm313_vm1, %v913_v27  ;;  %5568 = vmatmul.mubr.msk.f32.gmra.mrb[24].mxu1 %vm313_vm1, %v1044_v29  ;;  %5791 = vmatmul.mubr.msk.f32.gmra.mrb[6].mxu0 %vm313_vm1, %v3309_v30  ;;  %v1046_v38 = vld [vmem:[#allocation3 + $0xd8] sm:$0xff]  ;;  %v919_v40 = vld [vmem:[#allocation2 + $0x199] sm:$0xff] }
  0xac   : > { %947 = vst.msk [vmem:[#allocation3 + $0x7c8] sm:$0xff] %vm313_vm1, %v914_v28  ;;  %753 = vst.msk [vmem:[#allocation3 + $0x4d8] sm:$0xff] %vm313_vm1, %v914_v28  ;;  %5570 = vmatprep.mubr.msk.f32.mxu1 %vm313_vm1, %v1045_v33  ;;  %5793 = vmatprep.mubr.msk.f32.mxu0 %vm313_vm1, %v3310_v34  ;;  %v1047_v41 = vld [vmem:[#allocation3 + $0xe0] sm:$0xff]  ;;  %v3312_v42 = vld [vmem:[#allocation3 + $0x650] sm:$0xff] }
  0xad   : > { %948 = vst.msk [vmem:[#allocation3 + $0x7d0] sm:$0xff] %vm313_vm1, %v915_v31  ;;  %754 = vst.msk [vmem:[#allocation3 + $0x4e0] sm:$0xff] %vm313_vm1, %v915_v31  ;;  %v920_v43 = vld [vmem:[#allocation2 + $0x1a1] sm:$0xff]  ;;  %v954_v44 = vld [vmem:[#allocation2 + $0x32] sm:$0xff] }
  0xae   : > { %949 = vst.msk [vmem:[#allocation3 + $0x7d8] sm:$0xff] %vm313_vm1, %v916_v35  ;;  %755 = vst.msk [vmem:[#allocation3 + $0x4e8] sm:$0xff] %vm313_vm1, %v916_v35  ;;  %v955_v45 = vld [vmem:[#allocation2 + $0x3a] sm:$0xff]  ;;  %v3313_v47 = vld [vmem:[#allocation3 + $0x658] sm:$0xff] }
  0xaf   : > { %950 = vst.msk [vmem:[#allocation3 + $0x7e0] sm:$0xff] %vm313_vm1, %v917_v36  ;;  %756 = vst.msk [vmem:[#allocation3 + $0x4f0] sm:$0xff] %vm313_vm1, %v917_v36  ;;  %5571 = vmatmul.mubr.msk.f32.gmra.mrb[26].mxu1 %vm313_vm1, %v1046_v38  ;;  %5794 = vmatmul.mubr.msk.f32.gmra.mrb[8].mxu0 %vm313_vm1, %v3311_v39  ;;  %v1048_v46 = vld [vmem:[#allocation3 + $0xe8] sm:$0xff]  ;;  %v956_v48 = vld [vmem:[#allocation2 + $0x4a] sm:$0xff] }
  0xb0   : > { %951 = vst.msk [vmem:[#allocation3 + $0x7e8] sm:$0xff] %vm313_vm1, %v918_v37  ;;  %757 = vst.msk [vmem:[#allocation3 + $0x4f8] sm:$0xff] %vm313_vm1, %v918_v37  ;;  %5573 = vmatprep.mubr.msk.f32.mxu1 %vm313_vm1, %v1047_v41  ;;  %5796 = vmatprep.mubr.msk.f32.mxu0 %vm313_vm1, %v3312_v42  ;;  %v1049_v49 = vld [vmem:[#allocation3 + $0xf0] sm:$0xff]  ;;  %v3314_v50 = vld [vmem:[#allocation3 + $0x660] sm:$0xff] }
  0xb1   : > { %952 = vst.msk [vmem:[#allocation3 + $0x7f0] sm:$0xff] %vm313_vm1, %v919_v40  ;;  %953 = vst.msk [vmem:[#allocation3 + $0x7f8] sm:$0xff] %vm313_vm1, %v920_v43  ;;  %v957_v52 = vld [vmem:[#allocation2 + $0x52] sm:$0xff]  ;;  %v958_v53 = vld [vmem:[#allocation2 + $0x62] sm:$0xff] }
  0xb2   : > { %987 = vst.msk [vmem:[#allocation3 + $0x800] sm:$0xff] %vm313_vm1, %v954_v44  ;;  %988 = vst.msk [vmem:[#allocation3 + $0x808] sm:$0xff] %vm313_vm1, %v955_v45  ;;  %v959_v54 = vld [vmem:[#allocation2 + $0x6a] sm:$0xff]  ;;  %v3315_v56 = vld [vmem:[#allocation3 + $0x668] sm:$0xff] }
  0xb3   : > { %989 = vst.msk [vmem:[#allocation3 + $0x810] sm:$0xff] %vm313_vm1, %v956_v48  ;;  %990 = vst.msk [vmem:[#allocation3 + $0x818] sm:$0xff] %vm313_vm1, %v957_v52  ;;  %5574 = vmatmul.mubr.msk.f32.gmra.mrb[28].mxu1 %vm313_vm1, %v1048_v46  ;;  %5797 = vmatmul.mubr.msk.f32.gmra.mrb[10].mxu0 %vm313_vm1, %v3313_v47  ;;  %v1050_v55 = vld [vmem:[#allocation3 + $0xf8] sm:$0xff]  ;;  %v960_v57 = vld [vmem:[#allocation2 + $0x7a] sm:$0xff] }
  0xb4   : > { %991 = vst.msk [vmem:[#allocation3 + $0x820] sm:$0xff] %vm313_vm1, %v958_v53  ;;  %5576 = vmatprep.mubr.msk.f32.mxu1 %vm313_vm1, %v1049_v49  ;;  %5799 = vmatprep.mubr.msk.f32.mxu0 %vm313_vm1, %v3314_v50  ;;  %992 = vst.msk [vmem:[#allocation3 + $0x828] sm:$0xff] %vm313_vm1, %v959_v54  ;;  %v1738_v58 = vld [vmem:[#allocation3 + $0x200] sm:$0xff]  ;;  %v3316_v59 = vld [vmem:[#allocation3 + $0x670] sm:$0xff] }
  0xb5   : > { %993 = vst.msk [vmem:[#allocation3 + $0x830] sm:$0xff] %vm313_vm1, %v960_v57  ;;  %v961_v60 = vld [vmem:[#allocation2 + $0x82] sm:$0xff]  ;;  %v962_v61 = vld [vmem:[#allocation2 + $0x92] sm:$0xff]  ;;  %v963_v62 = vld [vmem:[#allocation2 + $0x9a] sm:$0xff] }
  0xb6   : > { %994 = vst.msk [vmem:[#allocation3 + $0x838] sm:$0xff] %vm313_vm1, %v961_v60  ;;  %995 = vst.msk [vmem:[#allocation3 + $0x840] sm:$0xff] %vm313_vm1, %v962_v61  ;;  %v1739_v63 = vld [vmem:[#allocation3 + $0x208] sm:$0xff]  ;;  %v3317_v0 = vld [vmem:[#allocation3 + $0x678] sm:$0xff] }
  0xb7   : > { %5577 = vmatmul.mubr.msk.f32.gmra.mrb[30].mxu1 %vm313_vm1, %v1050_v55  ;;  %5800 = vmatmul.mubr.msk.f32.gmra.mrb[12].mxu0 %vm313_vm1, %v3315_v56  ;;  %996 = vst.msk [vmem:[#allocation3 + $0x848] sm:$0xff] %vm313_vm1, %v963_v62  ;;  %v964_v1 = vld [vmem:[#allocation2 + $0xaa] sm:$0xff]  ;;  %v1740_v2 = vld [vmem:[#allocation3 + $0x210] sm:$0xff]  ;;  %v965_v4 = vld [vmem:[#allocation2 + $0xb2] sm:$0xff] }
  0xb8   : > { %5581 = vmatprep.mubr.msk.f32.mxu1 %vm313_vm1, %v1738_v58  ;;  %5802 = vmatprep.mubr.msk.f32.mxu0 %vm313_vm1, %v3316_v59  ;;  %v3318_v3 = vld [vmem:[#allocation3 + $0x680] sm:$0xff]  ;;  %997 = vst.msk [vmem:[#allocation3 + $0x850] sm:$0xff] %vm313_vm1, %v964_v1  ;;  %998 = vst.msk [vmem:[#allocation3 + $0x858] sm:$0xff] %vm313_vm1, %v965_v4  ;;  %v966_v5 = vld [vmem:[#allocation2 + $0xc2] sm:$0xff] }
  0xb9   : > { %999 = vst.msk [vmem:[#allocation3 + $0x860] sm:$0xff] %vm313_vm1, %v966_v5  ;;  %v967_v6 = vld [vmem:[#allocation2 + $0xca] sm:$0xff]  ;;  %v3319_v9 = vld [vmem:[#allocation3 + $0x688] sm:$0xff]  ;;  %v3320_v13 = vld [vmem:[#allocation3 + $0x690] sm:$0xff] }
  0xba   : > { %v1741_v8 = vld [vmem:[#allocation3 + $0x218] sm:$0xff]  ;;  %1000 = vst.msk [vmem:[#allocation3 + $0x868] sm:$0xff] %vm313_vm1, %v967_v6  ;;  %v968_v10 = vld [vmem:[#allocation2 + $0xda] sm:$0xff]  ;;  %v1742_v11 = vld [vmem:[#allocation3 + $0x220] sm:$0xff] }
  0xbb   : > { %5582 = vmatmul.mubr.msk.f32.vlgmr.msra.gmra.mrb[0].mxu1 %vm313_vm1, %v1739_v63  ;;  %5803 = vmatmul.mubr.msk.f32.gmra.mrb[14].mxu0 %vm313_vm1, %v3317_v0  ;;  %1001 = vst.msk [vmem:[#allocation3 + $0x870] sm:$0xff] %vm313_vm1, %v968_v10  ;;  %v969_v14 = vld [vmem:[#allocation2 + $0xe2] sm:$0xff]  ;;  %v6899_v15 = vld [vmem:[%s7348_s1 + $0x10] sm:$0xf]  ;;  %v971_v17 = vld [vmem:[#allocation2 + $0xfa] sm:$0xff] }
  0xbc   : > { %5584 = vmatprep.mubr.msk.f32.mxu1 %vm313_vm1, %v1740_v2  ;;  %5805 = vmatprep.mubr.msk.f32.mxu0 %vm313_vm1, %v3318_v3  ;;  %1002 = vst.msk [vmem:[#allocation3 + $0x878] sm:$0xff] %vm313_vm1, %v969_v14  ;;  %v970_v16 = vld [vmem:[#allocation2 + $0xf2] sm:$0xff]  ;;  %v3321_v18 = vld [vmem:[#allocation3 + $0x698] sm:$0xff]  ;;  %v1744_v19 = vld [vmem:[#allocation3 + $0x230] sm:$0xff] }
  0xbd   : > { %5630 = vmatpush3.msk.msra.mxu1 %vm1184_vm0, %v6752_v24  ;;  %v1743_v24 = vld [vmem:[#allocation3 + $0x228] sm:$0xff]  ;;  %1003 = vst.msk [vmem:[#allocation3 + $0x880] sm:$0xff] %vm313_vm1, %v970_v16  ;;  %1004 = vst.msk [vmem:[#allocation3 + $0x888] sm:$0xff] %vm313_vm1, %v971_v17  ;;  %v972_v51 = vld [vmem:[#allocation2 + $0x10a] sm:$0xff] }
  0xbe   : > { %5929 = vmatprep.subr.msk.mxu1 %vm1184_vm0, %v6899_v15  ;;  %v3322_v7 = vld [vmem:[#allocation3 + $0x6a0] sm:$0xff]  ;;  %1005 = vst.msk [vmem:[#allocation3 + $0x890] sm:$0xff] %vm313_vm1, %v972_v51  ;;  %v974_v20 = vld [vmem:[#allocation2 + $0x122] sm:$0xff]  ;;  %v976_v22 = vld [vmem:[#allocation2 + $0x13a] sm:$0xff] }
  0xbf   : > { %5585 = vmatmul.mubr.msk.f32.gmra.mrb[2].mxu1 %vm313_vm1, %v1741_v8  ;;  %5806 = vmatmul.mubr.msk.f32.gmra.mrb[16].mxu0 %vm313_vm1, %v3319_v9  ;;  %v973_v32 = vld [vmem:[#allocation2 + $0x112] sm:$0xff]  ;;  %1007 = vst.msk [vmem:[#allocation3 + $0x8a0] sm:$0xff] %vm313_vm1, %v974_v20  ;;  %v975_v21 = vld [vmem:[#allocation2 + $0x12a] sm:$0xff]  ;;  %1009 = vst.msk [vmem:[#allocation3 + $0x8b0] sm:$0xff] %vm313_vm1, %v976_v22 }
  0xc0   : > { %5587 = vmatprep.mubr.msk.f32.mxu1 %vm313_vm1, %v1742_v11  ;;  %5808 = vmatprep.mubr.msk.f32.mxu0 %vm313_vm1, %v3320_v13  ;;  %1006 = vst.msk [vmem:[#allocation3 + $0x898] sm:$0xff] %vm313_vm1, %v973_v32  ;;  %1008 = vst.msk [vmem:[#allocation3 + $0x8a8] sm:$0xff] %vm313_vm1, %v975_v21  ;;  %v977_v23 = vld [vmem:[#allocation2 + $0x142] sm:$0xff]  ;;  %v3323_v26 = vld [vmem:[#allocation3 + $0x6a8] sm:$0xff] }
  0xc1   : > { %v1745_v25 = vld [vmem:[#allocation3 + $0x238] sm:$0xff]  ;;  %1010 = vst.msk [vmem:[#allocation3 + $0x8b8] sm:$0xff] %vm313_vm1, %v977_v23  ;;  %v1746_v27 = vld [vmem:[#allocation3 + $0x240] sm:$0xff]  ;;  %v3324_v28 = vld [vmem:[#allocation3 + $0x6b0] sm:$0xff] }
  0xc2   : > { %v978_v29 = vld [vmem:[#allocation2 + $0x152] sm:$0xff]  ;;  %v979_v30 = vld [vmem:[#allocation2 + $0x15a] sm:$0xff]  ;;  %v3325_v33 = vld [vmem:[#allocation3 + $0x6b8] sm:$0xff] }
  0xc3   : > { %5588 = vmatmul.mubr.msk.f32.gmra.mrb[4].mxu1 %vm313_vm1, %v1743_v24  ;;  %5809 = vmatmul.mubr.msk.f32.gmra.mrb[18].mxu0 %vm313_vm1, %v3321_v18  ;;  %1011 = vst.msk [vmem:[#allocation3 + $0x8c0] sm:$0xff] %vm313_vm1, %v978_v29  ;;  %1012 = vst.msk [vmem:[#allocation3 + $0x8c8] sm:$0xff] %vm313_vm1, %v979_v30  ;;  %v1747_v31 = vld [vmem:[#allocation3 + $0x248] sm:$0xff]  ;;  %v1748_v34 = vld [vmem:[#allocation3 + $0x250] sm:$0xff] }
  0xc4   : > { %5590 = vmatprep.mubr.msk.f32.mxu1 %vm313_vm1, %v1744_v19  ;;  %5811 = vmatprep.mubr.msk.f32.mxu0 %vm313_vm1, %v3322_v7  ;;  %v3326_v35 = vld [vmem:[#allocation3 + $0x6c0] sm:$0xff]  ;;  %v1749_v38 = vld [vmem:[#allocation3 + $0x258] sm:$0xff]  ;;  %v3327_v39 = vld [vmem:[#allocation3 + $0x6c8] sm:$0xff] }
  0xc5   : > { %v980_v36 = vld [vmem:[#allocation2 + $0x16a] sm:$0xff]  ;;  %v981_v37 = vld [vmem:[#allocation2 + $0x172] sm:$0xff]  ;;  %v3328_v41 = vld [vmem:[#allocation3 + $0x6d0] sm:$0xff] }
  0xc6   : > { %1013 = vst.msk [vmem:[#allocation3 + $0x8d0] sm:$0xff] %vm313_vm1, %v980_v36  ;;  %1014 = vst.msk [vmem:[#allocation3 + $0x8d8] sm:$0xff] %vm313_vm1, %v981_v37  ;;  %v1750_v40 = vld [vmem:[#allocation3 + $0x260] sm:$0xff]  ;;  %v982_v42 = vld [vmem:[#allocation2 + $0x182] sm:$0xff] }
  0xc7   : > { %5591 = vmatmul.mubr.msk.f32.gmra.mrb[6].mxu1 %vm313_vm1, %v1745_v25  ;;  %5812 = vmatmul.mubr.msk.f32.gmra.mrb[20].mxu0 %vm313_vm1, %v3323_v26  ;;  %1015 = vst.msk [vmem:[#allocation3 + $0x8e0] sm:$0xff] %vm313_vm1, %v982_v42  ;;  %v983_v43 = vld [vmem:[#allocation2 + $0x18a] sm:$0xff]  ;;  %v1751_v44 = vld [vmem:[#allocation3 + $0x268] sm:$0xff]  ;;  %v1752_v46 = vld [vmem:[#allocation3 + $0x270] sm:$0xff] }
  0xc8   : > { %5593 = vmatprep.mubr.msk.f32.mxu1 %vm313_vm1, %v1746_v27  ;;  %5814 = vmatprep.mubr.msk.f32.mxu0 %vm313_vm1, %v3324_v28  ;;  %1016 = vst.msk [vmem:[#allocation3 + $0x8e8] sm:$0xff] %vm313_vm1, %v983_v43  ;;  %v3329_v45 = vld [vmem:[#allocation3 + $0x6d8] sm:$0xff]  ;;  %v3330_v47 = vld [vmem:[#allocation3 + $0x6e0] sm:$0xff]  ;;  %v984_v48 = vld [vmem:[#allocation2 + $0x19a] sm:$0xff] }
  0xc9   : > { %1017 = vst.msk [vmem:[#allocation3 + $0x8f0] sm:$0xff] %vm313_vm1, %v984_v48  ;;  %v985_v49 = vld [vmem:[#allocation2 + $0x1a2] sm:$0xff]  ;;  %v3331_v52 = vld [vmem:[#allocation3 + $0x6e8] sm:$0xff]  ;;  %v1754_v53 = vld [vmem:[#allocation3 + $0x280] sm:$0xff] }
  0xca   : > { %1018 = vst.msk [vmem:[#allocation3 + $0x8f8] sm:$0xff] %vm313_vm1, %v985_v49  ;;  %v1753_v50 = vld [vmem:[#allocation3 + $0x278] sm:$0xff]  ;;  %v3332_v54 = vld [vmem:[#allocation3 + $0x6f0] sm:$0xff]  ;;  %v1755_v55 = vld [vmem:[#allocation3 + $0x288] sm:$0xff] }
  0xcb   : > { %5594 = vmatmul.mubr.msk.f32.gmra.mrb[8].mxu1 %vm313_vm1, %v1747_v31  ;;  %5815 = vmatmul.mubr.msk.f32.gmra.mrb[22].mxu0 %vm313_vm1, %v3325_v33  ;;  %v3333_v56 = vld [vmem:[#allocation3 + $0x6f8] sm:$0xff]  ;;  %v1756_v57 = vld [vmem:[#allocation3 + $0x290] sm:$0xff]  ;;  %v3693_v58 = vld [vmem:[#allocation3 + $0x700] sm:$0xff] }
  0xcc   : > { %5596 = vmatprep.mubr.msk.f32.mxu1 %vm313_vm1, %v1748_v34  ;;  %5817 = vmatprep.mubr.msk.f32.mxu0 %vm313_vm1, %v3326_v35  ;;  %v1757_v59 = vld [vmem:[#allocation3 + $0x298] sm:$0xff]  ;;  %v3694_v60 = vld [vmem:[#allocation3 + $0x708] sm:$0xff]  ;;  %v1758_v61 = vld [vmem:[#allocation3 + $0x2a0] sm:$0xff] }
  0xcd   : > { %v3695_v62 = vld [vmem:[#allocation3 + $0x710] sm:$0xff]  ;;  %v1759_v63 = vld [vmem:[#allocation3 + $0x2a8] sm:$0xff]  ;;  %v3696_v0 = vld [vmem:[#allocation3 + $0x718] sm:$0xff] }
  0xce   : > { %v1760_v1 = vld [vmem:[#allocation3 + $0x2b0] sm:$0xff]  ;;  %v3697_v2 = vld [vmem:[#allocation3 + $0x720] sm:$0xff]  ;;  %v1761_v3 = vld [vmem:[#allocation3 + $0x2b8] sm:$0xff] }
  0xcf   : > { %5597 = vmatmul.mubr.msk.f32.gmra.mrb[10].mxu1 %vm313_vm1, %v1749_v38  ;;  %5818 = vmatmul.mubr.msk.f32.gmra.mrb[24].mxu0 %vm313_vm1, %v3327_v39  ;;  %v3698_v4 = vld [vmem:[#allocation3 + $0x728] sm:$0xff]  ;;  %v1762_v5 = vld [vmem:[#allocation3 + $0x2c0] sm:$0xff]  ;;  %v3700_v8 = vld [vmem:[#allocation3 + $0x738] sm:$0xff] }
  0xd0   : > { %5599 = vmatprep.mubr.msk.f32.mxu1 %vm313_vm1, %v1750_v40  ;;  %5820 = vmatprep.mubr.msk.f32.mxu0 %vm313_vm1, %v3328_v41  ;;  %v1763_v6 = vld [vmem:[#allocation3 + $0x2c8] sm:$0xff]  ;;  %v1764_v9 = vld [vmem:[#allocation3 + $0x2d0] sm:$0xff]  ;;  %v3701_v10 = vld [vmem:[#allocation3 + $0x740] sm:$0xff] }
  0xd1   : > { %v1765_v11 = vld [vmem:[#allocation3 + $0x2d8] sm:$0xff]  ;;  %v3702_v13 = vld [vmem:[#allocation3 + $0x748] sm:$0xff]  ;;  %v1766_v14 = vld [vmem:[#allocation3 + $0x2e0] sm:$0xff] }
  0xd2   : > { %v3703_v16 = vld [vmem:[#allocation3 + $0x750] sm:$0xff]  ;;  %v1767_v24 = vld [vmem:[#allocation3 + $0x2e8] sm:$0xff]  ;;  %v3704_v17 = vld [vmem:[#allocation3 + $0x758] sm:$0xff] }
  0xd3   : > { %5600 = vmatmul.mubr.msk.f32.gmra.mrb[12].mxu1 %vm313_vm1, %v1751_v44  ;;  %5821 = vmatmul.mubr.msk.f32.gmra.mrb[26].mxu0 %vm313_vm1, %v3329_v45  ;;  %v1768_v18 = vld [vmem:[#allocation3 + $0x2f0] sm:$0xff]  ;;  %v3705_v19 = vld [vmem:[#allocation3 + $0x760] sm:$0xff]  ;;  %v1769_v51 = vld [vmem:[#allocation3 + $0x2f8] sm:$0xff] }
  0xd4   : > { %5602 = vmatprep.mubr.msk.f32.mxu1 %vm313_vm1, %v1752_v46  ;;  %5823 = vmatprep.mubr.msk.f32.mxu0 %vm313_vm1, %v3330_v47  ;;  %v3706_v7 = vld [vmem:[#allocation3 + $0x768] sm:$0xff]  ;;  %v2129_v32 = vld [vmem:[#allocation3 + $0x300] sm:$0xff]  ;;  %v3707_v20 = vld [vmem:[#allocation3 + $0x770] sm:$0xff] }
  0xd5   : > { %v2130_v21 = vld [vmem:[#allocation3 + $0x308] sm:$0xff]  ;;  %v3708_v22 = vld [vmem:[#allocation3 + $0x778] sm:$0xff]  ;;  %v2131_v23 = vld [vmem:[#allocation3 + $0x310] sm:$0xff] }
  0xd6   : > { %v3709_v25 = vld [vmem:[#allocation3 + $0x780] sm:$0xff]  ;;  %v2132_v26 = vld [vmem:[#allocation3 + $0x318] sm:$0xff]  ;;  %v3710_v27 = vld [vmem:[#allocation3 + $0x788] sm:$0xff] }
  0xd7   : > { %5603 = vmatmul.mubr.msk.f32.gmra.mrb[14].mxu1 %vm313_vm1, %v1753_v50  ;;  %5824 = vmatmul.mubr.msk.f32.gmra.mrb[28].mxu0 %vm313_vm1, %v3331_v52  ;;  %v2133_v28 = vld [vmem:[#allocation3 + $0x320] sm:$0xff]  ;;  %v3711_v29 = vld [vmem:[#allocation3 + $0x790] sm:$0xff]  ;;  %v2134_v30 = vld [vmem:[#allocation3 + $0x328] sm:$0xff] }
  0xd8   : > { %5605 = vmatprep.mubr.msk.f32.mxu1 %vm313_vm1, %v1754_v53  ;;  %5826 = vmatprep.mubr.msk.f32.mxu0 %vm313_vm1, %v3332_v54  ;;  %v3712_v31 = vld [vmem:[#allocation3 + $0x798] sm:$0xff]  ;;  %v2135_v33 = vld [vmem:[#allocation3 + $0x330] sm:$0xff]  ;;  %v3713_v34 = vld [vmem:[#allocation3 + $0x7a0] sm:$0xff] }
  0xd9   : > { %v3714_v35 = vld [vmem:[#allocation3 + $0x7a8] sm:$0xff]  ;;  %v2137_v36 = vld [vmem:[#allocation3 + $0x340] sm:$0xff]  ;;  %v3715_v37 = vld [vmem:[#allocation3 + $0x7b0] sm:$0xff] }
  0xda   : > { %v2138_v38 = vld [vmem:[#allocation3 + $0x348] sm:$0xff]  ;;  %v3716_v39 = vld [vmem:[#allocation3 + $0x7b8] sm:$0xff]  ;;  %v2139_v40 = vld [vmem:[#allocation3 + $0x350] sm:$0xff] }
  0xdb   : > { %5606 = vmatmul.mubr.msk.f32.gmra.mrb[16].mxu1 %vm313_vm1, %v1755_v55  ;;  %5827 = vmatmul.mubr.msk.f32.gmra.mrb[30].mxu0 %vm313_vm1, %v3333_v56  ;;  %v3717_v41 = vld [vmem:[#allocation3 + $0x7c0] sm:$0xff]  ;;  %v2140_v42 = vld [vmem:[#allocation3 + $0x358] sm:$0xff]  ;;  %v3718_v43 = vld [vmem:[#allocation3 + $0x7c8] sm:$0xff] }
  0xdc   : > { %5608 = vmatprep.mubr.msk.f32.mxu1 %vm313_vm1, %v1756_v57  ;;  %5831 = vmatprep.mubr.msk.f32.mxu0 %vm313_vm1, %v3693_v58  ;;  %v2141_v44 = vld [vmem:[#allocation3 + $0x360] sm:$0xff]  ;;  %v3719_v45 = vld [vmem:[#allocation3 + $0x7d0] sm:$0xff]  ;;  %v2142_v46 = vld [vmem:[#allocation3 + $0x368] sm:$0xff] }
  0xdd   : > { %v3720_v47 = vld [vmem:[#allocation3 + $0x7d8] sm:$0xff]  ;;  %v2143_v48 = vld [vmem:[#allocation3 + $0x370] sm:$0xff]  ;;  %v3721_v49 = vld [vmem:[#allocation3 + $0x7e0] sm:$0xff] }
  0xde   : > { %v2144_v50 = vld [vmem:[#allocation3 + $0x378] sm:$0xff]  ;;  %v3722_v52 = vld [vmem:[#allocation3 + $0x7e8] sm:$0xff]  ;;  %v2145_v53 = vld [vmem:[#allocation3 + $0x380] sm:$0xff] }
  0xdf   : > { %5609 = vmatmul.mubr.msk.f32.gmra.mrb[18].mxu1 %vm313_vm1, %v1757_v59  ;;  %5832 = vmatmul.mubr.msk.f32.vlgmr.msra.gmra.mrb[0].mxu0 %vm313_vm1, %v3694_v60  ;;  %v3723_v54 = vld [vmem:[#allocation3 + $0x7f0] sm:$0xff]  ;;  %v2146_v55 = vld [vmem:[#allocation3 + $0x388] sm:$0xff]  ;;  %v3724_v56 = vld [vmem:[#allocation3 + $0x7f8] sm:$0xff] }
  0xe0   : > { %5880 = vmatpush3.msk.msra.mxu0 %vm1184_vm0, %v6809_v12  ;;  %5611 = vmatprep.mubr.msk.f32.mxu1 %vm313_vm1, %v1758_v61  ;;  %v3699_v12 = vld [vmem:[#allocation3 + $0x730] sm:$0xff]  ;;  %v4084_v58 = vld [vmem:[#allocation3 + $0x800] sm:$0xff]  ;;  %v2148_v59 = vld [vmem:[#allocation3 + $0x398] sm:$0xff] }
  0xe1   : > { %5834 = vmatprep.mubr.msk.f32.mxu0 %vm313_vm1, %v3695_v62  ;;  %v2147_v57 = vld [vmem:[#allocation3 + $0x390] sm:$0xff]  ;;  %v4085_v60 = vld [vmem:[#allocation3 + $0x808] sm:$0xff]  ;;  %v2149_v61 = vld [vmem:[#allocation3 + $0x3a0] sm:$0xff] }
  0xe2   : > { %v4086_v62 = vld [vmem:[#allocation3 + $0x810] sm:$0xff] }
  0xe3   : > { %5612 = vmatmul.mubr.msk.f32.gmra.mrb[20].mxu1 %vm313_vm1, %v1759_v63  ;;  %5835 = vmatmul.mubr.msk.f32.gmra.mrb[2].mxu0 %vm313_vm1, %v3696_v0  ;;  %v2150_v63 = vld [vmem:[#allocation3 + $0x3a8] sm:$0xff]  ;;  %v4087_v0 = vld [vmem:[#allocation3 + $0x818] sm:$0xff] }
  0xe4   : > { %5614 = vmatprep.mubr.msk.f32.mxu1 %vm313_vm1, %v1760_v1  ;;  %5837 = vmatprep.mubr.msk.f32.mxu0 %vm313_vm1, %v3697_v2  ;;  %v2151_v1 = vld [vmem:[#allocation3 + $0x3b0] sm:$0xff]  ;;  %v4088_v2 = vld [vmem:[#allocation3 + $0x820] sm:$0xff] }
  0xe7   : > { %5615 = vmatmul.mubr.msk.f32.gmra.mrb[22].mxu1 %vm313_vm1, %v1761_v3  ;;  %5838 = vmatmul.mubr.msk.f32.gmra.mrb[4].mxu0 %vm313_vm1, %v3698_v4  ;;  %v2152_v3 = vld [vmem:[#allocation3 + $0x3b8] sm:$0xff]  ;;  %v4089_v4 = vld [vmem:[#allocation3 + $0x828] sm:$0xff] }
  0xe8   : > { %5617 = vmatprep.mubr.msk.f32.mxu1 %vm313_vm1, %v1762_v5  ;;  %5840 = vmatprep.mubr.msk.f32.mxu0 %vm313_vm1, %v3699_v12  ;;  %v2153_v5 = vld [vmem:[#allocation3 + $0x3c0] sm:$0xff]  ;;  %v4090_v12 = vld [vmem:[#allocation3 + $0x830] sm:$0xff] }
  0xeb   : > { %5618 = vmatmul.mubr.msk.f32.gmra.mrb[24].mxu1 %vm313_vm1, %v1763_v6  ;;  %5841 = vmatmul.mubr.msk.f32.gmra.mrb[6].mxu0 %vm313_vm1, %v3700_v8  ;;  %v2154_v6 = vld [vmem:[#allocation3 + $0x3c8] sm:$0xff]  ;;  %v4091_v8 = vld [vmem:[#allocation3 + $0x838] sm:$0xff] }
  0xec   : > { %5620 = vmatprep.mubr.msk.f32.mxu1 %vm313_vm1, %v1764_v9  ;;  %5843 = vmatprep.mubr.msk.f32.mxu0 %vm313_vm1, %v3701_v10  ;;  %v2155_v9 = vld [vmem:[#allocation3 + $0x3d0] sm:$0xff]  ;;  %v4092_v10 = vld [vmem:[#allocation3 + $0x840] sm:$0xff] }
  0xef   : > { %5621 = vmatmul.mubr.msk.f32.gmra.mrb[26].mxu1 %vm313_vm1, %v1765_v11  ;;  %5844 = vmatmul.mubr.msk.f32.gmra.mrb[8].mxu0 %vm313_vm1, %v3702_v13  ;;  %v2156_v11 = vld [vmem:[#allocation3 + $0x3d8] sm:$0xff]  ;;  %v4093_v13 = vld [vmem:[#allocation3 + $0x848] sm:$0xff] }
  0xf0   : > { %5623 = vmatprep.mubr.msk.f32.mxu1 %vm313_vm1, %v1766_v14  ;;  %5846 = vmatprep.mubr.msk.f32.mxu0 %vm313_vm1, %v3703_v16  ;;  %v2157_v14 = vld [vmem:[#allocation3 + $0x3e0] sm:$0xff]  ;;  %v4094_v16 = vld [vmem:[#allocation3 + $0x850] sm:$0xff] }
  0xf3   : > { %5624 = vmatmul.mubr.msk.f32.gmra.mrb[28].mxu1 %vm313_vm1, %v1767_v24  ;;  %5847 = vmatmul.mubr.msk.f32.gmra.mrb[10].mxu0 %vm313_vm1, %v3704_v17  ;;  %v2158_v24 = vld [vmem:[#allocation3 + $0x3e8] sm:$0xff]  ;;  %v4095_v17 = vld [vmem:[#allocation3 + $0x858] sm:$0xff] }
  0xf4   : > { %5626 = vmatprep.mubr.msk.f32.mxu1 %vm313_vm1, %v1768_v18  ;;  %5849 = vmatprep.mubr.msk.f32.mxu0 %vm313_vm1, %v3705_v19  ;;  %v2159_v18 = vld [vmem:[#allocation3 + $0x3f0] sm:$0xff]  ;;  %v4096_v19 = vld [vmem:[#allocation3 + $0x860] sm:$0xff] }
  0xf7   : > { %5627 = vmatmul.mubr.msk.f32.gmra.mrb[30].mxu1 %vm313_vm1, %v1769_v51  ;;  %5850 = vmatmul.mubr.msk.f32.gmra.mrb[12].mxu0 %vm313_vm1, %v3706_v7  ;;  %v2160_v51 = vld [vmem:[#allocation3 + $0x3f8] sm:$0xff]  ;;  %v4097_v7 = vld [vmem:[#allocation3 + $0x868] sm:$0xff] }
  0xf8   : > { %5631 = vmatprep.mubr.msk.f32.mxu1 %vm313_vm1, %v2129_v32  ;;  %5852 = vmatprep.mubr.msk.f32.mxu0 %vm313_vm1, %v3707_v20  ;;  %v2536_v32 = vld [vmem:[#allocation3 + $0x480] sm:$0xff]  ;;  %v4098_v20 = vld [vmem:[#allocation3 + $0x870] sm:$0xff] }
  0xfb   : > { %5632 = vmatmul.mubr.msk.f32.vlgmr.msra.gmra.mrb[0].mxu1 %vm313_vm1, %v2130_v21  ;;  %5853 = vmatmul.mubr.msk.f32.gmra.mrb[14].mxu0 %vm313_vm1, %v3708_v22  ;;  %v2537_v21 = vld [vmem:[#allocation3 + $0x488] sm:$0xff]  ;;  %v4099_v22 = vld [vmem:[#allocation3 + $0x878] sm:$0xff] }
  0xfc   : > { %5634 = vmatprep.mubr.msk.f32.mxu1 %vm313_vm1, %v2131_v23  ;;  %5855 = vmatprep.mubr.msk.f32.mxu0 %vm313_vm1, %v3709_v25  ;;  %v2538_v23 = vld [vmem:[#allocation3 + $0x490] sm:$0xff]  ;;  %v4100_v25 = vld [vmem:[#allocation3 + $0x880] sm:$0xff] }
  0xfd   : > { %5930 = vmatpush3.msk.msra.mxu1 %vm1184_vm0, %v6899_v15  ;;  %v2136_v15 = vld [vmem:[#allocation3 + $0x338] sm:$0xff] }
  0xff   : > { %5635 = vmatmul.mubr.msk.f32.gmra.mrb[2].mxu1 %vm313_vm1, %v2132_v26  ;;  %5856 = vmatmul.mubr.msk.f32.gmra.mrb[16].mxu0 %vm313_vm1, %v3710_v27  ;;  %v2539_v26 = vld [vmem:[#allocation3 + $0x498] sm:$0xff]  ;;  %v4101_v27 = vld [vmem:[#allocation3 + $0x888] sm:$0xff] }
 0x100   : > { %5637 = vmatprep.mubr.msk.f32.mxu1 %vm313_vm1, %v2133_v28  ;;  %5858 = vmatprep.mubr.msk.f32.mxu0 %vm313_vm1, %v3711_v29  ;;  %v2540_v28 = vld [vmem:[#allocation3 + $0x4a0] sm:$0xff]  ;;  %v4102_v29 = vld [vmem:[#allocation3 + $0x890] sm:$0xff] }
 0x103   : > { %5638 = vmatmul.mubr.msk.f32.gmra.mrb[4].mxu1 %vm313_vm1, %v2134_v30  ;;  %5859 = vmatmul.mubr.msk.f32.gmra.mrb[18].mxu0 %vm313_vm1, %v3712_v31  ;;  %v2541_v30 = vld [vmem:[#allocation3 + $0x4a8] sm:$0xff]  ;;  %v4103_v31 = vld [vmem:[#allocation3 + $0x898] sm:$0xff] }
 0x104   : > { %5640 = vmatprep.mubr.msk.f32.mxu1 %vm313_vm1, %v2135_v33  ;;  %5861 = vmatprep.mubr.msk.f32.mxu0 %vm313_vm1, %v3713_v34  ;;  %v2542_v33 = vld [vmem:[#allocation3 + $0x4b0] sm:$0xff]  ;;  %v4104_v34 = vld [vmem:[#allocation3 + $0x8a0] sm:$0xff] }
 0x107   : > { %5641 = vmatmul.mubr.msk.f32.gmra.mrb[6].mxu1 %vm313_vm1, %v2136_v15  ;;  %5862 = vmatmul.mubr.msk.f32.gmra.mrb[20].mxu0 %vm313_vm1, %v3714_v35  ;;  %v2543_v15 = vld [vmem:[#allocation3 + $0x4b8] sm:$0xff]  ;;  %v4105_v35 = vld [vmem:[#allocation3 + $0x8a8] sm:$0xff] }
 0x108   : > { %5643 = vmatprep.mubr.msk.f32.mxu1 %vm313_vm1, %v2137_v36  ;;  %5864 = vmatprep.mubr.msk.f32.mxu0 %vm313_vm1, %v3715_v37  ;;  %v2544_v36 = vld [vmem:[#allocation3 + $0x4c0] sm:$0xff]  ;;  %v4106_v37 = vld [vmem:[#allocation3 + $0x8b0] sm:$0xff] }
 0x10b   : > { %5644 = vmatmul.mubr.msk.f32.gmra.mrb[8].mxu1 %vm313_vm1, %v2138_v38  ;;  %5865 = vmatmul.mubr.msk.f32.gmra.mrb[22].mxu0 %vm313_vm1, %v3716_v39  ;;  %v2545_v38 = vld [vmem:[#allocation3 + $0x4c8] sm:$0xff]  ;;  %v4107_v39 = vld [vmem:[#allocation3 + $0x8b8] sm:$0xff] }
 0x10c   : > { %5646 = vmatprep.mubr.msk.f32.mxu1 %vm313_vm1, %v2139_v40  ;;  %5867 = vmatprep.mubr.msk.f32.mxu0 %vm313_vm1, %v3717_v41  ;;  %v2546_v40 = vld [vmem:[#allocation3 + $0x4d0] sm:$0xff]  ;;  %v4108_v41 = vld [vmem:[#allocation3 + $0x8c0] sm:$0xff] }
 0x10f   : > { %5647 = vmatmul.mubr.msk.f32.gmra.mrb[10].mxu1 %vm313_vm1, %v2140_v42  ;;  %5868 = vmatmul.mubr.msk.f32.gmra.mrb[24].mxu0 %vm313_vm1, %v3718_v43  ;;  %v2547_v42 = vld [vmem:[#allocation3 + $0x4d8] sm:$0xff]  ;;  %v4109_v43 = vld [vmem:[#allocation3 + $0x8c8] sm:$0xff] }
 0x110   : > { %5649 = vmatprep.mubr.msk.f32.mxu1 %vm313_vm1, %v2141_v44  ;;  %5870 = vmatprep.mubr.msk.f32.mxu0 %vm313_vm1, %v3719_v45  ;;  %v2548_v44 = vld [vmem:[#allocation3 + $0x4e0] sm:$0xff]  ;;  %v4110_v45 = vld [vmem:[#allocation3 + $0x8d0] sm:$0xff] }
 0x113   : > { %5650 = vmatmul.mubr.msk.f32.gmra.mrb[12].mxu1 %vm313_vm1, %v2142_v46  ;;  %5871 = vmatmul.mubr.msk.f32.gmra.mrb[26].mxu0 %vm313_vm1, %v3720_v47  ;;  %v2549_v46 = vld [vmem:[#allocation3 + $0x4e8] sm:$0xff]  ;;  %v4111_v47 = vld [vmem:[#allocation3 + $0x8d8] sm:$0xff] }
 0x114   : > { %5652 = vmatprep.mubr.msk.f32.mxu1 %vm313_vm1, %v2143_v48  ;;  %5873 = vmatprep.mubr.msk.f32.mxu0 %vm313_vm1, %v3721_v49  ;;  %v2550_v48 = vld [vmem:[#allocation3 + $0x4f0] sm:$0xff]  ;;  %v4112_v49 = vld [vmem:[#allocation3 + $0x8e0] sm:$0xff] }
 0x117   : > { %5653 = vmatmul.mubr.msk.f32.gmra.mrb[14].mxu1 %vm313_vm1, %v2144_v50  ;;  %5874 = vmatmul.mubr.msk.f32.gmra.mrb[28].mxu0 %vm313_vm1, %v3722_v52  ;;  %v2551_v50 = vld [vmem:[#allocation3 + $0x4f8] sm:$0xff]  ;;  %v4113_v52 = vld [vmem:[#allocation3 + $0x8e8] sm:$0xff] }
 0x118   : > { %5655 = vmatprep.mubr.msk.f32.mxu1 %vm313_vm1, %v2145_v53  ;;  %5876 = vmatprep.mubr.msk.f32.mxu0 %vm313_vm1, %v3723_v54  ;;  %v4114_v53 = vld [vmem:[#allocation3 + $0x8f0] sm:$0xff]  ;;  %v4115_v54 = vld [vmem:[#allocation3 + $0x8f8] sm:$0xff] }
 0x11b   : > { %5656 = vmatmul.mubr.msk.f32.gmra.mrb[16].mxu1 %vm313_vm1, %v2146_v55  ;;  %5877 = vmatmul.mubr.msk.f32.gmra.mrb[30].mxu0 %vm313_vm1, %v3724_v56 }
 0x11c   : > { %5658 = vmatprep.mubr.msk.f32.mxu1 %vm313_vm1, %v2147_v57  ;;  %5881 = vmatprep.mubr.msk.f32.mxu0 %vm313_vm1, %v4084_v58 }
 0x11f   : > { %5659 = vmatmul.mubr.msk.f32.gmra.mrb[18].mxu1 %vm313_vm1, %v2148_v59  ;;  %5882 = vmatmul.mubr.msk.f32.vlgmr.msra.gmra.mrb[0].mxu0 %vm313_vm1, %v4085_v60 }
 0x120   : > { %5661 = vmatprep.mubr.msk.f32.mxu1 %vm313_vm1, %v2149_v61  ;;  %5884 = vmatprep.mubr.msk.f32.mxu0 %vm313_vm1, %v4086_v62 }
 0x123   : > { %5662 = vmatmul.mubr.msk.f32.gmra.mrb[20].mxu1 %vm313_vm1, %v2150_v63  ;;  %5885 = vmatmul.mubr.msk.f32.gmra.mrb[2].mxu0 %vm313_vm1, %v4087_v0 }
 0x124   : > { %5664 = vmatprep.mubr.msk.f32.mxu1 %vm313_vm1, %v2151_v1  ;;  %5887 = vmatprep.mubr.msk.f32.mxu0 %vm313_vm1, %v4088_v2 }
 0x127   : > { %5665 = vmatmul.mubr.msk.f32.gmra.mrb[22].mxu1 %vm313_vm1, %v2152_v3  ;;  %5888 = vmatmul.mubr.msk.f32.gmra.mrb[4].mxu0 %vm313_vm1, %v4089_v4 }
 0x128   : > { %5667 = vmatprep.mubr.msk.f32.mxu1 %vm313_vm1, %v2153_v5  ;;  %5890 = vmatprep.mubr.msk.f32.mxu0 %vm313_vm1, %v4090_v12 }
 0x12b   : > { %5668 = vmatmul.mubr.msk.f32.gmra.mrb[24].mxu1 %vm313_vm1, %v2154_v6  ;;  %5891 = vmatmul.mubr.msk.f32.gmra.mrb[6].mxu0 %vm313_vm1, %v4091_v8  ;;  %v7091_v8 = vld [vmem:[%s7349_s2] ss:$0 sm:$0xff] }
 0x12c   : > { %5670 = vmatprep.mubr.msk.f32.mxu1 %vm313_vm1, %v2155_v9  ;;  %5893 = vmatprep.mubr.msk.f32.mxu0 %vm313_vm1, %v4092_v10 }
 0x12f   : > { %5671 = vmatmul.mubr.msk.f32.gmra.mrb[26].mxu1 %vm313_vm1, %v2156_v11  ;;  %5894 = vmatmul.mubr.msk.f32.gmra.mrb[8].mxu0 %vm313_vm1, %v4093_v13 }
 0x130   : > { %5673 = vmatprep.mubr.msk.f32.mxu1 %vm313_vm1, %v2157_v14  ;;  %5896 = vmatprep.mubr.msk.f32.mxu0 %vm313_vm1, %v4094_v16 }
 0x133   : > { %5674 = vmatmul.mubr.msk.f32.gmra.mrb[28].mxu1 %vm313_vm1, %v2158_v24  ;;  %5897 = vmatmul.mubr.msk.f32.gmra.mrb[10].mxu0 %vm313_vm1, %v4095_v17 }
 0x134   : > { %5676 = vmatprep.mubr.msk.f32.mxu1 %vm313_vm1, %v2159_v18  ;;  %5899 = vmatprep.mubr.msk.f32.mxu0 %vm313_vm1, %v4096_v19 }
 0x137   : > { %5677 = vmatmul.mubr.msk.f32.gmra.mrb[30].mxu1 %vm313_vm1, %v2160_v51  ;;  %5900 = vmatmul.mubr.msk.f32.gmra.mrb[12].mxu0 %vm313_vm1, %v4097_v7 }
 0x138   : > { %5705 = vmatprep.mubr.msk.f32.mxu1 %vm313_vm1, %v2536_v32  ;;  %5902 = vmatprep.mubr.msk.f32.mxu0 %vm313_vm1, %v4098_v20 }
 0x13b   : > { %5706 = vmatmul.mubr.msk.f32.vlgmr.msra.gmra.mrb[16].mxu1 %vm313_vm1, %v2537_v21  ;;  %5903 = vmatmul.mubr.msk.f32.gmra.mrb[14].mxu0 %vm313_vm1, %v4099_v22 }
 0x13c   : > { %5708 = vmatprep.mubr.msk.f32.mxu1 %vm313_vm1, %v2538_v23  ;;  %5905 = vmatprep.mubr.msk.f32.mxu0 %vm313_vm1, %v4100_v25 }
 0x13f   : > { %5709 = vmatmul.mubr.msk.f32.gmra.mrb[18].mxu1 %vm313_vm1, %v2539_v26  ;;  %5906 = vmatmul.mubr.msk.f32.gmra.mrb[16].mxu0 %vm313_vm1, %v4101_v27 }
 0x140   : > { %5711 = vmatprep.mubr.msk.f32.mxu1 %vm313_vm1, %v2540_v28  ;;  %5908 = vmatprep.mubr.msk.f32.mxu0 %vm313_vm1, %v4102_v29 }
 0x143   : > { %5712 = vmatmul.mubr.msk.f32.gmra.mrb[20].mxu1 %vm313_vm1, %v2541_v30  ;;  %5909 = vmatmul.mubr.msk.f32.gmra.mrb[18].mxu0 %vm313_vm1, %v4103_v31 }
 0x144   : > { %5714 = vmatprep.mubr.msk.f32.mxu1 %vm313_vm1, %v2542_v33  ;;  %5911 = vmatprep.mubr.msk.f32.mxu0 %vm313_vm1, %v4104_v34 }
 0x147   : > { %5715 = vmatmul.mubr.msk.f32.gmra.mrb[22].mxu1 %vm313_vm1, %v2543_v15  ;;  %5912 = vmatmul.mubr.msk.f32.gmra.mrb[20].mxu0 %vm313_vm1, %v4105_v35 }
 0x148   : > { %5717 = vmatprep.mubr.msk.f32.mxu1 %vm313_vm1, %v2544_v36  ;;  %5914 = vmatprep.mubr.msk.f32.mxu0 %vm313_vm1, %v4106_v37 }
 0x14b   : > { %5718 = vmatmul.mubr.msk.f32.gmra.mrb[24].mxu1 %vm313_vm1, %v2545_v38  ;;  %5915 = vmatmul.mubr.msk.f32.gmra.mrb[22].mxu0 %vm313_vm1, %v4107_v39 }
 0x14c   : > { %5720 = vmatprep.mubr.msk.f32.mxu1 %vm313_vm1, %v2546_v40  ;;  %5917 = vmatprep.mubr.msk.f32.mxu0 %vm313_vm1, %v4108_v41 }
 0x14f   : > { %5721 = vmatmul.mubr.msk.f32.gmra.mrb[26].mxu1 %vm313_vm1, %v2547_v42  ;;  %5918 = vmatmul.mubr.msk.f32.gmra.mrb[24].mxu0 %vm313_vm1, %v4109_v43 }
 0x150   : > { %5723 = vmatprep.mubr.msk.f32.mxu1 %vm313_vm1, %v2548_v44  ;;  %5920 = vmatprep.mubr.msk.f32.mxu0 %vm313_vm1, %v4110_v45 }
 0x153   : > { %5724 = vmatmul.mubr.msk.f32.gmra.mrb[28].mxu1 %vm313_vm1, %v2549_v46  ;;  %5921 = vmatmul.mubr.msk.f32.gmra.mrb[26].mxu0 %vm313_vm1, %v4111_v47 }
 0x154   : > { %5726 = vmatprep.mubr.msk.f32.mxu1 %vm313_vm1, %v2550_v48  ;;  %5923 = vmatprep.mubr.msk.f32.mxu0 %vm313_vm1, %v4112_v49 }
 0x157   : > { %5727 = vmatmul.mubr.msk.f32.gmra.mrb[30].mxu1 %vm313_vm1, %v2551_v50  ;;  %5924 = vmatmul.mubr.msk.f32.gmra.mrb[28].mxu0 %vm313_vm1, %v4113_v52 }
 0x158   : > { %5926 = vmatprep.mubr.msk.f32.mxu0 %vm313_vm1, %v4114_v53 }
 0x15b   : > { %5927 = vmatmul.mubr.msk.f32.gmra.mrb[30].mxu0 %vm313_vm1, %v4115_v54 }
 0x1ce   : > { %v5633_v55 = vpop.f32.mrb[0].mxu1 }
 0x1cf   : > { %v2328_v56 = vpop.f32.mrb[1].mxu1 }
 0x1d2   : > { %v5636_v57 = vpop.f32.mrb[2].mxu1 }
 0x1d3   : > { %v2338_v58 = vpop.f32.mrb[3].mxu1 }
 0x1d6   : > { %v5639_v59 = vpop.f32.mrb[4].mxu1 }
 0x1d7   : > { %v2348_v60 = vpop.f32.mrb[5].mxu1 }
 0x1da   : > { %v5642_v61 = vpop.f32.mrb[6].mxu1 }
 0x1db   : > { %v2358_v62 = vpop.f32.mrb[7].mxu1 }
 0x1de   : > { %v5645_v63 = vpop.f32.mrb[8].mxu1 }
 0x1df   : > { %v2368_v0 = vpop.f32.mrb[9].mxu1 }
 0x1e2   : > { %v5648_v1 = vpop.f32.mrb[10].mxu1 }
 0x1e3   : > { %v2378_v2 = vpop.f32.mrb[11].mxu1 }
 0x1e6   : > { %v7080_v3 = vpop.f32.mrb[12].mxu1 }
 0x1e7   : > { %v7082_v4 = vpop.f32.mrb[13].mxu1 }
 0x1ea   : > { %v7084_v5 = vpop.f32.mrb[14].mxu1 }
 0x1eb   : > { %v7086_v12 = vpop.f32.mrb[15].mxu1 }
 0x1f2   : > { %v5883_v6 = vpop.f32.mrb[0].mxu0 }
 0x1f3   : > { %v7093_v9 = vadd.f32 %v5883_v6, %v5633_v55  ;;  %v4283_v10 = vpop.f32.mrb[1].mxu0 }
 0x1f4   : > { %v7102_v11 = vadd.f32 %v4283_v10, %v2328_v56 }
 0x1f5   : > { %v4623_v13 = vadd.f32 %v7093_v9, %v7091_v8 }
 0x1f6   : > { %v4622_v14 = vadd.f32 %v7102_v11, %v7091_v8  ;;  %v5886_v16 = vpop.f32.mrb[2].mxu0  ;;  %v4474_v18 = vadd.f32 %v7102_v11, %v7093_v9 }
 0x1f7   : > { %4655 = vst [vmem:[%s7100_s29 + $0x8] sm:$0xff] %v4623_v13  ;;  %v7109_v24 = vadd.f32 %v5886_v16, %v5636_v57  ;;  %v4293_v17 = vpop.f32.mrb[3].mxu0 }
 0x1f8   : > { %4654 = vst [vmem:[%s7100_s29] sm:$0xff] %v4622_v14  ;;  %v7114_v19 = vadd.f32 %v4293_v17, %v2338_v58 }
 0x1f9   : > { %v4625_v51 = vadd.f32 %v7109_v24, %v7091_v8 }
 0x1fa   : > { %v4475_v7 = vadd.f32 %v7114_v19, %v4474_v18  ;;  %v4624_v32 = vadd.f32 %v7114_v19, %v7091_v8  ;;  %v5889_v20 = vpop.f32.mrb[4].mxu0 }
 0x1fb   : > { %4657 = vst [vmem:[%s7100_s29 + $0x18] sm:$0xff] %v4625_v51  ;;  %v7122_v21 = vadd.f32 %v5889_v20, %v5639_v59  ;;  %v4303_v22 = vpop.f32.mrb[5].mxu0 }
 0x1fc   : > { %4656 = vst [vmem:[%s7100_s29 + $0x10] sm:$0xff] %v4624_v32  ;;  %v7125_v23 = vadd.f32 %v4303_v22, %v2348_v60  ;;  %v4476_v25 = vadd.f32 %v7109_v24, %v4475_v7 }
 0x1fd   : > { %v4627_v26 = vadd.f32 %v7122_v21, %v7091_v8 }
 0x1fe   : > { %v4477_v27 = vadd.f32 %v7125_v23, %v4476_v25  ;;  %v4626_v28 = vadd.f32 %v7125_v23, %v7091_v8  ;;  %v5892_v29 = vpop.f32.mrb[6].mxu0 }
 0x1ff   : > { %4659 = vst [vmem:[%s7100_s29 + $0x28] sm:$0xff] %v4627_v26  ;;  %v7134_v30 = vadd.f32 %v5892_v29, %v5642_v61  ;;  %v4313_v31 = vpop.f32.mrb[7].mxu0 }
 0x200   : > { %4658 = vst [vmem:[%s7100_s29 + $0x20] sm:$0xff] %v4626_v28  ;;  %v7137_v33 = vadd.f32 %v4313_v31, %v2358_v62  ;;  %v4478_v34 = vadd.f32 %v7122_v21, %v4477_v27 }
 0x201   : > { %v4629_v15 = vadd.f32 %v7134_v30, %v7091_v8 }
 0x202   : > { %v4479_v35 = vadd.f32 %v7137_v33, %v4478_v34  ;;  %v4628_v36 = vadd.f32 %v7137_v33, %v7091_v8  ;;  %v5895_v37 = vpop.f32.mrb[8].mxu0 }
 0x203   : > { %4661 = vst [vmem:[%s7100_s29 + $0x38] sm:$0xff] %v4629_v15  ;;  %v7146_v38 = vadd.f32 %v5895_v37, %v5645_v63  ;;  %v4323_v39 = vpop.f32.mrb[9].mxu0 }
 0x204   : > { %4660 = vst [vmem:[%s7100_s29 + $0x30] sm:$0xff] %v4628_v36  ;;  %v7149_v40 = vadd.f32 %v4323_v39, %v2368_v0  ;;  %v4480_v41 = vadd.f32 %v7134_v30, %v4479_v35 }
 0x205   : > { %v4631_v42 = vadd.f32 %v7146_v38, %v7091_v8 }
 0x206   : > { %v4481_v43 = vadd.f32 %v7149_v40, %v4480_v41  ;;  %v4630_v44 = vadd.f32 %v7149_v40, %v7091_v8  ;;  %v5898_v45 = vpop.f32.mrb[10].mxu0 }
 0x207   : > { %4663 = vst [vmem:[%s7100_s29 + $0x48] sm:$0xff] %v4631_v42  ;;  %v7158_v46 = vadd.f32 %v5898_v45, %v5648_v1  ;;  %v4333_v47 = vpop.f32.mrb[11].mxu0 }
 0x208   : > { %4662 = vst [vmem:[%s7100_s29 + $0x40] sm:$0xff] %v4630_v44  ;;  %v7161_v48 = vadd.f32 %v4333_v47, %v2378_v2  ;;  %v4482_v49 = vadd.f32 %v7146_v38, %v4481_v43 }
 0x209   : > { %v4633_v50 = vadd.f32 %v7158_v46, %v7091_v8 }
 0x20a   : > { %v4483_v52 = vadd.f32 %v7161_v48, %v4482_v49  ;;  %v4632_v53 = vadd.f32 %v7161_v48, %v7091_v8  ;;  %v5901_v54 = vpop.f32.mrb[12].mxu0 }
 0x20b   : > { %4665 = vst [vmem:[%s7100_s29 + $0x58] sm:$0xff] %v4633_v50  ;;  %v7171_v55 = vadd.f32 %v5901_v54, %v7080_v3  ;;  %v4343_v56 = vpop.f32.mrb[13].mxu0 }
 0x20c   : > { %4664 = vst [vmem:[%s7100_s29 + $0x50] sm:$0xff] %v4632_v53  ;;  %v7175_v57 = vadd.f32 %v4343_v56, %v7082_v4  ;;  %v4484_v58 = vadd.f32 %v7158_v46, %v4483_v52 }
 0x20d   : > { %v4635_v59 = vadd.f32 %v7171_v55, %v7091_v8 }
 0x20e   : > { %v4485_v60 = vadd.f32 %v7175_v57, %v4484_v58  ;;  %v4634_v61 = vadd.f32 %v7175_v57, %v7091_v8  ;;  %v5707_v62 = vpop.f32.mrb[16].mxu1  ;;  %v5904_v63 = vpop.f32.mrb[14].mxu0 }
 0x20f   : > { %4667 = vst [vmem:[%s7100_s29 + $0x68] sm:$0xff] %v4635_v59  ;;  %v7185_v0 = vadd.f32 %v5904_v63, %v7084_v5  ;;  %v2799_v1 = vpop.f32.mrb[17].mxu1  ;;  %v4353_v2 = vpop.f32.mrb[15].mxu0 }
 0x210   : > { %4666 = vst [vmem:[%s7100_s29 + $0x60] sm:$0xff] %v4634_v61  ;;  %v7189_v3 = vadd.f32 %v4353_v2, %v7086_v12  ;;  %v4486_v4 = vadd.f32 %v7171_v55, %v4485_v60 }
 0x211   : > { %v4637_v6 = vadd.f32 %v7185_v0, %v7091_v8 }
 0x212   : > { %v4487_v10 = vadd.f32 %v7189_v3, %v4486_v4  ;;  %v4636_v13 = vadd.f32 %v7189_v3, %v7091_v8  ;;  %v5710_v14 = vpop.f32.mrb[18].mxu1  ;;  %v5907_v5 = vpop.f32.mrb[16].mxu0 }
 0x213   : > { %4669 = vst [vmem:[%s7100_s29 + $0x78] sm:$0xff] %v4637_v6  ;;  %v7198_v16 = vadd.f32 %v5907_v5, %v5707_v62  ;;  %v2809_v17 = vpop.f32.mrb[19].mxu1  ;;  %v4363_v12 = vpop.f32.mrb[17].mxu0 }
 0x214   : > { %4668 = vst [vmem:[%s7100_s29 + $0x70] sm:$0xff] %v4636_v13  ;;  %v7201_v18 = vadd.f32 %v4363_v12, %v2799_v1  ;;  %v4488_v51 = vadd.f32 %v7185_v0, %v4487_v10 }
 0x215   : > { %v4639_v7 = vadd.f32 %v7198_v16, %v7091_v8 }
 0x216   : > { %v4489_v32 = vadd.f32 %v7201_v18, %v4488_v51  ;;  %v4638_v20 = vadd.f32 %v7201_v18, %v7091_v8  ;;  %v5713_v22 = vpop.f32.mrb[20].mxu1  ;;  %v5910_v25 = vpop.f32.mrb[18].mxu0 }
 0x217   : > { %4671 = vst [vmem:[%s7100_s29 + $0x88] sm:$0xff] %v4639_v7  ;;  %v7210_v26 = vadd.f32 %v5910_v25, %v5710_v14  ;;  %v2819_v27 = vpop.f32.mrb[21].mxu1  ;;  %v4373_v28 = vpop.f32.mrb[19].mxu0 }
 0x218   : > { %4670 = vst [vmem:[%s7100_s29 + $0x80] sm:$0xff] %v4638_v20  ;;  %v7213_v29 = vadd.f32 %v4373_v28, %v2809_v17  ;;  %v4490_v31 = vadd.f32 %v7198_v16, %v4489_v32 }
 0x219   : > { %v4641_v34 = vadd.f32 %v7210_v26, %v7091_v8 }
 0x21a   : > { %v4491_v15 = vadd.f32 %v7213_v29, %v4490_v31  ;;  %v4640_v35 = vadd.f32 %v7213_v29, %v7091_v8  ;;  %v5716_v36 = vpop.f32.mrb[22].mxu1  ;;  %v5913_v37 = vpop.f32.mrb[20].mxu0 }
 0x21b   : > { %4673 = vst [vmem:[%s7100_s29 + $0x98] sm:$0xff] %v4641_v34  ;;  %v7222_v39 = vadd.f32 %v5913_v37, %v5713_v22  ;;  %v2829_v41 = vpop.f32.mrb[23].mxu1  ;;  %v4383_v42 = vpop.f32.mrb[21].mxu0 }
 0x21c   : > { %4672 = vst [vmem:[%s7100_s29 + $0x90] sm:$0xff] %v4640_v35  ;;  %v7225_v43 = vadd.f32 %v4383_v42, %v2819_v27  ;;  %v4492_v44 = vadd.f32 %v7210_v26, %v4491_v15 }
 0x21d   : > { %v4643_v45 = vadd.f32 %v7222_v39, %v7091_v8 }
 0x21e   : > { %v4493_v47 = vadd.f32 %v7225_v43, %v4492_v44  ;;  %v4642_v49 = vadd.f32 %v7225_v43, %v7091_v8  ;;  %v5719_v50 = vpop.f32.mrb[24].mxu1  ;;  %v5916_v52 = vpop.f32.mrb[22].mxu0 }
 0x21f   : > { %4675 = vst [vmem:[%s7100_s29 + $0xa8] sm:$0xff] %v4643_v45  ;;  %v7234_v53 = vadd.f32 %v5916_v52, %v5716_v36  ;;  %v2839_v54 = vpop.f32.mrb[25].mxu1  ;;  %v4393_v56 = vpop.f32.mrb[23].mxu0 }
 0x220   : > { %4674 = vst [vmem:[%s7100_s29 + $0xa0] sm:$0xff] %v4642_v49  ;;  %v7237_v58 = vadd.f32 %v4393_v56, %v2829_v41  ;;  %v4494_v59 = vadd.f32 %v7222_v39, %v4493_v47 }
 0x221   : > { %v4645_v60 = vadd.f32 %v7234_v53, %v7091_v8 }
 0x222   : > { %v4495_v61 = vadd.f32 %v7237_v58, %v4494_v59  ;;  %v4644_v62 = vadd.f32 %v7237_v58, %v7091_v8  ;;  %v5722_v63 = vpop.f32.mrb[26].mxu1  ;;  %v5919_v1 = vpop.f32.mrb[24].mxu0 }
 0x223   : > { %4677 = vst [vmem:[%s7100_s29 + $0xb8] sm:$0xff] %v4645_v60  ;;  %v7246_v2 = vadd.f32 %v5919_v1, %v5719_v50  ;;  %v2849_v4 = vpop.f32.mrb[27].mxu1  ;;  %v4403_v6 = vpop.f32.mrb[25].mxu0 }
 0x224   : > { %4676 = vst [vmem:[%s7100_s29 + $0xb0] sm:$0xff] %v4644_v62  ;;  %v7249_v10 = vadd.f32 %v4403_v6, %v2839_v54  ;;  %v4496_v13 = vadd.f32 %v7234_v53, %v4495_v61 }
 0x225   : > { %v4647_v14 = vadd.f32 %v7246_v2, %v7091_v8 }
 0x226   : > { %v4497_v5 = vadd.f32 %v7249_v10, %v4496_v13  ;;  %v4646_v17 = vadd.f32 %v7249_v10, %v7091_v8  ;;  %v5725_v12 = vpop.f32.mrb[28].mxu1  ;;  %v5922_v51 = vpop.f32.mrb[26].mxu0 }
 0x227   : > { %4679 = vst [vmem:[%s7100_s29 + $0xc8] sm:$0xff] %v4647_v14  ;;  %v5957_v7 = vadd.f32 %v5922_v51, %v5722_v63  ;;  %v2859_v32 = vpop.f32.mrb[29].mxu1  ;;  %v4413_v20 = vpop.f32.mrb[27].mxu0 }
 0x228   : > { %4678 = vst [vmem:[%s7100_s29 + $0xc0] sm:$0xff] %v4646_v17  ;;  %v5958_v22 = vadd.f32 %v4413_v20, %v2849_v4  ;;  %v4498_v25 = vadd.f32 %v7246_v2, %v4497_v5 }
 0x229   : > { %v4649_v27 = vadd.f32 %v5957_v7, %v7091_v8 }
 0x22a   : > { %v4499_v28 = vadd.f32 %v5958_v22, %v4498_v25  ;;  %v4648_v31 = vadd.f32 %v5958_v22, %v7091_v8  ;;  %v5728_v34 = vpop.f32.mrb[30].mxu1  ;;  %v5925_v15 = vpop.f32.mrb[28].mxu0 }
 0x22b   : > { %4681 = vst [vmem:[%s7100_s29 + $0xd8] sm:$0xff] %v4649_v27  ;;  %v5959_v35 = vadd.f32 %v5925_v15, %v5725_v12  ;;  %v2869_v36 = vpop.f32.mrb[31].mxu1  ;;  %v4423_v37 = vpop.f32.mrb[29].mxu0 }
 0x22c   : > { %4680 = vst [vmem:[%s7100_s29 + $0xd0] sm:$0xff] %v4648_v31  ;;  %v5960_v41 = vadd.f32 %v4423_v37, %v2859_v32  ;;  %v4500_v42 = vadd.f32 %v5957_v7, %v4499_v28 }
 0x22d   : > { %v4651_v44 = vadd.f32 %v5959_v35, %v7091_v8 }
 0x22e   : > { %v4501_v45 = vadd.f32 %v5960_v41, %v4500_v42  ;;  %v4650_v47 = vadd.f32 %v5960_v41, %v7091_v8  ;;  %v5928_v49 = vpop.f32.mrb[30].mxu0 }
 0x22f   : > { %4683 = vst [vmem:[%s7100_s29 + $0xe8] sm:$0xff] %v4651_v44  ;;  %v5961_v50 = vadd.f32 %v5928_v49, %v5728_v34  ;;  %v4433_v52 = vpop.f32.mrb[31].mxu0 }
 0x230   : > { %4682 = vst [vmem:[%s7100_s29 + $0xe0] sm:$0xff] %v4650_v47  ;;  %v5962_v54 = vadd.f32 %v4433_v52, %v2869_v36  ;;  %v4502_v56 = vadd.f32 %v5959_v35, %v4501_v45 }
 0x231   : > { %v4653_v59 = vadd.f32 %v5961_v50, %v7091_v8 }
 0x232   : > { %v4503_v60 = vadd.f32 %v5962_v54, %v4502_v56  ;;  %v4652_v61 = vadd.f32 %v5962_v54, %v7091_v8 }
 0x233   : > { %4685 = vst [vmem:[%s7100_s29 + $0xf8] sm:$0xff] %v4653_v59 }
 0x234   : > { %v4504_v62 = vadd.f32 %v5961_v50, %v4503_v60  ;;  %4684 = vst [vmem:[%s7100_s29 + $0xf0] sm:$0xff] %v4652_v61 }
 0x236   : > { %v4505_v63 = vrot.slane %v4504_v62, 4 }
 0x238   : > { %v4506_v1 = vadd.f32 %v4505_v63, %v4504_v62 }
 0x23a   : > { %v4507_v4 = vrot.slane %v4506_v1, 2 }
 0x23c   : > { %v4508_v6 = vadd.f32 %v4507_v4, %v4506_v1 }
 0x23e   : > { %v4509_v13 = vrot.slane %v4508_v6, 1 }
 0x240   : > { %v4510_v14 = vadd.f32 %v4509_v13, %v4508_v6 }
 0x242   : > { %v4511_v5 = vmul.f32 0.00390625, %v4510_v14  ;;  %4613 = vst [vmem:[%s302_s7] sm:$0x1] %v4510_v14 }
 0x244   : > { %v4520_v17 = vsub.f32 %v7149_v40, %v4511_v5  ;;  %v4522_v12 = vsub.f32 %v7161_v48, %v4511_v5  ;;  %v4523_v8 = vsub.f32 %v7158_v46, %v4511_v5  ;;  %v4524_v51 = vsub.f32 %v7175_v57, %v4511_v5 }
 0x245   : > { %v4525_v32 = vsub.f32 %v7171_v55, %v4511_v5  ;;  %v4526_v20 = vsub.f32 %v7189_v3, %v4511_v5  ;;  %v4527_v25 = vsub.f32 %v7185_v0, %v4511_v5  ;;  %v4528_v27 = vsub.f32 %v7201_v18, %v4511_v5 }
 0x246   : > { %v4529_v28 = vsub.f32 %v7198_v16, %v4511_v5  ;;  %v4530_v31 = vsub.f32 %v7213_v29, %v4511_v5  ;;  %v4531_v40 = vsub.f32 %v7210_v26, %v4511_v5  ;;  %v4532_v48 = vsub.f32 %v7225_v43, %v4511_v5 }
 0x247   : > { %v4533_v46 = vsub.f32 %v7222_v39, %v4511_v5  ;;  %v4534_v57 = vsub.f32 %v7237_v58, %v4511_v5  ;;  %v4535_v55 = vsub.f32 %v7234_v53, %v4511_v5  ;;  %v7292_v3 = vsub.f32 %v7249_v10, %v4511_v5 }
 0x248   : > { %v7295_v0 = vsub.f32 %v7246_v2, %v4511_v5  ;;  %v7297_v18 = vsub.f32 %v5958_v22, %v4511_v5  ;;  %v7299_v16 = vsub.f32 %v5957_v7, %v4511_v5  ;;  %v7301_v29 = vsub.f32 %v5960_v41, %v4511_v5 }
 0x249   : > { %v7303_v26 = vsub.f32 %v5959_v35, %v4511_v5  ;;  %v7305_v43 = vsub.f32 %v5962_v54, %v4511_v5  ;;  %v7307_v39 = vsub.f32 %v5961_v50, %v4511_v5  ;;  %v4512_v53 = vsub.f32 %v7102_v11, %v4511_v5 }
 0x24a   : > { %v4513_v58 = vsub.f32 %v7093_v9, %v4511_v5  ;;  %v4514_v10 = vsub.f32 %v7114_v19, %v4511_v5  ;;  %v4515_v22 = vsub.f32 %v7109_v24, %v4511_v5  ;;  %v4516_v7 = vsub.f32 %v7125_v23, %v4511_v5 }
 0x24b   : > { %v4544_v2 = vmul.f32 %v4512_v53, %v4512_v53  ;;  %v4517_v35 = vsub.f32 %v7122_v21, %v4511_v5  ;;  %v4518_v42 = vsub.f32 %v7137_v33, %v4511_v5  ;;  %v4519_v9 = vsub.f32 %v7134_v30, %v4511_v5 }
 0x24c   : > { %v4545_v34 = vmul.f32 %v4513_v58, %v4513_v58  ;;  %v4546_v15 = vmul.f32 %v4514_v10, %v4514_v10  ;;  %v4547_v37 = vmul.f32 %v4515_v22, %v4515_v22  ;;  %v4548_v44 = vmul.f32 %v4516_v7, %v4516_v7 }
 0x24d   : > { %v4549_v45 = vmul.f32 %v4517_v35, %v4517_v35  ;;  %v4550_v47 = vmul.f32 %v4518_v42, %v4518_v42  ;;  %v4521_v24 = vsub.f32 %v7146_v38, %v4511_v5  ;;  %v4551_v50 = vmul.f32 %v4519_v9, %v4519_v9 }
 0x24e   : > { %v4576_v36 = vadd.f32 %v4545_v34, %v4544_v2  ;;  %v4552_v52 = vmul.f32 %v4520_v17, %v4520_v17  ;;  %v4554_v59 = vmul.f32 %v4522_v12, %v4522_v12  ;;  %v4555_v61 = vmul.f32 %v4523_v8, %v4523_v8 }
 0x24f   : > { %v4553_v56 = vmul.f32 %v4521_v24, %v4521_v24  ;;  %v4556_v62 = vmul.f32 %v4524_v51, %v4524_v51  ;;  %v4557_v1 = vmul.f32 %v4525_v32, %v4525_v32  ;;  %v4558_v4 = vmul.f32 %v4526_v20, %v4526_v20 }
 0x250   : > { %v4577_v41 = vadd.f32 %v4576_v36, %v4546_v15  ;;  %v4559_v13 = vmul.f32 %v4527_v25, %v4527_v25  ;;  %v4560_v53 = vmul.f32 %v4528_v27, %v4528_v27  ;;  %v4561_v5 = vmul.f32 %v4529_v28, %v4529_v28 }
 0x251   : > { %v4562_v17 = vmul.f32 %v4530_v31, %v4530_v31  ;;  %v4563_v2 = vmul.f32 %v4531_v40, %v4531_v40  ;;  %v4564_v12 = vmul.f32 %v4532_v48, %v4532_v48  ;;  %v4565_v8 = vmul.f32 %v4533_v46, %v4533_v46 }
 0x252   : > { %v4578_v11 = vadd.f32 %v4577_v41, %v4547_v37  ;;  %v4566_v51 = vmul.f32 %v4534_v57, %v4534_v57  ;;  %v4567_v32 = vmul.f32 %v4535_v55, %v4535_v55  ;;  %v4568_v20 = vmul.f32 %v7292_v3, %v7292_v3 }
 0x253   : > { %v4569_v27 = vmul.f32 %v7295_v0, %v7295_v0  ;;  %v4570_v31 = vmul.f32 %v7297_v18, %v7297_v18  ;;  %v4571_v48 = vmul.f32 %v7299_v16, %v7299_v16  ;;  %v4572_v57 = vmul.f32 %v7301_v29, %v7301_v29 }
 0x254   : > { %v4579_v19 = vadd.f32 %v4578_v11, %v4548_v44  ;;  %v4573_v3 = vmul.f32 %v7303_v26, %v7303_v26  ;;  %v4574_v0 = vmul.f32 %v7305_v43, %v7305_v43  ;;  %v4575_v18 = vmul.f32 %v7307_v39, %v7307_v39 }
 0x256   : > { %v4580_v49 = vadd.f32 %v4579_v19, %v4549_v45 }
 0x258   : > { %v4581_v23 = vadd.f32 %v4580_v49, %v4550_v47 }
 0x25a   : > { %v4582_v54 = vadd.f32 %v4581_v23, %v4551_v50 }
 0x25c   : > { %v4583_v21 = vadd.f32 %v4582_v54, %v4552_v52 }
 0x25e   : > { %v4584_v60 = vadd.f32 %v4583_v21, %v4553_v56 }
 0x260   : > { %v4585_v33 = vadd.f32 %v4584_v60, %v4554_v59 }
 0x262   : > { %v4586_v63 = vadd.f32 %v4585_v33, %v4555_v61 }
 0x264   : > { %v4587_v30 = vadd.f32 %v4586_v63, %v4556_v62 }
 0x266   : > { %v4588_v6 = vadd.f32 %v4587_v30, %v4557_v1 }
 0x268   : > { %v4589_v14 = vadd.f32 %v4588_v6, %v4558_v4 }
 0x26a   : > { %v4590_v38 = vadd.f32 %v4589_v14, %v4559_v13 }
 0x26c   : > { %v4591_v58 = vadd.f32 %v4590_v38, %v4560_v53 }
 0x26e   : > { %v4592_v10 = vadd.f32 %v4591_v58, %v4561_v5 }
 0x270   : > { %v4593_v34 = vadd.f32 %v4592_v10, %v4562_v17 }
 0x272   : > { %v4594_v22 = vadd.f32 %v4593_v34, %v4563_v2 }
 0x274   : > { %v4595_v7 = vadd.f32 %v4594_v22, %v4564_v12 }
 0x276   : > { %v4596_v15 = vadd.f32 %v4595_v7, %v4565_v8 }
 0x278   : > { %v4597_v36 = vadd.f32 %v4596_v15, %v4566_v51 }
 0x27a   : > { %v4598_v25 = vadd.f32 %v4597_v36, %v4567_v32 }
 0x27c   : > { %v4599_v28 = vadd.f32 %v4598_v25, %v4568_v20 }
 0x27e   : > { %v4600_v40 = vadd.f32 %v4599_v28, %v4569_v27 }
 0x280   : > { %v4601_v46 = vadd.f32 %v4600_v40, %v4570_v31 }
 0x282   : > { %v4602_v55 = vadd.f32 %v4601_v46, %v4571_v48 }
 0x284   : > { %v4603_v35 = vadd.f32 %v4602_v55, %v4572_v57 }
 0x286   : > { %v4604_v37 = vadd.f32 %v4603_v35, %v4573_v3 }
 0x288   : > { %v4605_v41 = vadd.f32 %v4604_v37, %v4574_v0 }
 0x28a   : > { %v4606_v42 = vadd.f32 %v4605_v41, %v4575_v18 }
 0x28c   : > { %v4607_v16 = vrot.slane %v4606_v42, 4 }
 0x28e   : > { %v4608_v44 = vadd.f32 %v4607_v16, %v4606_v42 }
 0x290   : > { %v4609_v11 = vrot.slane %v4608_v44, 2 }
 0x292   : > { %v4610_v9 = vadd.f32 %v4609_v11, %v4608_v44 }
 0x294   : > { %v4611_v45 = vrot.slane %v4610_v9, 1 }
 0x296   : > { %v4612_v29 = vadd.f32 %v4611_v45, %v4610_v9 }
 0x298   : > { %4614 = vst [vmem:[%s308_s10] sm:$0x1] %v4612_v29 }
 0x299 PF: > { %s16_s20 = sadd.s32 1, %s6235_s20   ;;  %s7353_s18 = smov %s6231_s19 }
 0x29a   : > { %p13_p5 = scmp.ge.s32.totalorder %s16_s20, 4   ;;  %s7354_s19 = smov %s7356_s21 }
 0x29c   :  { %15 = sbr.rel (!%p13_p5) target bundleno = 2 (0x2), region = 122 }

</bundles_post_ra>
